<compile_context>
chip_gen: v6e
topology: v6e:2x2x1
jax: 0.10.0
libtpu: 0.0.40
codegen_flags: <defaults>
</compile_context>

<pallas_src>
import functools
import math

import jax
import jax.numpy as jnp
from jax.experimental import pallas as pl
from jax.experimental.pallas import tpu as pltpu


_LN_EPS = 1e-5  # PyTorch nn.LayerNorm default eps.


# ----------------------------------------------------------------------------
# Small helpers
# ----------------------------------------------------------------------------
def _round_up(x, m):
    return ((x + m - 1) // m) * m


def _bytes(shape, dtype):
    return math.prod(shape) * jnp.dtype(dtype).itemsize


def _probe_single_buffer():
    """Probe ONCE at import whether pipeline_mode=pl.Buffered(1) lowers/runs."""
    try:
        def _k(a_ref, b_ref, o_ref):
            o_ref[...] = a_ref[...] + b_ref[...]

        f = pl.pallas_call(
            _k,
            out_shape=jax.ShapeDtypeStruct((8, 128), jnp.float32),
            grid=(1,),
            in_specs=[
                pl.BlockSpec((8, 128), lambda i: (0, 0)),
                pl.BlockSpec((8, 128), lambda i: (0, 0),
                             pipeline_mode=pl.Buffered(1)),
            ],
            out_specs=pl.BlockSpec((8, 128), lambda i: (0, 0)),
        )
        jax.block_until_ready(
            f(jnp.zeros((8, 128), jnp.float32), jnp.ones((8, 128), jnp.float32)))
        return True
    except Exception:
        return False


_SINGLE_BUFFER_OK = _probe_single_buffer()


def _query_vmem_cap():
    """Generation-aware VMEM cap (75% of physical; conservative fallback)."""
    try:
        cap = int(pltpu.get_tpu_info().vmem_capacity_bytes)
    except Exception:
        cap = 64 * 1024 * 1024          # v7x-safe fallback
    return max(32 * 1024 * 1024, int(0.75 * cap))


_VMEM_CAP_BYTES = _query_vmem_cap()


def _token_spec(tm, width):
    """Block over the token (row) axis, whole feature axis (lane-dense)."""
    return pl.BlockSpec((tm, width), lambda i: (i, 0))


def _const_spec(shape):
    """Grid-invariant operand (weight / bias / LN param): whole array resident,
    single-buffered when supported."""
    ndim = len(shape)
    index_map = lambda *_: (0,) * ndim
    if _SINGLE_BUFFER_OK:
        return pl.BlockSpec(shape, index_map, pipeline_mode=pl.Buffered(1))
    return pl.BlockSpec(shape, index_map)


def _pad_tokens(arrs, tm):
    """Pad the token (first) axis of each 2-D array to a multiple of the tile."""
    m = arrs[0].shape[0]
    mp = _round_up(m, 8)
    tm_eff = min(tm, mp)           # never larger than the (8-aligned) problem
    mp = _round_up(mp, tm_eff)
    if mp != m:
        arrs = [jnp.pad(a, ((0, mp - m), (0, 0))) for a in arrs]
    return arrs, tm_eff, mp


def _pick_tile(total, target, multiple):
    """Largest tile <= target that is a multiple of `multiple` and divides total."""
    t = min(target, total)
    t = (t // multiple) * multiple
    while t >= multiple:
        if total % t == 0:
            return t
        t -= multiple
    return total


def _est_vmem_bytes(tile_shapes, const_shapes, dtype, f32_elems=0):
    wbuf = 1 if _SINGLE_BUFFER_OK else 2
    tiles = sum(_bytes(s, dtype) for s in tile_shapes)
    consts = sum(_bytes(s, dtype) for s in const_shapes)
    return 2 * tiles + wbuf * consts + 4 * f32_elems


def _compiler_params(dim_semantics, est_bytes):
    vmem = max(32 * 1024 * 1024, int(1.5 * est_bytes))
    vmem = min(vmem, _VMEM_CAP_BYTES)
    return pltpu.CompilerParams(
        dimension_semantics=tuple(dim_semantics),
        vmem_limit_bytes=int(vmem),
    )


# ----------------------------------------------------------------------------
# Kernels
# ----------------------------------------------------------------------------
def _ln_f32(x_f32, g_ref, b_ref):
    mean = jnp.mean(x_f32, axis=-1, keepdims=True)
    xc = x_f32 - mean
    var = jnp.mean(xc * xc, axis=-1, keepdims=True)
    xn = xc * jax.lax.rsqrt(var + _LN_EPS)
    return xn * g_ref[...].astype(jnp.float32) + b_ref[...].astype(jnp.float32)


def _ln_linear_kernel(x_ref, g_ref, bln_ref, w_ref, b_ref, o_ref):
    """out = LayerNorm(x) @ w + b  (fused norm1 + packed QKV projection)."""
    xn = _ln_f32(x_ref[...].astype(jnp.float32), g_ref, bln_ref)
    acc = jnp.dot(xn.astype(w_ref.dtype), w_ref[...],
                  preferred_element_type=jnp.float32)
    o_ref[...] = (acc + b_ref[...].astype(jnp.float32)).astype(o_ref.dtype)


def _attn_proj_residual_kernel(qkv_ref, res_ref, wp_ref, bp_ref, o_ref, *,
                               scale, num_heads, head_dim, embed_dim):
    """out = residual + proj_bias + sum_h softmax(q_h k_h^T * s) v_h @ w_proj[h].

    Reads the packed (N, 3D) QKV tensor directly (q/k/v head columns are static
    slices) -- no HBM transpose -- and fuses the output projection + residual,
    so the per-layer attn_out never touches HBM.
    """
    acc = res_ref[...].astype(jnp.float32) + bp_ref[...].astype(jnp.float32)
    # TODO(synk): for long N, tile queries / KV with online softmax (flash) and
    # use a head-batched dot_general; the full (N, N) score matrix per head is
    # only acceptable for short sequences.
    for h in range(num_heads):
        q = qkv_ref[:, h * head_dim:(h + 1) * head_dim]
        k = qkv_ref[:, embed_dim + h * head_dim:embed_dim + (h + 1) * head_dim]
        v = qkv_ref[:, 2 * embed_dim + h * head_dim:
                    2 * embed_dim + (h + 1) * head_dim]
        s = jnp.dot(q, k.T, preferred_element_type=jnp.float32) * scale
        s = s - jnp.max(s, axis=-1, keepdims=True)
        p = jnp.exp(s)
        l = jnp.sum(p, axis=-1, keepdims=True)
        # TODO(synk): attention dropout is identity in eval mode.
        o_h = jnp.dot(p.astype(v.dtype), v, preferred_element_type=jnp.float32)
        # Normalize the (N, Dh) head output, not the (N, N) probabilities.
        # (approx=True would push the reciprocal to the EUP; kept exact here for
        #  tight parity with the f32 reference.)
        o_h = o_h * pl.reciprocal(l, approx=False)
        acc = acc + jnp.dot(o_h.astype(wp_ref.dtype),
                            wp_ref[h * head_dim:(h + 1) * head_dim, :],
                            preferred_element_type=jnp.float32)
    o_ref[...] = acc.astype(o_ref.dtype)


def _ln_mlp_residual_kernel(x_ref, g_ref, bln_ref, w1_ref, b1_ref,
                            w2_ref, b2_ref, o_ref, xn_sc, acc_sc):
    """out = x + fc2(GELU(fc1(LayerNorm(x)))), hidden dim tiled on grid axis 1."""
    k = pl.program_id(1)

    @pl.when(k == 0)
    def _():
        x = x_ref[...].astype(jnp.float32)
        xn_sc[...] = _ln_f32(x, g_ref, bln_ref)
        acc_sc[...] = x + b2_ref[...].astype(jnp.float32)   # residual + fc2 bias

    h = jnp.dot(xn_sc[...].astype(w1_ref.dtype), w1_ref[...],
                preferred_element_type=jnp.float32)
    h = h + b1_ref[...].astype(jnp.float32)
    # Exact erf GELU (nn.GELU() default) for parity with PyTorch.
    h = 0.5 * h * (1.0 + jax.lax.erf(h * (1.0 / math.sqrt(2.0))))
    # TODO(synk): dropout is identity in eval mode; training would need
    # pltpu.prng_seed + pltpu.stateful_bernoulli masking.
    acc_sc[...] += jnp.dot(h.astype(w2_ref.dtype), w2_ref[...],
                           preferred_element_type=jnp.float32)

    @pl.when(k == pl.num_programs(1) - 1)
    def _():
        o_ref[...] = acc_sc[...].astype(o_ref.dtype)


def _layernorm_kernel(x_ref, g_ref, b_ref, o_ref):
    o_ref[...] = _ln_f32(x_ref[...].astype(jnp.float32), g_ref, b_ref
                         ).astype(o_ref.dtype)


# ----------------------------------------------------------------------------
# Pallas-call wrappers (token-tiled, padded via round-up; all called under jit)
# ----------------------------------------------------------------------------
def ln_linear(x2d, gamma, beta, w, b, *, tm):
    m, d = x2d.shape
    d_out = w.shape[1]
    (xp,), tm_eff, mp = _pad_tokens([x2d], tm)
    est = _est_vmem_bytes([(tm_eff, d), (tm_eff, d_out)],
                          [w.shape, (1, d), (1, d), (1, d_out)], x2d.dtype,
                          f32_elems=tm_eff * (d + d_out))
    out = pl.pallas_call(
        _ln_linear_kernel,
        out_shape=jax.ShapeDtypeStruct((mp, d_out), x2d.dtype),
        grid=(mp // tm_eff,),
        in_specs=[
            _token_spec(tm_eff, d),
            _const_spec((1, d)),
            _const_spec((1, d)),
            _const_spec((d, d_out)),
            _const_spec((1, d_out)),
        ],
        out_specs=_token_spec(tm_eff, d_out),
        compiler_params=_compiler_params(("parallel",), est),
    )(xp, gamma.reshape(1, d), beta.reshape(1, d), w, b.reshape(1, d_out))
    return out[:m]


def attention_proj_residual(qkv, x_res, w_proj, b_proj, *, num_heads):
    """qkv: (B, N, 3D) packed; x_res: (B, N, D) residual -> (B, N, D)."""
    b, n, d3 = qkv.shape
    d = x_res.shape[-1]
    dh = d // num_heads
    kern = functools.partial(_attn_proj_residual_kernel, scale=dh ** (-0.5),
                             num_heads=num_heads, head_dim=dh, embed_dim=d)
    est = _est_vmem_bytes([(n, d3), (n, d), (n, d)], [(d, d), (1, d)],
                          qkv.dtype, f32_elems=n * n + 2 * n * d)
    out = pl.pallas_call(
        kern,
        out_shape=jax.ShapeDtypeStruct((b, n, d), x_res.dtype),
        grid=(b,),
        in_specs=[
            pl.BlockSpec((None, n, d3), lambda i: (i, 0, 0)),
            pl.BlockSpec((None, n, d), lambda i: (i, 0, 0)),
            _const_spec((d, d)),
            _const_spec((1, d)),
        ],
        out_specs=pl.BlockSpec((None, n, d), lambda i: (i, 0, 0)),
        compiler_params=_compiler_params(("parallel",), est),
    )(qkv, x_res, w_proj, b_proj.reshape(1, d))
    return out


def ln_mlp_residual(x2d, gamma, beta, w1, b1, w2, b2, *, tm, th=1024):
    m, d = x2d.shape
    hidden = w1.shape[1]
    th_eff = _pick_tile(hidden, th, 128)
    (xp,), tm_eff, mp = _pad_tokens([x2d], tm)
    est = _est_vmem_bytes(
        [(tm_eff, d), (tm_eff, d), (d, th_eff), (1, th_eff), (th_eff, d)],
        [(1, d), (1, d), (1, d)], x2d.dtype,
        f32_elems=2 * tm_eff * d + tm_eff * th_eff)
    out = pl.pallas_call(
        _ln_mlp_residual_kernel,
        out_shape=jax.ShapeDtypeStruct((mp, d), x2d.dtype),
        grid=(mp // tm_eff, hidden // th_eff),
        in_specs=[
            pl.BlockSpec((tm_eff, d), lambda i, k: (i, 0)),
            _const_spec((1, d)),
            _const_spec((1, d)),
            pl.BlockSpec((d, th_eff), lambda i, k: (0, k)),
            pl.BlockSpec((1, th_eff), lambda i, k: (0, k)),
            pl.BlockSpec((th_eff, d), lambda i, k: (k, 0)),
            _const_spec((1, d)),
        ],
        out_specs=pl.BlockSpec((tm_eff, d), lambda i, k: (i, 0)),
        scratch_shapes=[pltpu.VMEM((tm_eff, d), jnp.float32),
                        pltpu.VMEM((tm_eff, d), jnp.float32)],
        compiler_params=_compiler_params(("parallel", "arbitrary"), est),
    )(xp, gamma.reshape(1, d), beta.reshape(1, d),
      w1, b1.reshape(1, hidden), w2, b2.reshape(1, d))
    return out[:m]


def layernorm(x2d, gamma, beta, *, tm):
    m, d = x2d.shape
    (xp,), tm_eff, mp = _pad_tokens([x2d], tm)
    est = _est_vmem_bytes([(tm_eff, d), (tm_eff, d)], [(1, d), (1, d)],
                          x2d.dtype, f32_elems=tm_eff * d)
    out = pl.pallas_call(
        _layernorm_kernel,
        out_shape=jax.ShapeDtypeStruct((mp, d), x2d.dtype),
        grid=(mp // tm_eff,),
        in_specs=[_token_spec(tm_eff, d), _const_spec((1, d)), _const_spec((1, d))],
        out_specs=_token_spec(tm_eff, d),
        compiler_params=_compiler_params(("parallel",), est),
    )(xp, gamma.reshape(1, d), beta.reshape(1, d))
    return out[:m]


# ----------------------------------------------------------------------------
# Full forward pass (eval mode), jitted
# ----------------------------------------------------------------------------
def encoder_block_forward(x, p, *, num_heads, tm):
    b, n, d = x.shape
    m = b * n
    x2d = x.reshape(m, d)

    # x = x + proj(attn(norm1(x)))   -- QKV stays packed (M, 3D); no 5-D transpose.
    qkv = ln_linear(x2d, p["ln1_g"], p["ln1_b"], p["w_qkv"], p["b_qkv"], tm=tm)
    x = attention_proj_residual(qkv.reshape(b, n, 3 * d), x,
                                p["w_proj"], p["b_proj"], num_heads=num_heads)

    # x = x + fc2(GELU(fc1(norm2(x))))
    x2d = ln_mlp_residual(x.reshape(m, d), p["ln2_g"], p["ln2_b"],
                          p["w_fc1"], p["b_fc1"], p["w_fc2"], p["b_fc2"], tm=tm)
    return x2d.reshape(b, n, d)


@functools.partial(jax.jit, static_argnames=("num_heads", "tm"))
def transformer_encoder_forward(x, params, num_heads, tm=512):
    # TODO(synk): cross-pallas_call weight prefetch (P10) could hide the next
    # layer's w_qkv DMA behind the current MLP matmul on v5e.
    for layer_params in params["layers"]:
        x = encoder_block_forward(x, layer_params, num_heads=num_heads, tm=tm)
    b, n, d = x.shape
    out = layernorm(x.reshape(b * n, d), params["norm_g"], params["norm_b"], tm=tm)
    return out.reshape(b, n, d)


# ----------------------------------------------------------------------------
# Parameter init (mimics PyTorch defaults: Linear U(+-1/sqrt(fan_in)), LN 1/0).
# Weights stored as (in, out) so kernels compute x @ w (== PyTorch x @ W.T).
# ----------------------------------------------------------------------------
def _init_linear(key, fan_in, fan_out, dtype):
    kw, kb = jax.random.split(key)
    bound = 1.0 / math.sqrt(fan_in)
    w = jax.random.uniform(kw, (fan_in, fan_out), dtype, minval=-bound, maxval=bound)
    b = jax.random.uniform(kb, (fan_out,), dtype, minval=-bound, maxval=bound)
    return w, b


def init_transformer_params(key, embed_dim, depth, num_heads, mlp_ratio,
                            dtype=jnp.float32):
    hidden = int(embed_dim * mlp_ratio)
    layers = []
    for _ in range(depth):
        key, k1, k2, k3, k4 = jax.random.split(key, 5)
        w_qkv, b_qkv = _init_linear(k1, embed_dim, 3 * embed_dim, dtype)
        w_proj, b_proj = _init_linear(k2, embed_dim, embed_dim, dtype)
        w_fc1, b_fc1 = _init_linear(k3, embed_dim, hidden, dtype)
        w_fc2, b_fc2 = _init_linear(k4, hidden, embed_dim, dtype)
        layers.append(dict(
            ln1_g=jnp.ones((embed_dim,), dtype), ln1_b=jnp.zeros((embed_dim,), dtype),
            ln2_g=jnp.ones((embed_dim,), dtype), ln2_b=jnp.zeros((embed_dim,), dtype),
            w_qkv=w_qkv, b_qkv=b_qkv, w_proj=w_proj, b_proj=b_proj,
            w_fc1=w_fc1, b_fc1=b_fc1, w_fc2=w_fc2, b_fc2=b_fc2))
    return dict(layers=layers,
                norm_g=jnp.ones((embed_dim,), dtype),
                norm_b=jnp.zeros((embed_dim,), dtype))


# ----------------------------------------------------------------------------
# Pure-JAX reference (same math, eval mode) for the self-check
# ----------------------------------------------------------------------------
def _ref_layernorm(x, g, b):
    mean = jnp.mean(x, axis=-1, keepdims=True)
    var = jnp.mean((x - mean) ** 2, axis=-1, keepdims=True)
    return (x - mean) / jnp.sqrt(var + _LN_EPS) * g + b


def _ref_forward(x, params, num_heads):
    for p in params["layers"]:
        b_, n_, d_ = x.shape
        dh = d_ // num_heads
        xn = _ref_layernorm(x, p["ln1_g"], p["ln1_b"])
        qkv = xn @ p["w_qkv"] + p["b_qkv"]
        qkv = qkv.reshape(b_, n_, 3, num_heads, dh).transpose(2, 0, 3, 1, 4)
        q, k, v = qkv[0], qkv[1], qkv[2]
        attn = (q @ jnp.swapaxes(k, -2, -1)) * (dh ** (-0.5))
        attn = jax.nn.softmax(attn, axis=-1)
        ao = (attn @ v).transpose(0, 2, 1, 3).reshape(b_, n_, d_)
        x = x + (ao @ p["w_proj"] + p["b_proj"])
        xn = _ref_layernorm(x, p["ln2_g"], p["ln2_b"])
        h = xn @ p["w_fc1"] + p["b_fc1"]
        h = 0.5 * h * (1.0 + jax.lax.erf(h / math.sqrt(2.0)))
        x = x + (h @ p["w_fc2"] + p["b_fc2"])
    return _ref_layernorm(x, params["norm_g"], params["norm_b"])


if __name__ == "__main__":
    # Small shapes, but lane-dense feature dims (multiples of 128).
    B, N = 2, 16
    EMBED, DEPTH, HEADS, MLP_RATIO = 128, 2, 4, 4.0

    key = jax.random.PRNGKey(0)
    kx, kp = jax.random.split(key)
    x = jax.random.normal(kx, (B, N, EMBED), dtype=jnp.float32)
    # NOTE: switch dtype=jnp.bfloat16 here for v6e/v7x MXU throughput (relax the
    # parity tolerance accordingly); demo stays f32 for exact reference parity.
    params = init_transformer_params(kp, EMBED, DEPTH, HEADS, MLP_RATIO)

    out = transformer_encoder_forward(x, params, num_heads=HEADS, tm=512)
    out = jax.block_until_ready(out)

    ref = _ref_forward(x, params, HEADS)
    assert out.shape == (B, N, EMBED)
    err = float(jnp.max(jnp.abs(out - ref)))
    assert err < 2e-3, f"max abs err {err}"

    print("KERNEL_OK")
</pallas_src>

<mosaic_0001>
module attributes {stable_mosaic.version = 11 : i64} {
  func.func @_k(%arg0: i32, %arg1: memref<8x128xf32, #tpu.memory_space<vmem>>, %arg2: memref<8x128xf32, #tpu.memory_space<vmem>>, %arg3: memref<8x128xf32, #tpu.memory_space<vmem>>) attributes {dimension_semantics = [#tpu.dimension_semantics<arbitrary>], iteration_bounds = array<i64: 1>, scalar_prefetch = 0 : i64, scratch_operands = 0 : i64, tpu.core_type = #tpu.core_type<tc>, window_params = [{pipeline_mode = #tpu.pipeline_mode<synchronous>, transform_indices = @transform_0, window_bounds = array<i64: 8, 128>}, {pipeline_mode = #tpu.pipeline_mode<synchronous>, transform_indices = @transform_1, window_bounds = array<i64: 8, 128>}, {pipeline_mode = #tpu.pipeline_mode<synchronous>, transform_indices = @transform_2, window_bounds = array<i64: 8, 128>}]} {
    %c0 = arith.constant 0 : index
    %c0_0 = arith.constant 0 : index
    %0 = vector.load %arg1[%c0, %c0_0] : memref<8x128xf32, #tpu.memory_space<vmem>>, vector<8x128xf32>
    %c0_1 = arith.constant 0 : index
    %c0_2 = arith.constant 0 : index
    %1 = vector.load %arg2[%c0_1, %c0_2] : memref<8x128xf32, #tpu.memory_space<vmem>>, vector<8x128xf32>
    %2 = arith.addf %0, %1 : vector<8x128xf32>
    %c0_3 = arith.constant 0 : index
    %c0_4 = arith.constant 0 : index
    %3 = vector.load %arg3[%c0_3, %c0_4] : memref<8x128xf32, #tpu.memory_space<vmem>>, vector<8x128xf32>
    tpu.vector_store %arg3[%c0_3, %c0_4], %2 {strides = array<i32>} : memref<8x128xf32, #tpu.memory_space<vmem>>, vector<8x128xf32>,
    return
  }
  func.func @transform_0(%arg0: i32) -> (i32, i32) {
    %c0_i32 = arith.constant 0 : i32
    %c0_i32_0 = arith.constant 0 : i32
    %c0_i32_1 = arith.constant 0 : i32
    return %c0_i32, %c0_i32_0 : i32, i32
  }
  func.func @transform_1(%arg0: i32) -> (i32, i32) {
    %c0_i32 = arith.constant 0 : i32
    %c0_i32_0 = arith.constant 0 : i32
    %c0_i32_1 = arith.constant 0 : i32
    return %c0_i32, %c0_i32_0 : i32, i32
  }
  func.func @transform_2(%arg0: i32) -> (i32, i32) {
    %c0_i32 = arith.constant 0 : i32
    %c0_i32_0 = arith.constant 0 : i32
    %c0_i32_1 = arith.constant 0 : i32
    return %c0_i32, %c0_i32_0 : i32, i32
  }
}

module attributes {stable_mosaic.version = 11 : i64} {
  func.func @_attn_proj_residual_kernel(%arg0: i32, %arg1: memref<1x16x384xf32, #tpu.memory_space<vmem>>, %arg2: memref<1x16x128xf32, #tpu.memory_space<vmem>>, %arg3: memref<128x128xf32, #tpu.memory_space<vmem>>, %arg4: memref<1x128xf32, #tpu.memory_space<vmem>>, %arg5: memref<1x16x128xf32, #tpu.memory_space<vmem>>) attributes {dimension_semantics = [#tpu.dimension_semantics<parallel>], iteration_bounds = array<i64: 2>, scalar_prefetch = 0 : i64, scratch_operands = 0 : i64, tpu.core_type = #tpu.core_type<tc>, window_params = [{transform_indices = @transform_0, window_bounds = array<i64: 1, 16, 384>}, {transform_indices = @transform_1, window_bounds = array<i64: 1, 16, 128>}, {pipeline_mode = #tpu.pipeline_mode<synchronous>, transform_indices = @transform_2, window_bounds = array<i64: 128, 128>}, {pipeline_mode = #tpu.pipeline_mode<synchronous>, transform_indices = @transform_3, window_bounds = array<i64: 1, 128>}, {transform_indices = @transform_4, window_bounds = array<i64: 1, 16, 128>}]} {
    %c0 = arith.constant 0 : index
    %c0_0 = arith.constant 0 : index
    %c0_1 = arith.constant 0 : index
    %0 = vector.load %arg2[%c0, %c0_0, %c0_1] : memref<1x16x128xf32, #tpu.memory_space<vmem>>, vector<1x16x128xf32>
    %1 = vector.shape_cast %0 : vector<1x16x128xf32> to vector<16x128xf32>
    %c0_2 = arith.constant 0 : index
    %c0_3 = arith.constant 0 : index
    %2 = vector.load %arg4[%c0_2, %c0_3] : memref<1x128xf32, #tpu.memory_space<vmem>>, vector<1x128xf32>
    %3 = vector.broadcast %2 : vector<1x128xf32> to vector<16x128xf32>
    %4 = arith.addf %1, %3 : vector<16x128xf32>
    %c0_4 = arith.constant 0 : index
    %c0_5 = arith.constant 0 : index
    %c0_6 = arith.constant 0 : index
    %5 = vector.load %arg1[%c0_4, %c0_5, %c0_6] : memref<1x16x384xf32, #tpu.memory_space<vmem>>, vector<1x16x32xf32>
    %6 = vector.shape_cast %5 : vector<1x16x32xf32> to vector<16x32xf32>
    %c0_7 = arith.constant 0 : index
    %c0_8 = arith.constant 0 : index
    %c128 = arith.constant 128 : index
    %7 = vector.load %arg1[%c0_7, %c0_8, %c128] : memref<1x16x384xf32, #tpu.memory_space<vmem>>, vector<1x16x32xf32>
    %8 = vector.shape_cast %7 : vector<1x16x32xf32> to vector<16x32xf32>
    %c0_9 = arith.constant 0 : index
    %c0_10 = arith.constant 0 : index
    %c256 = arith.constant 256 : index
    %9 = vector.load %arg1[%c0_9, %c0_10, %c256] : memref<1x16x384xf32, #tpu.memory_space<vmem>>, vector<1x16x32xf32>
    %10 = vector.shape_cast %9 : vector<1x16x32xf32> to vector<16x32xf32>
    %11 = tpu.transpose %8, [1, 0] : vector<16x32xf32> -> vector<32x16xf32>
    %cst = arith.constant dense<0.000000e+00> : vector<16x16xf32>
    %12 = tpu.matmul %6, %11, %cst {dimension_numbers = #tpu.dot_dimension_numbers<[1], [0], [0], [1], [0, 0, 1, 1], [], []>} : vector<16x32xf32>, vector<32x16xf32>, vector<16x16xf32> -> vector<16x16xf32>
    %cst_11 = arith.constant 0.176776692 : f32
    %13 = vector.broadcast %cst_11 : f32 to vector<16x16xf32>
    %14 = arith.mulf %12, %13 : vector<16x16xf32>
    %cst_12 = arith.constant dense<0xFF800000> : vector<16xf32>
    %15 = vector.multi_reduction <maximumf>, %14, %cst_12 [1] : vector<16x16xf32> to vector<16xf32>
    %16 = vector.shape_cast %15 : vector<16xf32> to vector<16x1xf32>
    %17 = vector.broadcast %16 : vector<16x1xf32> to vector<16x16xf32>
    %18 = arith.subf %14, %17 : vector<16x16xf32>
    %19 = math.exp %18 : vector<16x16xf32>
    %cst_13 = arith.constant dense<0.000000e+00> : vector<16xf32>
    %20 = vector.multi_reduction <add>, %19, %cst_13 [1] : vector<16x16xf32> to vector<16xf32>
    %21 = vector.shape_cast %20 : vector<16xf32> to vector<16x1xf32>
    %cst_14 = arith.constant dense<0.000000e+00> : vector<16x32xf32>
    %22 = tpu.matmul %19, %10, %cst_14 {dimension_numbers = #tpu.dot_dimension_numbers<[1], [0], [0], [1], [0, 0, 1, 1], [], []>} : vector<16x16xf32>, vector<16x32xf32>, vector<16x32xf32> -> vector<16x32xf32>
    %23 = tpu.reciprocal %21 : vector<16x1xf32> -> vector<16x1xf32>
    %24 = vector.broadcast %23 : vector<16x1xf32> to vector<16x32xf32>
    %25 = arith.mulf %22, %24 : vector<16x32xf32>
    %c0_15 = arith.constant 0 : index
    %c0_16 = arith.constant 0 : index
    %26 = vector.load %arg3[%c0_15, %c0_16] : memref<128x128xf32, #tpu.memory_space<vmem>>, vector<32x128xf32>
    %cst_17 = arith.constant dense<0.000000e+00> : vector<16x128xf32>
    %27 = tpu.matmul %25, %26, %cst_17 {dimension_numbers = #tpu.dot_dimension_numbers<[1], [0], [0], [1], [0, 0, 1, 1], [], []>} : vector<16x32xf32>, vector<32x128xf32>, vector<16x128xf32> -> vector<16x128xf32>
    %28 = arith.addf %4, %27 : vector<16x128xf32>
    %c0_18 = arith.constant 0 : index
    %c0_19 = arith.constant 0 : index
    %c32 = arith.constant 32 : index
    %29 = vector.load %arg1[%c0_18, %c0_19, %c32] : memref<1x16x384xf32, #tpu.memory_space<vmem>>, vector<1x16x32xf32>
    %30 = vector.shape_cast %29 : vector<1x16x32xf32> to vector<16x32xf32>
    %c0_20 = arith.constant 0 : index
    %c0_21 = arith.constant 0 : index
    %c160 = arith.constant 160 : index
    %31 = vector.load %arg1[%c0_20, %c0_21, %c160] : memref<1x16x384xf32, #tpu.memory_space<vmem>>, vector<1x16x32xf32>
    %32 = vector.shape_cast %31 : vector<1x16x32xf32> to vector<16x32xf32>
    %c0_22 = arith.constant 0 : index
    %c0_23 = arith.constant 0 : index
    %c288 = arith.constant 288 : index
    %33 = vector.load %arg1[%c0_22, %c0_23, %c288] : memref<1x16x384xf32, #tpu.memory_space<vmem>>, vector<1x16x32xf32>
    %34 = vector.shape_cast %33 : vector<1x16x32xf32> to vector<16x32xf32>
    %35 = tpu.transpose %32, [1, 0] : vector<16x32xf32> -> vector<32x16xf32>
    %cst_24 = arith.constant dense<0.000000e+00> : vector<16x16xf32>
    %36 = tpu.matmul %30, %35, %cst_24 {dimension_numbers = #tpu.dot_dimension_numbers<[1], [0], [0], [1], [0, 0, 1, 1], [], []>} : vector<16x32xf32>, vector<32x16xf32>, vector<16x16xf32> -> vector<16x16xf32>
    %cst_25 = arith.constant 0.176776692 : f32
    %37 = vector.broadcast %cst_25 : f32 to vector<16x16xf32>
    %38 = arith.mulf %36, %37 : vector<16x16xf32>
    %cst_26 = arith.constant dense<0xFF800000> : vector<16xf32>
    %39 = vector.multi_reduction <maximumf>, %38, %cst_26 [1] : vector<16x16xf32> to vector<16xf32>
    %40 = vector.shape_cast %39 : vector<16xf32> to vector<16x1xf32>
    %41 = vector.broadcast %40 : vector<16x1xf32> to vector<16x16xf32>
    %42 = arith.subf %38, %41 : vector<16x16xf32>
    %43 = math.exp %42 : vector<16x16xf32>
    %cst_27 = arith.constant dense<0.000000e+00> : vector<16xf32>
    %44 = vector.multi_reduction <add>, %43, %cst_27 [1] : vector<16x16xf32> to vector<16xf32>
    %45 = vector.shape_cast %44 : vector<16xf32> to vector<16x1xf32>
    %cst_28 = arith.constant dense<0.000000e+00> : vector<16x32xf32>
    %46 = tpu.matmul %43, %34, %cst_28 {dimension_numbers = #tpu.dot_dimension_numbers<[1], [0], [0], [1], [0, 0, 1, 1], [], []>} : vector<16x16xf32>, vector<16x32xf32>, vector<16x32xf32> -> vector<16x32xf32>
    %47 = tpu.reciprocal %45 : vector<16x1xf32> -> vector<16x1xf32>
    %48 = vector.broadcast %47 : vector<16x1xf32> to vector<16x32xf32>
    %49 = arith.mulf %46, %48 : vector<16x32xf32>
    %c32_29 = arith.constant 32 : index
    %c0_30 = arith.constant 0 : index
    %50 = vector.load %arg3[%c32_29, %c0_30] : memref<128x128xf32, #tpu.memory_space<vmem>>, vector<32x128xf32>
    %cst_31 = arith.constant dense<0.000000e+00> : vector<16x128xf32>
    %51 = tpu.matmul %49, %50, %cst_31 {dimension_numbers = #tpu.dot_dimension_numbers<[1], [0], [0], [1], [0, 0, 1, 1], [], []>} : vector<16x32xf32>, vector<32x128xf32>, vector<16x128xf32> -> vector<16x128xf32>
    %52 = arith.addf %28, %51 : vector<16x128xf32>
    %c0_32 = arith.constant 0 : index
    %c0_33 = arith.constant 0 : index
    %c64 = arith.constant 64 : index
    %53 = vector.load %arg1[%c0_32, %c0_33, %c64] : memref<1x16x384xf32, #tpu.memory_space<vmem>>, vector<1x16x32xf32>
    %54 = vector.shape_cast %53 : vector<1x16x32xf32> to vector<16x32xf32>
    %c0_34 = arith.constant 0 : index
    %c0_35 = arith.constant 0 : index
    %c192 = arith.constant 192 : index
    %55 = vector.load %arg1[%c0_34, %c0_35, %c192] : memref<1x16x384xf32, #tpu.memory_space<vmem>>, vector<1x16x32xf32>
    %56 = vector.shape_cast %55 : vector<1x16x32xf32> to vector<16x32xf32>
    %c0_36 = arith.constant 0 : index
    %c0_37 = arith.constant 0 : index
    %c320 = arith.constant 320 : index
    %57 = vector.load %arg1[%c0_36, %c0_37, %c320] : memref<1x16x384xf32, #tpu.memory_space<vmem>>, vector<1x16x32xf32>
    %58 = vector.shape_cast %57 : vector<1x16x32xf32> to vector<16x32xf32>
    %59 = tpu.transpose %56, [1, 0] : vector<16x32xf32> -> vector<32x16xf32>
    %cst_38 = arith.constant dense<0.000000e+00> : vector<16x16xf32>
    %60 = tpu.matmul %54, %59, %cst_38 {dimension_numbers = #tpu.dot_dimension_numbers<[1], [0], [0], [1], [0, 0, 1, 1], [], []>} : vector<16x32xf32>, vector<32x16xf32>, vector<16x16xf32> -> vector<16x16xf32>
    %cst_39 = arith.constant 0.176776692 : f32
    %61 = vector.broadcast %cst_39 : f32 to vector<16x16xf32>
    %62 = arith.mulf %60, %61 : vector<16x16xf32>
    %cst_40 = arith.constant dense<0xFF800000> : vector<16xf32>
    %63 = vector.multi_reduction <maximumf>, %62, %cst_40 [1] : vector<16x16xf32> to vector<16xf32>
    %64 = vector.shape_cast %63 : vector<16xf32> to vector<16x1xf32>
    %65 = vector.broadcast %64 : vector<16x1xf32> to vector<16x16xf32>
    %66 = arith.subf %62, %65 : vector<16x16xf32>
    %67 = math.exp %66 : vector<16x16xf32>
    %cst_41 = arith.constant dense<0.000000e+00> : vector<16xf32>
    %68 = vector.multi_reduction <add>, %67, %cst_41 [1] : vector<16x16xf32> to vector<16xf32>
    %69 = vector.shape_cast %68 : vector<16xf32> to vector<16x1xf32>
    %cst_42 = arith.constant dense<0.000000e+00> : vector<16x32xf32>
    %70 = tpu.matmul %67, %58, %cst_42 {dimension_numbers = #tpu.dot_dimension_numbers<[1], [0], [0], [1], [0, 0, 1, 1], [], []>} : vector<16x16xf32>, vector<16x32xf32>, vector<16x32xf32> -> vector<16x32xf32>
    %71 = tpu.reciprocal %69 : vector<16x1xf32> -> vector<16x1xf32>
    %72 = vector.broadcast %71 : vector<16x1xf32> to vector<16x32xf32>
    %73 = arith.mulf %70, %72 : vector<16x32xf32>
    %c64_43 = arith.constant 64 : index
    %c0_44 = arith.constant 0 : index
    %74 = vector.load %arg3[%c64_43, %c0_44] : memref<128x128xf32, #tpu.memory_space<vmem>>, vector<32x128xf32>
    %cst_45 = arith.constant dense<0.000000e+00> : vector<16x128xf32>
    %75 = tpu.matmul %73, %74, %cst_45 {dimension_numbers = #tpu.dot_dimension_numbers<[1], [0], [0], [1], [0, 0, 1, 1], [], []>} : vector<16x32xf32>, vector<32x128xf32>, vector<16x128xf32> -> vector<16x128xf32>
    %76 = arith.addf %52, %75 : vector<16x128xf32>
    %c0_46 = arith.constant 0 : index
    %c0_47 = arith.constant 0 : index
    %c96 = arith.constant 96 : index
    %77 = vector.load %arg1[%c0_46, %c0_47, %c96] : memref<1x16x384xf32, #tpu.memory_space<vmem>>, vector<1x16x32xf32>
    %78 = vector.shape_cast %77 : vector<1x16x32xf32> to vector<16x32xf32>
    %c0_48 = arith.constant 0 : index
    %c0_49 = arith.constant 0 : index
    %c224 = arith.constant 224 : index
    %79 = vector.load %arg1[%c0_48, %c0_49, %c224] : memref<1x16x384xf32, #tpu.memory_space<vmem>>, vector<1x16x32xf32>
    %80 = vector.shape_cast %79 : vector<1x16x32xf32> to vector<16x32xf32>
    %c0_50 = arith.constant 0 : index
    %c0_51 = arith.constant 0 : index
    %c352 = arith.constant 352 : index
    %81 = vector.load %arg1[%c0_50, %c0_51, %c352] : memref<1x16x384xf32, #tpu.memory_space<vmem>>, vector<1x16x32xf32>
    %82 = vector.shape_cast %81 : vector<1x16x32xf32> to vector<16x32xf32>
    %83 = tpu.transpose %80, [1, 0] : vector<16x32xf32> -> vector<32x16xf32>
    %cst_52 = arith.constant dense<0.000000e+00> : vector<16x16xf32>
    %84 = tpu.matmul %78, %83, %cst_52 {dimension_numbers = #tpu.dot_dimension_numbers<[1], [0], [0], [1], [0, 0, 1, 1], [], []>} : vector<16x32xf32>, vector<32x16xf32>, vector<16x16xf32> -> vector<16x16xf32>
    %cst_53 = arith.constant 0.176776692 : f32
    %85 = vector.broadcast %cst_53 : f32 to vector<16x16xf32>
    %86 = arith.mulf %84, %85 : vector<16x16xf32>
    %cst_54 = arith.constant dense<0xFF800000> : vector<16xf32>
    %87 = vector.multi_reduction <maximumf>, %86, %cst_54 [1] : vector<16x16xf32> to vector<16xf32>
    %88 = vector.shape_cast %87 : vector<16xf32> to vector<16x1xf32>
    %89 = vector.broadcast %88 : vector<16x1xf32> to vector<16x16xf32>
    %90 = arith.subf %86, %89 : vector<16x16xf32>
    %91 = math.exp %90 : vector<16x16xf32>
    %cst_55 = arith.constant dense<0.000000e+00> : vector<16xf32>
    %92 = vector.multi_reduction <add>, %91, %cst_55 [1] : vector<16x16xf32> to vector<16xf32>
    %93 = vector.shape_cast %92 : vector<16xf32> to vector<16x1xf32>
    %cst_56 = arith.constant dense<0.000000e+00> : vector<16x32xf32>
    %94 = tpu.matmul %91, %82, %cst_56 {dimension_numbers = #tpu.dot_dimension_numbers<[1], [0], [0], [1], [0, 0, 1, 1], [], []>} : vector<16x16xf32>, vector<16x32xf32>, vector<16x32xf32> -> vector<16x32xf32>
    %95 = tpu.reciprocal %93 : vector<16x1xf32> -> vector<16x1xf32>
    %96 = vector.broadcast %95 : vector<16x1xf32> to vector<16x32xf32>
    %97 = arith.mulf %94, %96 : vector<16x32xf32>
    %c96_57 = arith.constant 96 : index
    %c0_58 = arith.constant 0 : index
    %98 = vector.load %arg3[%c96_57, %c0_58] : memref<128x128xf32, #tpu.memory_space<vmem>>, vector<32x128xf32>
    %cst_59 = arith.constant dense<0.000000e+00> : vector<16x128xf32>
    %99 = tpu.matmul %97, %98, %cst_59 {dimension_numbers = #tpu.dot_dimension_numbers<[1], [0], [0], [1], [0, 0, 1, 1], [], []>} : vector<16x32xf32>, vector<32x128xf32>, vector<16x128xf32> -> vector<16x128xf32>
    %100 = arith.addf %76, %99 : vector<16x128xf32>
    %c0_60 = arith.constant 0 : index
    %c0_61 = arith.constant 0 : index
    %c0_62 = arith.constant 0 : index
    %101 = vector.load %arg5[%c0_60, %c0_61, %c0_62] : memref<1x16x128xf32, #tpu.memory_space<vmem>>, vector<1x16x128xf32>
    %102 = vector.shape_cast %101 : vector<1x16x128xf32> to vector<16x128xf32>
    %103 = vector.shape_cast %100 : vector<16x128xf32> to vector<1x16x128xf32>
    tpu.vector_store %arg5[%c0_60, %c0_61, %c0_62], %103 {strides = array<i32>} : memref<1x16x128xf32, #tpu.memory_space<vmem>>, vector<1x16x128xf32>,
    return
  }
  func.func @transform_0(%arg0: i32) -> (i32, i32, i32) {
    %c0_i32 = arith.constant 0 : i32
    %c0_i32_0 = arith.constant 0 : i32
    %c0_i32_1 = arith.constant 0 : i32
    return %arg0, %c0_i32, %c0_i32_0 : i32, i32, i32
  }
  func.func @transform_1(%arg0: i32) -> (i32, i32, i32) {
    %c0_i32 = arith.constant 0 : i32
    %c0_i32_0 = arith.constant 0 : i32
    %c0_i32_1 = arith.constant 0 : i32
    return %arg0, %c0_i32, %c0_i32_0 : i32, i32, i32
  }
  func.func @transform_2(%arg0: i32) -> (i32, i32) {
    %c0_i32 = arith.constant 0 : i32
    %c0_i32_0 = arith.constant 0 : i32
    %c0_i32_1 = arith.constant 0 : i32
    return %c0_i32, %c0_i32_0 : i32, i32
  }
  func.func @transform_3(%arg0: i32) -> (i32, i32) {
    %c0_i32 = arith.constant 0 : i32
    %c0_i32_0 = arith.constant 0 : i32
    %c0_i32_1 = arith.constant 0 : i32
    return %c0_i32, %c0_i32_0 : i32, i32
  }
  func.func @transform_4(%arg0: i32) -> (i32, i32, i32) {
    %c0_i32 = arith.constant 0 : i32
    %c0_i32_0 = arith.constant 0 : i32
    %c0_i32_1 = arith.constant 0 : i32
    return %arg0, %c0_i32, %c0_i32_0 : i32, i32, i32
  }
}

module attributes {stable_mosaic.version = 11 : i64} {
  func.func @_ln_linear_kernel(%arg0: i32, %arg1: memref<32x128xf32, #tpu.memory_space<vmem>>, %arg2: memref<1x128xf32, #tpu.memory_space<vmem>>, %arg3: memref<1x128xf32, #tpu.memory_space<vmem>>, %arg4: memref<128x384xf32, #tpu.memory_space<vmem>>, %arg5: memref<1x384xf32, #tpu.memory_space<vmem>>, %arg6: memref<32x384xf32, #tpu.memory_space<vmem>>) attributes {dimension_semantics = [#tpu.dimension_semantics<parallel>], iteration_bounds = array<i64: 1>, scalar_prefetch = 0 : i64, scratch_operands = 0 : i64, tpu.core_type = #tpu.core_type<tc>, window_params = [{transform_indices = @transform_0, window_bounds = array<i64: 32, 128>}, {pipeline_mode = #tpu.pipeline_mode<synchronous>, transform_indices = @transform_1, window_bounds = array<i64: 1, 128>}, {pipeline_mode = #tpu.pipeline_mode<synchronous>, transform_indices = @transform_2, window_bounds = array<i64: 1, 128>}, {pipeline_mode = #tpu.pipeline_mode<synchronous>, transform_indices = @transform_3, window_bounds = array<i64: 128, 384>}, {pipeline_mode = #tpu.pipeline_mode<synchronous>, transform_indices = @transform_4, window_bounds = array<i64: 1, 384>}, {transform_indices = @transform_5, window_bounds = array<i64: 32, 384>}]} {
    %c0 = arith.constant 0 : index
    %c0_0 = arith.constant 0 : index
    %0 = vector.load %arg1[%c0, %c0_0] : memref<32x128xf32, #tpu.memory_space<vmem>>, vector<32x128xf32>
    %cst = arith.constant dense<0.000000e+00> : vector<32xf32>
    %1 = vector.multi_reduction <add>, %0, %cst [1] : vector<32x128xf32> to vector<32xf32>
    %2 = vector.shape_cast %1 : vector<32xf32> to vector<32x1xf32>
    %cst_1 = arith.constant 1.280000e+02 : f32
    %3 = vector.broadcast %cst_1 : f32 to vector<32x1xf32>
    %4 = arith.divf %2, %3 : vector<32x1xf32>
    %5 = vector.broadcast %4 : vector<32x1xf32> to vector<32x128xf32>
    %6 = arith.subf %0, %5 : vector<32x128xf32>
    %7 = arith.mulf %6, %6 : vector<32x128xf32>
    %cst_2 = arith.constant dense<0.000000e+00> : vector<32xf32>
    %8 = vector.multi_reduction <add>, %7, %cst_2 [1] : vector<32x128xf32> to vector<32xf32>
    %9 = vector.shape_cast %8 : vector<32xf32> to vector<32x1xf32>
    %cst_3 = arith.constant 1.280000e+02 : f32
    %10 = vector.broadcast %cst_3 : f32 to vector<32x1xf32>
    %11 = arith.divf %9, %10 : vector<32x1xf32>
    %cst_4 = arith.constant 9.99999974E-6 : f32
    %12 = vector.broadcast %cst_4 : f32 to vector<32x1xf32>
    %13 = arith.addf %11, %12 : vector<32x1xf32>
    %14 = math.rsqrt %13 : vector<32x1xf32>
    %15 = vector.broadcast %14 : vector<32x1xf32> to vector<32x128xf32>
    %16 = arith.mulf %6, %15 : vector<32x128xf32>
    %c0_5 = arith.constant 0 : index
    %c0_6 = arith.constant 0 : index
    %17 = vector.load %arg2[%c0_5, %c0_6] : memref<1x128xf32, #tpu.memory_space<vmem>>, vector<1x128xf32>
    %18 = vector.broadcast %17 : vector<1x128xf32> to vector<32x128xf32>
    %19 = arith.mulf %16, %18 : vector<32x128xf32>
    %c0_7 = arith.constant 0 : index
    %c0_8 = arith.constant 0 : index
    %20 = vector.load %arg3[%c0_7, %c0_8] : memref<1x128xf32, #tpu.memory_space<vmem>>, vector<1x128xf32>
    %21 = vector.broadcast %20 : vector<1x128xf32> to vector<32x128xf32>
    %22 = arith.addf %19, %21 : vector<32x128xf32>
    %c0_9 = arith.constant 0 : index
    %c0_10 = arith.constant 0 : index
    %23 = vector.load %arg4[%c0_9, %c0_10] : memref<128x384xf32, #tpu.memory_space<vmem>>, vector<128x384xf32>
    %cst_11 = arith.constant dense<0.000000e+00> : vector<32x384xf32>
    %24 = tpu.matmul %22, %23, %cst_11 {dimension_numbers = #tpu.dot_dimension_numbers<[1], [0], [0], [1], [0, 0, 1, 1], [], []>} : vector<32x128xf32>, vector<128x384xf32>, vector<32x384xf32> -> vector<32x384xf32>
    %c0_12 = arith.constant 0 : index
    %c0_13 = arith.constant 0 : index
    %25 = vector.load %arg5[%c0_12, %c0_13] : memref<1x384xf32, #tpu.memory_space<vmem>>, vector<1x384xf32>
    %26 = vector.broadcast %25 : vector<1x384xf32> to vector<32x384xf32>
    %27 = arith.addf %24, %26 : vector<32x384xf32>
    %c0_14 = arith.constant 0 : index
    %c0_15 = arith.constant 0 : index
    %28 = vector.load %arg6[%c0_14, %c0_15] : memref<32x384xf32, #tpu.memory_space<vmem>>, vector<32x384xf32>
    tpu.vector_store %arg6[%c0_14, %c0_15], %27 {strides = array<i32>} : memref<32x384xf32, #tpu.memory_space<vmem>>, vector<32x384xf32>,
    return
  }
  func.func @transform_0(%arg0: i32) -> (i32, i32) {
    %c0_i32 = arith.constant 0 : i32
    %c0_i32_0 = arith.constant 0 : i32
    return %arg0, %c0_i32 : i32, i32
  }
  func.func @transform_1(%arg0: i32) -> (i32, i32) {
    %c0_i32 = arith.constant 0 : i32
    %c0_i32_0 = arith.constant 0 : i32
    %c0_i32_1 = arith.constant 0 : i32
    return %c0_i32, %c0_i32_0 : i32, i32
  }
  func.func @transform_2(%arg0: i32) -> (i32, i32) {
    %c0_i32 = arith.constant 0 : i32
    %c0_i32_0 = arith.constant 0 : i32
    %c0_i32_1 = arith.constant 0 : i32
    return %c0_i32, %c0_i32_0 : i32, i32
  }
  func.func @transform_3(%arg0: i32) -> (i32, i32) {
    %c0_i32 = arith.constant 0 : i32
    %c0_i32_0 = arith.constant 0 : i32
    %c0_i32_1 = arith.constant 0 : i32
    return %c0_i32, %c0_i32_0 : i32, i32
  }
  func.func @transform_4(%arg0: i32) -> (i32, i32) {
    %c0_i32 = arith.constant 0 : i32
    %c0_i32_0 = arith.constant 0 : i32
    %c0_i32_1 = arith.constant 0 : i32
    return %c0_i32, %c0_i32_0 : i32, i32
  }
  func.func @transform_5(%arg0: i32) -> (i32, i32) {
    %c0_i32 = arith.constant 0 : i32
    %c0_i32_0 = arith.constant 0 : i32
    return %arg0, %c0_i32 : i32, i32
  }
}

module attributes {stable_mosaic.version = 11 : i64} {
  func.func @_ln_mlp_residual_kernel(%arg0: i32, %arg1: i32, %arg2: memref<32x128xf32, #tpu.memory_space<vmem>>, %arg3: memref<1x128xf32, #tpu.memory_space<vmem>>, %arg4: memref<1x128xf32, #tpu.memory_space<vmem>>, %arg5: memref<128x512xf32, #tpu.memory_space<vmem>>, %arg6: memref<1x512xf32, #tpu.memory_space<vmem>>, %arg7: memref<512x128xf32, #tpu.memory_space<vmem>>, %arg8: memref<1x128xf32, #tpu.memory_space<vmem>>, %arg9: memref<32x128xf32, #tpu.memory_space<vmem>>, %arg10: memref<32x128xf32, #tpu.memory_space<vmem>>, %arg11: memref<32x128xf32, #tpu.memory_space<vmem>>) attributes {dimension_semantics = [#tpu.dimension_semantics<parallel>, #tpu.dimension_semantics<arbitrary>], iteration_bounds = array<i64: 1, 1>, scalar_prefetch = 0 : i64, scratch_operands = 2 : i64, tpu.core_type = #tpu.core_type<tc>, window_params = [{transform_indices = @transform_0, window_bounds = array<i64: 32, 128>}, {pipeline_mode = #tpu.pipeline_mode<synchronous>, transform_indices = @transform_1, window_bounds = array<i64: 1, 128>}, {pipeline_mode = #tpu.pipeline_mode<synchronous>, transform_indices = @transform_2, window_bounds = array<i64: 1, 128>}, {transform_indices = @transform_3, window_bounds = array<i64: 128, 512>}, {transform_indices = @transform_4, window_bounds = array<i64: 1, 512>}, {transform_indices = @transform_5, window_bounds = array<i64: 512, 128>}, {pipeline_mode = #tpu.pipeline_mode<synchronous>, transform_indices = @transform_6, window_bounds = array<i64: 1, 128>}, {transform_indices = @transform_7, window_bounds = array<i64: 32, 128>}]} {
    %c0_i32 = arith.constant 0 : i32
    %0 = arith.cmpi eq, %arg1, %c0_i32 : i32
    %1 = arith.extui %0 : i1 to i32
    %c0_i32_0 = arith.constant 0 : i32
    %2 = arith.cmpi ne, %1, %c0_i32_0 : i32
    scf.if %2 {
      %c0_18 = arith.constant 0 : index
      %c0_19 = arith.constant 0 : index
      %25 = vector.load %arg2[%c0_18, %c0_19] : memref<32x128xf32, #tpu.memory_space<vmem>>, vector<32x128xf32>
      %cst_20 = arith.constant dense<0.000000e+00> : vector<32xf32>
      %26 = vector.multi_reduction <add>, %25, %cst_20 [1] : vector<32x128xf32> to vector<32xf32>
      %27 = vector.shape_cast %26 : vector<32xf32> to vector<32x1xf32>
      %cst_21 = arith.constant 1.280000e+02 : f32
      %28 = vector.broadcast %cst_21 : f32 to vector<32x1xf32>
      %29 = arith.divf %27, %28 : vector<32x1xf32>
      %30 = vector.broadcast %29 : vector<32x1xf32> to vector<32x128xf32>
      %31 = arith.subf %25, %30 : vector<32x128xf32>
      %32 = arith.mulf %31, %31 : vector<32x128xf32>
      %cst_22 = arith.constant dense<0.000000e+00> : vector<32xf32>
      %33 = vector.multi_reduction <add>, %32, %cst_22 [1] : vector<32x128xf32> to vector<32xf32>
      %34 = vector.shape_cast %33 : vector<32xf32> to vector<32x1xf32>
      %cst_23 = arith.constant 1.280000e+02 : f32
      %35 = vector.broadcast %cst_23 : f32 to vector<32x1xf32>
      %36 = arith.divf %34, %35 : vector<32x1xf32>
      %cst_24 = arith.constant 9.99999974E-6 : f32
      %37 = vector.broadcast %cst_24 : f32 to vector<32x1xf32>
      %38 = arith.addf %36, %37 : vector<32x1xf32>
      %39 = math.rsqrt %38 : vector<32x1xf32>
      %40 = vector.broadcast %39 : vector<32x1xf32> to vector<32x128xf32>
      %41 = arith.mulf %31, %40 : vector<32x128xf32>
      %c0_25 = arith.constant 0 : index
      %c0_26 = arith.constant 0 : index
      %42 = vector.load %arg3[%c0_25, %c0_26] : memref<1x128xf32, #tpu.memory_space<vmem>>, vector<1x128xf32>
      %43 = vector.broadcast %42 : vector<1x128xf32> to vector<32x128xf32>
      %44 = arith.mulf %41, %43 : vector<32x128xf32>
      %c0_27 = arith.constant 0 : index
      %c0_28 = arith.constant 0 : index
      %45 = vector.load %arg4[%c0_27, %c0_28] : memref<1x128xf32, #tpu.memory_space<vmem>>, vector<1x128xf32>
      %46 = vector.broadcast %45 : vector<1x128xf32> to vector<32x128xf32>
      %47 = arith.addf %44, %46 : vector<32x128xf32>
      %c0_29 = arith.constant 0 : index
      %c0_30 = arith.constant 0 : index
      %48 = vector.load %arg10[%c0_29, %c0_30] : memref<32x128xf32, #tpu.memory_space<vmem>>, vector<32x128xf32>
      tpu.vector_store %arg10[%c0_29, %c0_30], %47 {strides = array<i32>} : memref<32x128xf32, #tpu.memory_space<vmem>>, vector<32x128xf32>,
      %c0_31 = arith.constant 0 : index
      %c0_32 = arith.constant 0 : index
      %49 = vector.load %arg8[%c0_31, %c0_32] : memref<1x128xf32, #tpu.memory_space<vmem>>, vector<1x128xf32>
      %50 = vector.broadcast %49 : vector<1x128xf32> to vector<32x128xf32>
      %51 = arith.addf %25, %50 : vector<32x128xf32>
      %c0_33 = arith.constant 0 : index
      %c0_34 = arith.constant 0 : index
      %52 = vector.load %arg11[%c0_33, %c0_34] : memref<32x128xf32, #tpu.memory_space<vmem>>, vector<32x128xf32>
      tpu.vector_store %arg11[%c0_33, %c0_34], %51 {strides = array<i32>} : memref<32x128xf32, #tpu.memory_space<vmem>>, vector<32x128xf32>,
    } else {
    }
    %c0 = arith.constant 0 : index
    %c0_1 = arith.constant 0 : index
    %3 = vector.load %arg10[%c0, %c0_1] : memref<32x128xf32, #tpu.memory_space<vmem>>, vector<32x128xf32>
    %c0_2 = arith.constant 0 : index
    %c0_3 = arith.constant 0 : index
    %4 = vector.load %arg5[%c0_2, %c0_3] : memref<128x512xf32, #tpu.memory_space<vmem>>, vector<128x512xf32>
    %cst = arith.constant dense<0.000000e+00> : vector<32x512xf32>
    %5 = tpu.matmul %3, %4, %cst {dimension_numbers = #tpu.dot_dimension_numbers<[1], [0], [0], [1], [0, 0, 1, 1], [], []>} : vector<32x128xf32>, vector<128x512xf32>, vector<32x512xf32> -> vector<32x512xf32>
    %c0_4 = arith.constant 0 : index
    %c0_5 = arith.constant 0 : index
    %6 = vector.load %arg6[%c0_4, %c0_5] : memref<1x512xf32, #tpu.memory_space<vmem>>, vector<1x512xf32>
    %7 = vector.broadcast %6 : vector<1x512xf32> to vector<32x512xf32>
    %8 = arith.addf %5, %7 : vector<32x512xf32>
    %cst_6 = arith.constant 5.000000e-01 : f32
    %9 = vector.broadcast %cst_6 : f32 to vector<32x512xf32>
    %10 = arith.mulf %9, %8 : vector<32x512xf32>
    %cst_7 = arith.constant 0.707106769 : f32
    %11 = vector.broadcast %cst_7 : f32 to vector<32x512xf32>
    %12 = arith.mulf %8, %11 : vector<32x512xf32>
    %13 = math.erf %12 : vector<32x512xf32>
    %cst_8 = arith.constant 1.000000e+00 : f32
    %14 = vector.broadcast %cst_8 : f32 to vector<32x512xf32>
    %15 = arith.addf %14, %13 : vector<32x512xf32>
    %16 = arith.mulf %10, %15 : vector<32x512xf32>
    %c0_9 = arith.constant 0 : index
    %c0_10 = arith.constant 0 : index
    %17 = vector.load %arg11[%c0_9, %c0_10] : memref<32x128xf32, #tpu.memory_space<vmem>>, vector<32x128xf32>
    %c0_11 = arith.constant 0 : index
    %c0_12 = arith.constant 0 : index
    %18 = vector.load %arg7[%c0_11, %c0_12] : memref<512x128xf32, #tpu.memory_space<vmem>>, vector<512x128xf32>
    %cst_13 = arith.constant dense<0.000000e+00> : vector<32x128xf32>
    %19 = tpu.matmul %16, %18, %cst_13 {dimension_numbers = #tpu.dot_dimension_numbers<[1], [0], [0], [1], [0, 0, 1, 1], [], []>} : vector<32x512xf32>, vector<512x128xf32>, vector<32x128xf32> -> vector<32x128xf32>
    %20 = arith.addf %17, %19 : vector<32x128xf32>
    %c0_14 = arith.constant 0 : index
    %c0_15 = arith.constant 0 : index
    %21 = vector.load %arg11[%c0_14, %c0_15] : memref<32x128xf32, #tpu.memory_space<vmem>>, vector<32x128xf32>
    tpu.vector_store %arg11[%c0_14, %c0_15], %20 {strides = array<i32>} : memref<32x128xf32, #tpu.memory_space<vmem>>, vector<32x128xf32>,
    %c0_i32_16 = arith.constant 0 : i32
    %22 = arith.cmpi eq, %arg1, %c0_i32_16 : i32
    %23 = arith.extui %22 : i1 to i32
    %c0_i32_17 = arith.constant 0 : i32
    %24 = arith.cmpi ne, %23, %c0_i32_17 : i32
    scf.if %24 {
      %c0_18 = arith.constant 0 : index
      %c0_19 = arith.constant 0 : index
      %25 = vector.load %arg11[%c0_18, %c0_19] : memref<32x128xf32, #tpu.memory_space<vmem>>, vector<32x128xf32>
      %c0_20 = arith.constant 0 : index
      %c0_21 = arith.constant 0 : index
      %26 = vector.load %arg9[%c0_20, %c0_21] : memref<32x128xf32, #tpu.memory_space<vmem>>, vector<32x128xf32>
      tpu.vector_store %arg9[%c0_20, %c0_21], %25 {strides = array<i32>} : memref<32x128xf32, #tpu.memory_space<vmem>>, vector<32x128xf32>,
    } else {
    }
    return
  }
  func.func @transform_0(%arg0: i32, %arg1: i32) -> (i32, i32) {
    %c0_i32 = arith.constant 0 : i32
    %c0_i32_0 = arith.constant 0 : i32
    return %arg0, %c0_i32 : i32, i32
  }
  func.func @transform_1(%arg0: i32, %arg1: i32) -> (i32, i32) {
    %c0_i32 = arith.constant 0 : i32
    %c0_i32_0 = arith.constant 0 : i32
    %c0_i32_1 = arith.constant 0 : i32
    return %c0_i32, %c0_i32_0 : i32, i32
  }
  func.func @transform_2(%arg0: i32, %arg1: i32) -> (i32, i32) {
    %c0_i32 = arith.constant 0 : i32
    %c0_i32_0 = arith.constant 0 : i32
    %c0_i32_1 = arith.constant 0 : i32
    return %c0_i32, %c0_i32_0 : i32, i32
  }
  func.func @transform_3(%arg0: i32, %arg1: i32) -> (i32, i32) {
    %c0_i32 = arith.constant 0 : i32
    %c0_i32_0 = arith.constant 0 : i32
    return %c0_i32, %arg1 : i32, i32
  }
  func.func @transform_4(%arg0: i32, %arg1: i32) -> (i32, i32) {
    %c0_i32 = arith.constant 0 : i32
    %c0_i32_0 = arith.constant 0 : i32
    return %c0_i32, %arg1 : i32, i32
  }
  func.func @transform_5(%arg0: i32, %arg1: i32) -> (i32, i32) {
    %c0_i32 = arith.constant 0 : i32
    %c0_i32_0 = arith.constant 0 : i32
    return %arg1, %c0_i32 : i32, i32
  }
  func.func @transform_6(%arg0: i32, %arg1: i32) -> (i32, i32) {
    %c0_i32 = arith.constant 0 : i32
    %c0_i32_0 = arith.constant 0 : i32
    %c0_i32_1 = arith.constant 0 : i32
    return %c0_i32, %c0_i32_0 : i32, i32
  }
  func.func @transform_7(%arg0: i32, %arg1: i32) -> (i32, i32) {
    %c0_i32 = arith.constant 0 : i32
    %c0_i32_0 = arith.constant 0 : i32
    return %arg0, %c0_i32 : i32, i32
  }
}

module attributes {stable_mosaic.version = 11 : i64} {
  func.func @_ln_linear_kernel(%arg0: i32, %arg1: memref<32x128xf32, #tpu.memory_space<vmem>>, %arg2: memref<1x128xf32, #tpu.memory_space<vmem>>, %arg3: memref<1x128xf32, #tpu.memory_space<vmem>>, %arg4: memref<128x384xf32, #tpu.memory_space<vmem>>, %arg5: memref<1x384xf32, #tpu.memory_space<vmem>>, %arg6: memref<32x384xf32, #tpu.memory_space<vmem>>) attributes {dimension_semantics = [#tpu.dimension_semantics<parallel>], iteration_bounds = array<i64: 1>, scalar_prefetch = 0 : i64, scratch_operands = 0 : i64, tpu.core_type = #tpu.core_type<tc>, window_params = [{transform_indices = @transform_0, window_bounds = array<i64: 32, 128>}, {pipeline_mode = #tpu.pipeline_mode<synchronous>, transform_indices = @transform_1, window_bounds = array<i64: 1, 128>}, {pipeline_mode = #tpu.pipeline_mode<synchronous>, transform_indices = @transform_2, window_bounds = array<i64: 1, 128>}, {pipeline_mode = #tpu.pipeline_mode<synchronous>, transform_indices = @transform_3, window_bounds = array<i64: 128, 384>}, {pipeline_mode = #tpu.pipeline_mode<synchronous>, transform_indices = @transform_4, window_bounds = array<i64: 1, 384>}, {transform_indices = @transform_5, window_bounds = array<i64: 32, 384>}]} {
    %c0 = arith.constant 0 : index
    %c0_0 = arith.constant 0 : index
    %0 = vector.load %arg1[%c0, %c0_0] : memref<32x128xf32, #tpu.memory_space<vmem>>, vector<32x128xf32>
    %cst = arith.constant dense<0.000000e+00> : vector<32xf32>
    %1 = vector.multi_reduction <add>, %0, %cst [1] : vector<32x128xf32> to vector<32xf32>
    %2 = vector.shape_cast %1 : vector<32xf32> to vector<32x1xf32>
    %cst_1 = arith.constant 1.280000e+02 : f32
    %3 = vector.broadcast %cst_1 : f32 to vector<32x1xf32>
    %4 = arith.divf %2, %3 : vector<32x1xf32>
    %5 = vector.broadcast %4 : vector<32x1xf32> to vector<32x128xf32>
    %6 = arith.subf %0, %5 : vector<32x128xf32>
    %7 = arith.mulf %6, %6 : vector<32x128xf32>
    %cst_2 = arith.constant dense<0.000000e+00> : vector<32xf32>
    %8 = vector.multi_reduction <add>, %7, %cst_2 [1] : vector<32x128xf32> to vector<32xf32>
    %9 = vector.shape_cast %8 : vector<32xf32> to vector<32x1xf32>
    %cst_3 = arith.constant 1.280000e+02 : f32
    %10 = vector.broadcast %cst_3 : f32 to vector<32x1xf32>
    %11 = arith.divf %9, %10 : vector<32x1xf32>
    %cst_4 = arith.constant 9.99999974E-6 : f32
    %12 = vector.broadcast %cst_4 : f32 to vector<32x1xf32>
    %13 = arith.addf %11, %12 : vector<32x1xf32>
    %14 = math.rsqrt %13 : vector<32x1xf32>
    %15 = vector.broadcast %14 : vector<32x1xf32> to vector<32x128xf32>
    %16 = arith.mulf %6, %15 : vector<32x128xf32>
    %c0_5 = arith.constant 0 : index
    %c0_6 = arith.constant 0 : index
    %17 = vector.load %arg2[%c0_5, %c0_6] : memref<1x128xf32, #tpu.memory_space<vmem>>, vector<1x128xf32>
    %18 = vector.broadcast %17 : vector<1x128xf32> to vector<32x128xf32>
    %19 = arith.mulf %16, %18 : vector<32x128xf32>
    %c0_7 = arith.constant 0 : index
    %c0_8 = arith.constant 0 : index
    %20 = vector.load %arg3[%c0_7, %c0_8] : memref<1x128xf32, #tpu.memory_space<vmem>>, vector<1x128xf32>
    %21 = vector.broadcast %20 : vector<1x128xf32> to vector<32x128xf32>
    %22 = arith.addf %19, %21 : vector<32x128xf32>
    %c0_9 = arith.constant 0 : index
    %c0_10 = arith.constant 0 : index
    %23 = vector.load %arg4[%c0_9, %c0_10] : memref<128x384xf32, #tpu.memory_space<vmem>>, vector<128x384xf32>
    %cst_11 = arith.constant dense<0.000000e+00> : vector<32x384xf32>
    %24 = tpu.matmul %22, %23, %cst_11 {dimension_numbers = #tpu.dot_dimension_numbers<[1], [0], [0], [1], [0, 0, 1, 1], [], []>} : vector<32x128xf32>, vector<128x384xf32>, vector<32x384xf32> -> vector<32x384xf32>
    %c0_12 = arith.constant 0 : index
    %c0_13 = arith.constant 0 : index
    %25 = vector.load %arg5[%c0_12, %c0_13] : memref<1x384xf32, #tpu.memory_space<vmem>>, vector<1x384xf32>
    %26 = vector.broadcast %25 : vector<1x384xf32> to vector<32x384xf32>
    %27 = arith.addf %24, %26 : vector<32x384xf32>
    %c0_14 = arith.constant 0 : index
    %c0_15 = arith.constant 0 : index
    %28 = vector.load %arg6[%c0_14, %c0_15] : memref<32x384xf32, #tpu.memory_space<vmem>>, vector<32x384xf32>
    tpu.vector_store %arg6[%c0_14, %c0_15], %27 {strides = array<i32>} : memref<32x384xf32, #tpu.memory_space<vmem>>, vector<32x384xf32>,
    return
  }
  func.func @transform_0(%arg0: i32) -> (i32, i32) {
    %c0_i32 = arith.constant 0 : i32
    %c0_i32_0 = arith.constant 0 : i32
    return %arg0, %c0_i32 : i32, i32
  }
  func.func @transform_1(%arg0: i32) -> (i32, i32) {
    %c0_i32 = arith.constant 0 : i32
    %c0_i32_0 = arith.constant 0 : i32
    %c0_i32_1 = arith.constant 0 : i32
    return %c0_i32, %c0_i32_0 : i32, i32
  }
  func.func @transform_2(%arg0: i32) -> (i32, i32) {
    %c0_i32 = arith.constant 0 : i32
    %c0_i32_0 = arith.constant 0 : i32
    %c0_i32_1 = arith.constant 0 : i32
    return %c0_i32, %c0_i32_0 : i32, i32
  }
  func.func @transform_3(%arg0: i32) -> (i32, i32) {
    %c0_i32 = arith.constant 0 : i32
    %c0_i32_0 = arith.constant 0 : i32
    %c0_i32_1 = arith.constant 0 : i32
    return %c0_i32, %c0_i32_0 : i32, i32
  }
  func.func @transform_4(%arg0: i32) -> (i32, i32) {
    %c0_i32 = arith.constant 0 : i32
    %c0_i32_0 = arith.constant 0 : i32
    %c0_i32_1 = arith.constant 0 : i32
    return %c0_i32, %c0_i32_0 : i32, i32
  }
  func.func @transform_5(%arg0: i32) -> (i32, i32) {
    %c0_i32 = arith.constant 0 : i32
    %c0_i32_0 = arith.constant 0 : i32
    return %arg0, %c0_i32 : i32, i32
  }
}

module attributes {stable_mosaic.version = 11 : i64} {
  func.func @_ln_mlp_residual_kernel(%arg0: i32, %arg1: i32, %arg2: memref<32x128xf32, #tpu.memory_space<vmem>>, %arg3: memref<1x128xf32, #tpu.memory_space<vmem>>, %arg4: memref<1x128xf32, #tpu.memory_space<vmem>>, %arg5: memref<128x512xf32, #tpu.memory_space<vmem>>, %arg6: memref<1x512xf32, #tpu.memory_space<vmem>>, %arg7: memref<512x128xf32, #tpu.memory_space<vmem>>, %arg8: memref<1x128xf32, #tpu.memory_space<vmem>>, %arg9: memref<32x128xf32, #tpu.memory_space<vmem>>, %arg10: memref<32x128xf32, #tpu.memory_space<vmem>>, %arg11: memref<32x128xf32, #tpu.memory_space<vmem>>) attributes {dimension_semantics = [#tpu.dimension_semantics<parallel>, #tpu.dimension_semantics<arbitrary>], iteration_bounds = array<i64: 1, 1>, scalar_prefetch = 0 : i64, scratch_operands = 2 : i64, tpu.core_type = #tpu.core_type<tc>, window_params = [{transform_indices = @transform_0, window_bounds = array<i64: 32, 128>}, {pipeline_mode = #tpu.pipeline_mode<synchronous>, transform_indices = @transform_1, window_bounds = array<i64: 1, 128>}, {pipeline_mode = #tpu.pipeline_mode<synchronous>, transform_indices = @transform_2, window_bounds = array<i64: 1, 128>}, {transform_indices = @transform_3, window_bounds = array<i64: 128, 512>}, {transform_indices = @transform_4, window_bounds = array<i64: 1, 512>}, {transform_indices = @transform_5, window_bounds = array<i64: 512, 128>}, {pipeline_mode = #tpu.pipeline_mode<synchronous>, transform_indices = @transform_6, window_bounds = array<i64: 1, 128>}, {transform_indices = @transform_7, window_bounds = array<i64: 32, 128>}]} {
    %c0_i32 = arith.constant 0 : i32
    %0 = arith.cmpi eq, %arg1, %c0_i32 : i32
    %1 = arith.extui %0 : i1 to i32
    %c0_i32_0 = arith.constant 0 : i32
    %2 = arith.cmpi ne, %1, %c0_i32_0 : i32
    scf.if %2 {
      %c0_18 = arith.constant 0 : index
      %c0_19 = arith.constant 0 : index
      %25 = vector.load %arg2[%c0_18, %c0_19] : memref<32x128xf32, #tpu.memory_space<vmem>>, vector<32x128xf32>
      %cst_20 = arith.constant dense<0.000000e+00> : vector<32xf32>
      %26 = vector.multi_reduction <add>, %25, %cst_20 [1] : vector<32x128xf32> to vector<32xf32>
      %27 = vector.shape_cast %26 : vector<32xf32> to vector<32x1xf32>
      %cst_21 = arith.constant 1.280000e+02 : f32
      %28 = vector.broadcast %cst_21 : f32 to vector<32x1xf32>
      %29 = arith.divf %27, %28 : vector<32x1xf32>
      %30 = vector.broadcast %29 : vector<32x1xf32> to vector<32x128xf32>
      %31 = arith.subf %25, %30 : vector<32x128xf32>
      %32 = arith.mulf %31, %31 : vector<32x128xf32>
      %cst_22 = arith.constant dense<0.000000e+00> : vector<32xf32>
      %33 = vector.multi_reduction <add>, %32, %cst_22 [1] : vector<32x128xf32> to vector<32xf32>
      %34 = vector.shape_cast %33 : vector<32xf32> to vector<32x1xf32>
      %cst_23 = arith.constant 1.280000e+02 : f32
      %35 = vector.broadcast %cst_23 : f32 to vector<32x1xf32>
      %36 = arith.divf %34, %35 : vector<32x1xf32>
      %cst_24 = arith.constant 9.99999974E-6 : f32
      %37 = vector.broadcast %cst_24 : f32 to vector<32x1xf32>
      %38 = arith.addf %36, %37 : vector<32x1xf32>
      %39 = math.rsqrt %38 : vector<32x1xf32>
      %40 = vector.broadcast %39 : vector<32x1xf32> to vector<32x128xf32>
      %41 = arith.mulf %31, %40 : vector<32x128xf32>
      %c0_25 = arith.constant 0 : index
      %c0_26 = arith.constant 0 : index
      %42 = vector.load %arg3[%c0_25, %c0_26] : memref<1x128xf32, #tpu.memory_space<vmem>>, vector<1x128xf32>
      %43 = vector.broadcast %42 : vector<1x128xf32> to vector<32x128xf32>
      %44 = arith.mulf %41, %43 : vector<32x128xf32>
      %c0_27 = arith.constant 0 : index
      %c0_28 = arith.constant 0 : index
      %45 = vector.load %arg4[%c0_27, %c0_28] : memref<1x128xf32, #tpu.memory_space<vmem>>, vector<1x128xf32>
      %46 = vector.broadcast %45 : vector<1x128xf32> to vector<32x128xf32>
      %47 = arith.addf %44, %46 : vector<32x128xf32>
      %c0_29 = arith.constant 0 : index
      %c0_30 = arith.constant 0 : index
      %48 = vector.load %arg10[%c0_29, %c0_30] : memref<32x128xf32, #tpu.memory_space<vmem>>, vector<32x128xf32>
      tpu.vector_store %arg10[%c0_29, %c0_30], %47 {strides = array<i32>} : memref<32x128xf32, #tpu.memory_space<vmem>>, vector<32x128xf32>,
      %c0_31 = arith.constant 0 : index
      %c0_32 = arith.constant 0 : index
      %49 = vector.load %arg8[%c0_31, %c0_32] : memref<1x128xf32, #tpu.memory_space<vmem>>, vector<1x128xf32>
      %50 = vector.broadcast %49 : vector<1x128xf32> to vector<32x128xf32>
      %51 = arith.addf %25, %50 : vector<32x128xf32>
      %c0_33 = arith.constant 0 : index
      %c0_34 = arith.constant 0 : index
      %52 = vector.load %arg11[%c0_33, %c0_34] : memref<32x128xf32, #tpu.memory_space<vmem>>, vector<32x128xf32>
      tpu.vector_store %arg11[%c0_33, %c0_34], %51 {strides = array<i32>} : memref<32x128xf32, #tpu.memory_space<vmem>>, vector<32x128xf32>,
    } else {
    }
    %c0 = arith.constant 0 : index
    %c0_1 = arith.constant 0 : index
    %3 = vector.load %arg10[%c0, %c0_1] : memref<32x128xf32, #tpu.memory_space<vmem>>, vector<32x128xf32>
    %c0_2 = arith.constant 0 : index
    %c0_3 = arith.constant 0 : index
    %4 = vector.load %arg5[%c0_2, %c0_3] : memref<128x512xf32, #tpu.memory_space<vmem>>, vector<128x512xf32>
    %cst = arith.constant dense<0.000000e+00> : vector<32x512xf32>
    %5 = tpu.matmul %3, %4, %cst {dimension_numbers = #tpu.dot_dimension_numbers<[1], [0], [0], [1], [0, 0, 1, 1], [], []>} : vector<32x128xf32>, vector<128x512xf32>, vector<32x512xf32> -> vector<32x512xf32>
    %c0_4 = arith.constant 0 : index
    %c0_5 = arith.constant 0 : index
    %6 = vector.load %arg6[%c0_4, %c0_5] : memref<1x512xf32, #tpu.memory_space<vmem>>, vector<1x512xf32>
    %7 = vector.broadcast %6 : vector<1x512xf32> to vector<32x512xf32>
    %8 = arith.addf %5, %7 : vector<32x512xf32>
    %cst_6 = arith.constant 5.000000e-01 : f32
    %9 = vector.broadcast %cst_6 : f32 to vector<32x512xf32>
    %10 = arith.mulf %9, %8 : vector<32x512xf32>
    %cst_7 = arith.constant 0.707106769 : f32
    %11 = vector.broadcast %cst_7 : f32 to vector<32x512xf32>
    %12 = arith.mulf %8, %11 : vector<32x512xf32>
    %13 = math.erf %12 : vector<32x512xf32>
    %cst_8 = arith.constant 1.000000e+00 : f32
    %14 = vector.broadcast %cst_8 : f32 to vector<32x512xf32>
    %15 = arith.addf %14, %13 : vector<32x512xf32>
    %16 = arith.mulf %10, %15 : vector<32x512xf32>
    %c0_9 = arith.constant 0 : index
    %c0_10 = arith.constant 0 : index
    %17 = vector.load %arg11[%c0_9, %c0_10] : memref<32x128xf32, #tpu.memory_space<vmem>>, vector<32x128xf32>
    %c0_11 = arith.constant 0 : index
    %c0_12 = arith.constant 0 : index
    %18 = vector.load %arg7[%c0_11, %c0_12] : memref<512x128xf32, #tpu.memory_space<vmem>>, vector<512x128xf32>
    %cst_13 = arith.constant dense<0.000000e+00> : vector<32x128xf32>
    %19 = tpu.matmul %16, %18, %cst_13 {dimension_numbers = #tpu.dot_dimension_numbers<[1], [0], [0], [1], [0, 0, 1, 1], [], []>} : vector<32x512xf32>, vector<512x128xf32>, vector<32x128xf32> -> vector<32x128xf32>
    %20 = arith.addf %17, %19 : vector<32x128xf32>
    %c0_14 = arith.constant 0 : index
    %c0_15 = arith.constant 0 : index
    %21 = vector.load %arg11[%c0_14, %c0_15] : memref<32x128xf32, #tpu.memory_space<vmem>>, vector<32x128xf32>
    tpu.vector_store %arg11[%c0_14, %c0_15], %20 {strides = array<i32>} : memref<32x128xf32, #tpu.memory_space<vmem>>, vector<32x128xf32>,
    %c0_i32_16 = arith.constant 0 : i32
    %22 = arith.cmpi eq, %arg1, %c0_i32_16 : i32
    %23 = arith.extui %22 : i1 to i32
    %c0_i32_17 = arith.constant 0 : i32
    %24 = arith.cmpi ne, %23, %c0_i32_17 : i32
    scf.if %24 {
      %c0_18 = arith.constant 0 : index
      %c0_19 = arith.constant 0 : index
      %25 = vector.load %arg11[%c0_18, %c0_19] : memref<32x128xf32, #tpu.memory_space<vmem>>, vector<32x128xf32>
      %c0_20 = arith.constant 0 : index
      %c0_21 = arith.constant 0 : index
      %26 = vector.load %arg9[%c0_20, %c0_21] : memref<32x128xf32, #tpu.memory_space<vmem>>, vector<32x128xf32>
      tpu.vector_store %arg9[%c0_20, %c0_21], %25 {strides = array<i32>} : memref<32x128xf32, #tpu.memory_space<vmem>>, vector<32x128xf32>,
    } else {
    }
    return
  }
  func.func @transform_0(%arg0: i32, %arg1: i32) -> (i32, i32) {
    %c0_i32 = arith.constant 0 : i32
    %c0_i32_0 = arith.constant 0 : i32
    return %arg0, %c0_i32 : i32, i32
  }
  func.func @transform_1(%arg0: i32, %arg1: i32) -> (i32, i32) {
    %c0_i32 = arith.constant 0 : i32
    %c0_i32_0 = arith.constant 0 : i32
    %c0_i32_1 = arith.constant 0 : i32
    return %c0_i32, %c0_i32_0 : i32, i32
  }
  func.func @transform_2(%arg0: i32, %arg1: i32) -> (i32, i32) {
    %c0_i32 = arith.constant 0 : i32
    %c0_i32_0 = arith.constant 0 : i32
    %c0_i32_1 = arith.constant 0 : i32
    return %c0_i32, %c0_i32_0 : i32, i32
  }
  func.func @transform_3(%arg0: i32, %arg1: i32) -> (i32, i32) {
    %c0_i32 = arith.constant 0 : i32
    %c0_i32_0 = arith.constant 0 : i32
    return %c0_i32, %arg1 : i32, i32
  }
  func.func @transform_4(%arg0: i32, %arg1: i32) -> (i32, i32) {
    %c0_i32 = arith.constant 0 : i32
    %c0_i32_0 = arith.constant 0 : i32
    return %c0_i32, %arg1 : i32, i32
  }
  func.func @transform_5(%arg0: i32, %arg1: i32) -> (i32, i32) {
    %c0_i32 = arith.constant 0 : i32
    %c0_i32_0 = arith.constant 0 : i32
    return %arg1, %c0_i32 : i32, i32
  }
  func.func @transform_6(%arg0: i32, %arg1: i32) -> (i32, i32) {
    %c0_i32 = arith.constant 0 : i32
    %c0_i32_0 = arith.constant 0 : i32
    %c0_i32_1 = arith.constant 0 : i32
    return %c0_i32, %c0_i32_0 : i32, i32
  }
  func.func @transform_7(%arg0: i32, %arg1: i32) -> (i32, i32) {
    %c0_i32 = arith.constant 0 : i32
    %c0_i32_0 = arith.constant 0 : i32
    return %arg0, %c0_i32 : i32, i32
  }
}

module attributes {stable_mosaic.version = 11 : i64} {
  func.func @_attn_proj_residual_kernel(%arg0: i32, %arg1: memref<1x16x384xf32, #tpu.memory_space<vmem>>, %arg2: memref<1x16x128xf32, #tpu.memory_space<vmem>>, %arg3: memref<128x128xf32, #tpu.memory_space<vmem>>, %arg4: memref<1x128xf32, #tpu.memory_space<vmem>>, %arg5: memref<1x16x128xf32, #tpu.memory_space<vmem>>) attributes {dimension_semantics = [#tpu.dimension_semantics<parallel>], iteration_bounds = array<i64: 2>, scalar_prefetch = 0 : i64, scratch_operands = 0 : i64, tpu.core_type = #tpu.core_type<tc>, window_params = [{transform_indices = @transform_0, window_bounds = array<i64: 1, 16, 384>}, {transform_indices = @transform_1, window_bounds = array<i64: 1, 16, 128>}, {pipeline_mode = #tpu.pipeline_mode<synchronous>, transform_indices = @transform_2, window_bounds = array<i64: 128, 128>}, {pipeline_mode = #tpu.pipeline_mode<synchronous>, transform_indices = @transform_3, window_bounds = array<i64: 1, 128>}, {transform_indices = @transform_4, window_bounds = array<i64: 1, 16, 128>}]} {
    %c0 = arith.constant 0 : index
    %c0_0 = arith.constant 0 : index
    %c0_1 = arith.constant 0 : index
    %0 = vector.load %arg2[%c0, %c0_0, %c0_1] : memref<1x16x128xf32, #tpu.memory_space<vmem>>, vector<1x16x128xf32>
    %1 = vector.shape_cast %0 : vector<1x16x128xf32> to vector<16x128xf32>
    %c0_2 = arith.constant 0 : index
    %c0_3 = arith.constant 0 : index
    %2 = vector.load %arg4[%c0_2, %c0_3] : memref<1x128xf32, #tpu.memory_space<vmem>>, vector<1x128xf32>
    %3 = vector.broadcast %2 : vector<1x128xf32> to vector<16x128xf32>
    %4 = arith.addf %1, %3 : vector<16x128xf32>
    %c0_4 = arith.constant 0 : index
    %c0_5 = arith.constant 0 : index
    %c0_6 = arith.constant 0 : index
    %5 = vector.load %arg1[%c0_4, %c0_5, %c0_6] : memref<1x16x384xf32, #tpu.memory_space<vmem>>, vector<1x16x32xf32>
    %6 = vector.shape_cast %5 : vector<1x16x32xf32> to vector<16x32xf32>
    %c0_7 = arith.constant 0 : index
    %c0_8 = arith.constant 0 : index
    %c128 = arith.constant 128 : index
    %7 = vector.load %arg1[%c0_7, %c0_8, %c128] : memref<1x16x384xf32, #tpu.memory_space<vmem>>, vector<1x16x32xf32>
    %8 = vector.shape_cast %7 : vector<1x16x32xf32> to vector<16x32xf32>
    %c0_9 = arith.constant 0 : index
    %c0_10 = arith.constant 0 : index
    %c256 = arith.constant 256 : index
    %9 = vector.load %arg1[%c0_9, %c0_10, %c256] : memref<1x16x384xf32, #tpu.memory_space<vmem>>, vector<1x16x32xf32>
    %10 = vector.shape_cast %9 : vector<1x16x32xf32> to vector<16x32xf32>
    %11 = tpu.transpose %8, [1, 0] : vector<16x32xf32> -> vector<32x16xf32>
    %cst = arith.constant dense<0.000000e+00> : vector<16x16xf32>
    %12 = tpu.matmul %6, %11, %cst {dimension_numbers = #tpu.dot_dimension_numbers<[1], [0], [0], [1], [0, 0, 1, 1], [], []>} : vector<16x32xf32>, vector<32x16xf32>, vector<16x16xf32> -> vector<16x16xf32>
    %cst_11 = arith.constant 0.176776692 : f32
    %13 = vector.broadcast %cst_11 : f32 to vector<16x16xf32>
    %14 = arith.mulf %12, %13 : vector<16x16xf32>
    %cst_12 = arith.constant dense<0xFF800000> : vector<16xf32>
    %15 = vector.multi_reduction <maximumf>, %14, %cst_12 [1] : vector<16x16xf32> to vector<16xf32>
    %16 = vector.shape_cast %15 : vector<16xf32> to vector<16x1xf32>
    %17 = vector.broadcast %16 : vector<16x1xf32> to vector<16x16xf32>
    %18 = arith.subf %14, %17 : vector<16x16xf32>
    %19 = math.exp %18 : vector<16x16xf32>
    %cst_13 = arith.constant dense<0.000000e+00> : vector<16xf32>
    %20 = vector.multi_reduction <add>, %19, %cst_13 [1] : vector<16x16xf32> to vector<16xf32>
    %21 = vector.shape_cast %20 : vector<16xf32> to vector<16x1xf32>
    %cst_14 = arith.constant dense<0.000000e+00> : vector<16x32xf32>
    %22 = tpu.matmul %19, %10, %cst_14 {dimension_numbers = #tpu.dot_dimension_numbers<[1], [0], [0], [1], [0, 0, 1, 1], [], []>} : vector<16x16xf32>, vector<16x32xf32>, vector<16x32xf32> -> vector<16x32xf32>
    %23 = tpu.reciprocal %21 : vector<16x1xf32> -> vector<16x1xf32>
    %24 = vector.broadcast %23 : vector<16x1xf32> to vector<16x32xf32>
    %25 = arith.mulf %22, %24 : vector<16x32xf32>
    %c0_15 = arith.constant 0 : index
    %c0_16 = arith.constant 0 : index
    %26 = vector.load %arg3[%c0_15, %c0_16] : memref<128x128xf32, #tpu.memory_space<vmem>>, vector<32x128xf32>
    %cst_17 = arith.constant dense<0.000000e+00> : vector<16x128xf32>
    %27 = tpu.matmul %25, %26, %cst_17 {dimension_numbers = #tpu.dot_dimension_numbers<[1], [0], [0], [1], [0, 0, 1, 1], [], []>} : vector<16x32xf32>, vector<32x128xf32>, vector<16x128xf32> -> vector<16x128xf32>
    %28 = arith.addf %4, %27 : vector<16x128xf32>
    %c0_18 = arith.constant 0 : index
    %c0_19 = arith.constant 0 : index
    %c32 = arith.constant 32 : index
    %29 = vector.load %arg1[%c0_18, %c0_19, %c32] : memref<1x16x384xf32, #tpu.memory_space<vmem>>, vector<1x16x32xf32>
    %30 = vector.shape_cast %29 : vector<1x16x32xf32> to vector<16x32xf32>
    %c0_20 = arith.constant 0 : index
    %c0_21 = arith.constant 0 : index
    %c160 = arith.constant 160 : index
    %31 = vector.load %arg1[%c0_20, %c0_21, %c160] : memref<1x16x384xf32, #tpu.memory_space<vmem>>, vector<1x16x32xf32>
    %32 = vector.shape_cast %31 : vector<1x16x32xf32> to vector<16x32xf32>
    %c0_22 = arith.constant 0 : index
    %c0_23 = arith.constant 0 : index
    %c288 = arith.constant 288 : index
    %33 = vector.load %arg1[%c0_22, %c0_23, %c288] : memref<1x16x384xf32, #tpu.memory_space<vmem>>, vector<1x16x32xf32>
    %34 = vector.shape_cast %33 : vector<1x16x32xf32> to vector<16x32xf32>
    %35 = tpu.transpose %32, [1, 0] : vector<16x32xf32> -> vector<32x16xf32>
    %cst_24 = arith.constant dense<0.000000e+00> : vector<16x16xf32>
    %36 = tpu.matmul %30, %35, %cst_24 {dimension_numbers = #tpu.dot_dimension_numbers<[1], [0], [0], [1], [0, 0, 1, 1], [], []>} : vector<16x32xf32>, vector<32x16xf32>, vector<16x16xf32> -> vector<16x16xf32>
    %cst_25 = arith.constant 0.176776692 : f32
    %37 = vector.broadcast %cst_25 : f32 to vector<16x16xf32>
    %38 = arith.mulf %36, %37 : vector<16x16xf32>
    %cst_26 = arith.constant dense<0xFF800000> : vector<16xf32>
    %39 = vector.multi_reduction <maximumf>, %38, %cst_26 [1] : vector<16x16xf32> to vector<16xf32>
    %40 = vector.shape_cast %39 : vector<16xf32> to vector<16x1xf32>
    %41 = vector.broadcast %40 : vector<16x1xf32> to vector<16x16xf32>
    %42 = arith.subf %38, %41 : vector<16x16xf32>
    %43 = math.exp %42 : vector<16x16xf32>
    %cst_27 = arith.constant dense<0.000000e+00> : vector<16xf32>
    %44 = vector.multi_reduction <add>, %43, %cst_27 [1] : vector<16x16xf32> to vector<16xf32>
    %45 = vector.shape_cast %44 : vector<16xf32> to vector<16x1xf32>
    %cst_28 = arith.constant dense<0.000000e+00> : vector<16x32xf32>
    %46 = tpu.matmul %43, %34, %cst_28 {dimension_numbers = #tpu.dot_dimension_numbers<[1], [0], [0], [1], [0, 0, 1, 1], [], []>} : vector<16x16xf32>, vector<16x32xf32>, vector<16x32xf32> -> vector<16x32xf32>
    %47 = tpu.reciprocal %45 : vector<16x1xf32> -> vector<16x1xf32>
    %48 = vector.broadcast %47 : vector<16x1xf32> to vector<16x32xf32>
    %49 = arith.mulf %46, %48 : vector<16x32xf32>
    %c32_29 = arith.constant 32 : index
    %c0_30 = arith.constant 0 : index
    %50 = vector.load %arg3[%c32_29, %c0_30] : memref<128x128xf32, #tpu.memory_space<vmem>>, vector<32x128xf32>
    %cst_31 = arith.constant dense<0.000000e+00> : vector<16x128xf32>
    %51 = tpu.matmul %49, %50, %cst_31 {dimension_numbers = #tpu.dot_dimension_numbers<[1], [0], [0], [1], [0, 0, 1, 1], [], []>} : vector<16x32xf32>, vector<32x128xf32>, vector<16x128xf32> -> vector<16x128xf32>
    %52 = arith.addf %28, %51 : vector<16x128xf32>
    %c0_32 = arith.constant 0 : index
    %c0_33 = arith.constant 0 : index
    %c64 = arith.constant 64 : index
    %53 = vector.load %arg1[%c0_32, %c0_33, %c64] : memref<1x16x384xf32, #tpu.memory_space<vmem>>, vector<1x16x32xf32>
    %54 = vector.shape_cast %53 : vector<1x16x32xf32> to vector<16x32xf32>
    %c0_34 = arith.constant 0 : index
    %c0_35 = arith.constant 0 : index
    %c192 = arith.constant 192 : index
    %55 = vector.load %arg1[%c0_34, %c0_35, %c192] : memref<1x16x384xf32, #tpu.memory_space<vmem>>, vector<1x16x32xf32>
    %56 = vector.shape_cast %55 : vector<1x16x32xf32> to vector<16x32xf32>
    %c0_36 = arith.constant 0 : index
    %c0_37 = arith.constant 0 : index
    %c320 = arith.constant 320 : index
    %57 = vector.load %arg1[%c0_36, %c0_37, %c320] : memref<1x16x384xf32, #tpu.memory_space<vmem>>, vector<1x16x32xf32>
    %58 = vector.shape_cast %57 : vector<1x16x32xf32> to vector<16x32xf32>
    %59 = tpu.transpose %56, [1, 0] : vector<16x32xf32> -> vector<32x16xf32>
    %cst_38 = arith.constant dense<0.000000e+00> : vector<16x16xf32>
    %60 = tpu.matmul %54, %59, %cst_38 {dimension_numbers = #tpu.dot_dimension_numbers<[1], [0], [0], [1], [0, 0, 1, 1], [], []>} : vector<16x32xf32>, vector<32x16xf32>, vector<16x16xf32> -> vector<16x16xf32>
    %cst_39 = arith.constant 0.176776692 : f32
    %61 = vector.broadcast %cst_39 : f32 to vector<16x16xf32>
    %62 = arith.mulf %60, %61 : vector<16x16xf32>
    %cst_40 = arith.constant dense<0xFF800000> : vector<16xf32>
    %63 = vector.multi_reduction <maximumf>, %62, %cst_40 [1] : vector<16x16xf32> to vector<16xf32>
    %64 = vector.shape_cast %63 : vector<16xf32> to vector<16x1xf32>
    %65 = vector.broadcast %64 : vector<16x1xf32> to vector<16x16xf32>
    %66 = arith.subf %62, %65 : vector<16x16xf32>
    %67 = math.exp %66 : vector<16x16xf32>
    %cst_41 = arith.constant dense<0.000000e+00> : vector<16xf32>
    %68 = vector.multi_reduction <add>, %67, %cst_41 [1] : vector<16x16xf32> to vector<16xf32>
    %69 = vector.shape_cast %68 : vector<16xf32> to vector<16x1xf32>
    %cst_42 = arith.constant dense<0.000000e+00> : vector<16x32xf32>
    %70 = tpu.matmul %67, %58, %cst_42 {dimension_numbers = #tpu.dot_dimension_numbers<[1], [0], [0], [1], [0, 0, 1, 1], [], []>} : vector<16x16xf32>, vector<16x32xf32>, vector<16x32xf32> -> vector<16x32xf32>
    %71 = tpu.reciprocal %69 : vector<16x1xf32> -> vector<16x1xf32>
    %72 = vector.broadcast %71 : vector<16x1xf32> to vector<16x32xf32>
    %73 = arith.mulf %70, %72 : vector<16x32xf32>
    %c64_43 = arith.constant 64 : index
    %c0_44 = arith.constant 0 : index
    %74 = vector.load %arg3[%c64_43, %c0_44] : memref<128x128xf32, #tpu.memory_space<vmem>>, vector<32x128xf32>
    %cst_45 = arith.constant dense<0.000000e+00> : vector<16x128xf32>
    %75 = tpu.matmul %73, %74, %cst_45 {dimension_numbers = #tpu.dot_dimension_numbers<[1], [0], [0], [1], [0, 0, 1, 1], [], []>} : vector<16x32xf32>, vector<32x128xf32>, vector<16x128xf32> -> vector<16x128xf32>
    %76 = arith.addf %52, %75 : vector<16x128xf32>
    %c0_46 = arith.constant 0 : index
    %c0_47 = arith.constant 0 : index
    %c96 = arith.constant 96 : index
    %77 = vector.load %arg1[%c0_46, %c0_47, %c96] : memref<1x16x384xf32, #tpu.memory_space<vmem>>, vector<1x16x32xf32>
    %78 = vector.shape_cast %77 : vector<1x16x32xf32> to vector<16x32xf32>
    %c0_48 = arith.constant 0 : index
    %c0_49 = arith.constant 0 : index
    %c224 = arith.constant 224 : index
    %79 = vector.load %arg1[%c0_48, %c0_49, %c224] : memref<1x16x384xf32, #tpu.memory_space<vmem>>, vector<1x16x32xf32>
    %80 = vector.shape_cast %79 : vector<1x16x32xf32> to vector<16x32xf32>
    %c0_50 = arith.constant 0 : index
    %c0_51 = arith.constant 0 : index
    %c352 = arith.constant 352 : index
    %81 = vector.load %arg1[%c0_50, %c0_51, %c352] : memref<1x16x384xf32, #tpu.memory_space<vmem>>, vector<1x16x32xf32>
    %82 = vector.shape_cast %81 : vector<1x16x32xf32> to vector<16x32xf32>
    %83 = tpu.transpose %80, [1, 0] : vector<16x32xf32> -> vector<32x16xf32>
    %cst_52 = arith.constant dense<0.000000e+00> : vector<16x16xf32>
    %84 = tpu.matmul %78, %83, %cst_52 {dimension_numbers = #tpu.dot_dimension_numbers<[1], [0], [0], [1], [0, 0, 1, 1], [], []>} : vector<16x32xf32>, vector<32x16xf32>, vector<16x16xf32> -> vector<16x16xf32>
    %cst_53 = arith.constant 0.176776692 : f32
    %85 = vector.broadcast %cst_53 : f32 to vector<16x16xf32>
    %86 = arith.mulf %84, %85 : vector<16x16xf32>
    %cst_54 = arith.constant dense<0xFF800000> : vector<16xf32>
    %87 = vector.multi_reduction <maximumf>, %86, %cst_54 [1] : vector<16x16xf32> to vector<16xf32>
    %88 = vector.shape_cast %87 : vector<16xf32> to vector<16x1xf32>
    %89 = vector.broadcast %88 : vector<16x1xf32> to vector<16x16xf32>
    %90 = arith.subf %86, %89 : vector<16x16xf32>
    %91 = math.exp %90 : vector<16x16xf32>
    %cst_55 = arith.constant dense<0.000000e+00> : vector<16xf32>
    %92 = vector.multi_reduction <add>, %91, %cst_55 [1] : vector<16x16xf32> to vector<16xf32>
    %93 = vector.shape_cast %92 : vector<16xf32> to vector<16x1xf32>
    %cst_56 = arith.constant dense<0.000000e+00> : vector<16x32xf32>
    %94 = tpu.matmul %91, %82, %cst_56 {dimension_numbers = #tpu.dot_dimension_numbers<[1], [0], [0], [1], [0, 0, 1, 1], [], []>} : vector<16x16xf32>, vector<16x32xf32>, vector<16x32xf32> -> vector<16x32xf32>
    %95 = tpu.reciprocal %93 : vector<16x1xf32> -> vector<16x1xf32>
    %96 = vector.broadcast %95 : vector<16x1xf32> to vector<16x32xf32>
    %97 = arith.mulf %94, %96 : vector<16x32xf32>
    %c96_57 = arith.constant 96 : index
    %c0_58 = arith.constant 0 : index
    %98 = vector.load %arg3[%c96_57, %c0_58] : memref<128x128xf32, #tpu.memory_space<vmem>>, vector<32x128xf32>
    %cst_59 = arith.constant dense<0.000000e+00> : vector<16x128xf32>
    %99 = tpu.matmul %97, %98, %cst_59 {dimension_numbers = #tpu.dot_dimension_numbers<[1], [0], [0], [1], [0, 0, 1, 1], [], []>} : vector<16x32xf32>, vector<32x128xf32>, vector<16x128xf32> -> vector<16x128xf32>
    %100 = arith.addf %76, %99 : vector<16x128xf32>
    %c0_60 = arith.constant 0 : index
    %c0_61 = arith.constant 0 : index
    %c0_62 = arith.constant 0 : index
    %101 = vector.load %arg5[%c0_60, %c0_61, %c0_62] : memref<1x16x128xf32, #tpu.memory_space<vmem>>, vector<1x16x128xf32>
    %102 = vector.shape_cast %101 : vector<1x16x128xf32> to vector<16x128xf32>
    %103 = vector.shape_cast %100 : vector<16x128xf32> to vector<1x16x128xf32>
    tpu.vector_store %arg5[%c0_60, %c0_61, %c0_62], %103 {strides = array<i32>} : memref<1x16x128xf32, #tpu.memory_space<vmem>>, vector<1x16x128xf32>,
    return
  }
  func.func @transform_0(%arg0: i32) -> (i32, i32, i32) {
    %c0_i32 = arith.constant 0 : i32
    %c0_i32_0 = arith.constant 0 : i32
    %c0_i32_1 = arith.constant 0 : i32
    return %arg0, %c0_i32, %c0_i32_0 : i32, i32, i32
  }
  func.func @transform_1(%arg0: i32) -> (i32, i32, i32) {
    %c0_i32 = arith.constant 0 : i32
    %c0_i32_0 = arith.constant 0 : i32
    %c0_i32_1 = arith.constant 0 : i32
    return %arg0, %c0_i32, %c0_i32_0 : i32, i32, i32
  }
  func.func @transform_2(%arg0: i32) -> (i32, i32) {
    %c0_i32 = arith.constant 0 : i32
    %c0_i32_0 = arith.constant 0 : i32
    %c0_i32_1 = arith.constant 0 : i32
    return %c0_i32, %c0_i32_0 : i32, i32
  }
  func.func @transform_3(%arg0: i32) -> (i32, i32) {
    %c0_i32 = arith.constant 0 : i32
    %c0_i32_0 = arith.constant 0 : i32
    %c0_i32_1 = arith.constant 0 : i32
    return %c0_i32, %c0_i32_0 : i32, i32
  }
  func.func @transform_4(%arg0: i32) -> (i32, i32, i32) {
    %c0_i32 = arith.constant 0 : i32
    %c0_i32_0 = arith.constant 0 : i32
    %c0_i32_1 = arith.constant 0 : i32
    return %arg0, %c0_i32, %c0_i32_0 : i32, i32, i32
  }
}

module attributes {stable_mosaic.version = 11 : i64} {
  func.func @_layernorm_kernel(%arg0: i32, %arg1: memref<32x128xf32, #tpu.memory_space<vmem>>, %arg2: memref<1x128xf32, #tpu.memory_space<vmem>>, %arg3: memref<1x128xf32, #tpu.memory_space<vmem>>, %arg4: memref<32x128xf32, #tpu.memory_space<vmem>>) attributes {dimension_semantics = [#tpu.dimension_semantics<parallel>], iteration_bounds = array<i64: 1>, scalar_prefetch = 0 : i64, scratch_operands = 0 : i64, tpu.core_type = #tpu.core_type<tc>, window_params = [{transform_indices = @transform_0, window_bounds = array<i64: 32, 128>}, {pipeline_mode = #tpu.pipeline_mode<synchronous>, transform_indices = @transform_1, window_bounds = array<i64: 1, 128>}, {pipeline_mode = #tpu.pipeline_mode<synchronous>, transform_indices = @transform_2, window_bounds = array<i64: 1, 128>}, {transform_indices = @transform_3, window_bounds = array<i64: 32, 128>}]} {
    %c0 = arith.constant 0 : index
    %c0_0 = arith.constant 0 : index
    %0 = vector.load %arg1[%c0, %c0_0] : memref<32x128xf32, #tpu.memory_space<vmem>>, vector<32x128xf32>
    %cst = arith.constant dense<0.000000e+00> : vector<32xf32>
    %1 = vector.multi_reduction <add>, %0, %cst [1] : vector<32x128xf32> to vector<32xf32>
    %2 = vector.shape_cast %1 : vector<32xf32> to vector<32x1xf32>
    %cst_1 = arith.constant 1.280000e+02 : f32
    %3 = vector.broadcast %cst_1 : f32 to vector<32x1xf32>
    %4 = arith.divf %2, %3 : vector<32x1xf32>
    %5 = vector.broadcast %4 : vector<32x1xf32> to vector<32x128xf32>
    %6 = arith.subf %0, %5 : vector<32x128xf32>
    %7 = arith.mulf %6, %6 : vector<32x128xf32>
    %cst_2 = arith.constant dense<0.000000e+00> : vector<32xf32>
    %8 = vector.multi_reduction <add>, %7, %cst_2 [1] : vector<32x128xf32> to vector<32xf32>
    %9 = vector.shape_cast %8 : vector<32xf32> to vector<32x1xf32>
    %cst_3 = arith.constant 1.280000e+02 : f32
    %10 = vector.broadcast %cst_3 : f32 to vector<32x1xf32>
    %11 = arith.divf %9, %10 : vector<32x1xf32>
    %cst_4 = arith.constant 9.99999974E-6 : f32
    %12 = vector.broadcast %cst_4 : f32 to vector<32x1xf32>
    %13 = arith.addf %11, %12 : vector<32x1xf32>
    %14 = math.rsqrt %13 : vector<32x1xf32>
    %15 = vector.broadcast %14 : vector<32x1xf32> to vector<32x128xf32>
    %16 = arith.mulf %6, %15 : vector<32x128xf32>
    %c0_5 = arith.constant 0 : index
    %c0_6 = arith.constant 0 : index
    %17 = vector.load %arg2[%c0_5, %c0_6] : memref<1x128xf32, #tpu.memory_space<vmem>>, vector<1x128xf32>
    %18 = vector.broadcast %17 : vector<1x128xf32> to vector<32x128xf32>
    %19 = arith.mulf %16, %18 : vector<32x128xf32>
    %c0_7 = arith.constant 0 : index
    %c0_8 = arith.constant 0 : index
    %20 = vector.load %arg3[%c0_7, %c0_8] : memref<1x128xf32, #tpu.memory_space<vmem>>, vector<1x128xf32>
    %21 = vector.broadcast %20 : vector<1x128xf32> to vector<32x128xf32>
    %22 = arith.addf %19, %21 : vector<32x128xf32>
    %c0_9 = arith.constant 0 : index
    %c0_10 = arith.constant 0 : index
    %23 = vector.load %arg4[%c0_9, %c0_10] : memref<32x128xf32, #tpu.memory_space<vmem>>, vector<32x128xf32>
    tpu.vector_store %arg4[%c0_9, %c0_10], %22 {strides = array<i32>} : memref<32x128xf32, #tpu.memory_space<vmem>>, vector<32x128xf32>,
    return
  }
  func.func @transform_0(%arg0: i32) -> (i32, i32) {
    %c0_i32 = arith.constant 0 : i32
    %c0_i32_0 = arith.constant 0 : i32
    return %arg0, %c0_i32 : i32, i32
  }
  func.func @transform_1(%arg0: i32) -> (i32, i32) {
    %c0_i32 = arith.constant 0 : i32
    %c0_i32_0 = arith.constant 0 : i32
    %c0_i32_1 = arith.constant 0 : i32
    return %c0_i32, %c0_i32_0 : i32, i32
  }
  func.func @transform_2(%arg0: i32) -> (i32, i32) {
    %c0_i32 = arith.constant 0 : i32
    %c0_i32_0 = arith.constant 0 : i32
    %c0_i32_1 = arith.constant 0 : i32
    return %c0_i32, %c0_i32_0 : i32, i32
  }
  func.func @transform_3(%arg0: i32) -> (i32, i32) {
    %c0_i32 = arith.constant 0 : i32
    %c0_i32_0 = arith.constant 0 : i32
    return %arg0, %c0_i32 : i32, i32
  }
}

</mosaic_0001>

<bundles_post_ra>
// kernel: tpu_custom_call.1
= control target key start
LH: loop header
LB: loop body
LE: loop exit
PB: predicated region body
PF: predicated region fallthrough
CT: control target
= control target key end

     0   :  { %7 = vsyncpa [#allocation3], 0  ;;  %s152_s0 = inlined_call_operand.hbm [shape: f32[8,128], index: 0, kind: input, shape index: {}]   ;;  %s153_s1 = inlined_call_operand.hbm [shape: f32[8,128], index: 1, kind: input, shape index: {}]   ;;  %s154_s2 = inlined_call_operand.hbm [shape: f32[8,128], index: 2, kind: output, shape index: {}]  }
   0x1   :  { %8 = vsyncpa [#allocation6], 0 }
   0x2   :  { %9 = vsyncpa [#allocation4], 0  ;;  %s125_s9 = smov [#allocation2]   ;;  %s126_s11 = smov [#allocation5]  }
   0x3   :  { %s16_s10 = sshll.u32 %s125_s9, 4  ;;  %s26_s12 = sshll.u32 %s126_s11, 4  ;;  %s17_s10 = int_to_ptr.vmem [resolvable:$true] %s16_s10  ;;  %s27_s12 = int_to_ptr.vmem [resolvable:$true] %s26_s12 }
   0x4   :  { %s67_s13 = scalar_lea.vmem %s17_s10, 128  ;;  %p72_p1 = scmp.lt.s32.totalorder %s17_s10, %s17_s10 }
   0x5   :  { %p68_p0 = scmp.ne.s32.totalorder %s17_s10, %s67_s13  ;;  %p73_p2 = scmp.lt.s32.totalorder %s67_s13, %s67_s13 }
   0x7   :  { %p74_p3 = por %p73_p2, %p72_p1 }
   0x9   :  { %p75_p4 = pnand %p74_p3, %p68_p0 }
   0xb   :  { %78 = shalt.err (!%p75_p4)
}
   0xc   :  { %19 = dma.hbm_to_vmem [thread:$0]  %s152_s0, 128, %s17_s10, [#allocation3]  }
   0xd   :  { %s87_s16 = scalar_lea.vmem %s27_s12, 128  ;;  %p92_p6 = scmp.lt.s32.totalorder %s27_s12, %s27_s12 }
   0xe   :  { %p88_p5 = scmp.ne.s32.totalorder %s27_s12, %s87_s16  ;;  %p93_p7 = scmp.lt.s32.totalorder %s87_s16, %s87_s16 }
  0x10   :  { %p94_p8 = por %p93_p7, %p92_p6 }
  0x12   :  { %p95_p9 = pnand %p94_p8, %p88_p5 }
  0x14   :  { %98 = shalt.err (!%p95_p9)
}
  0x15   :  { %29 = dma.hbm_to_vmem [thread:$0]  %s153_s1, 128, %s27_s12, [#allocation6]  }
  0x16   :  { %119 = dma.done.wait [#allocation3], 128  }
  0x17   :  { %120 = vsyncadd [#allocation3], 4294967168 }
  0x18   :  { %121 = dma.done.wait [#allocation6], 128  }
  0x19   :  { %122 = vsyncadd [#allocation6], 4294967168  ;;  %s127_s19 = smov [#allocation7]   ;;  %v36_v0 = vld [vmem:[#allocation2] sm:$0xff]  ;;  %v37_v1 = vld [vmem:[#allocation5] sm:$0xff] }
  0x1a   :  { %s46_s20 = sshll.u32 %s127_s19, 4  ;;  %v38_v2 = vadd.f32 %v37_v1, %v36_v0  ;;  %s47_s20 = int_to_ptr.vmem [resolvable:$true] %s46_s20 }
  0x1b   :  { %s99_s0 = scalar_lea.vmem %s47_s20, 128  ;;  %p104_p11 = scmp.lt.s32.totalorder %s47_s20, %s47_s20 }
  0x1c   :  { %39 = vst [vmem:[#allocation7] sm:$0xff] %v38_v2  ;;  %p100_p10 = scmp.ne.s32.totalorder %s47_s20, %s99_s0  ;;  %p105_p12 = scmp.lt.s32.totalorder %s99_s0, %s99_s0 }
  0x1e   :  { %p106_p13 = por %p105_p12, %p104_p11 }
  0x20   :  { %p107_p0 = pnand %p106_p13, %p100_p10 }
  0x22   :  { %110 = shalt.err (!%p107_p0)
}
  0x23   :  { %49 = dma.vmem_to_hbm [thread:$0]  %s47_s20, 128, %s154_s2, [#allocation4]  }
  0x24   :  { %123 = dma.done.wait [#allocation4], 128  }
  0x25   :  { %124 = vsyncadd [#allocation4], 4294967168 }
  0x26   :  { %53 = vsyncpa [#allocation3], 1 }
  0x27   :  { %54 = vsyncpa [#allocation6], 1 }
  0x28   :  { %55 = vsyncpa [#allocation4], 1 }

// kernel: transformer_encoder_forward.8
= control target key start
LH: loop header
LB: loop body
LE: loop exit
PB: predicated region body
PF: predicated region fallthrough
CT: control target
= control target key end

     0   :  { %9 = vsyncpa [#allocation3], 0  ;;  %s1812_s15 = smov 0   ;;  %s1985_s0 = inlined_call_operand.vmem [shape: f32[2,16,384], index: 0, kind: input, shape index: {}]   ;;  %s1986_s1 = inlined_call_operand.vmem [shape: f32[2,16,128], index: 1, kind: input, shape index: {}]   ;;  %s1987_s2 = inlined_call_operand.hbm [shape: f32[128,128], index: 2, kind: input, shape index: {}]   ;;  %s1988_s3 = inlined_call_operand.vmem [shape: f32[1,128], index: 3, kind: input, shape index: {}]   ;;  %s1989_s4 = inlined_call_operand.vmem [shape: f32[2,16,128], index: 4, kind: output, shape index: {}]  }
   0x1 LB: > { %s1481_s16 = sadd.s32 4294967295, %s1779_s15   ;;  %p1483_p0 = scmp.ge.s32.totalorder %s1779_s15, 1  ;;  %s1779_s15 = sphi %s1812_s15, %s15_s15  }
   0x2   : > { %p140_p1 = scmp.lt.s32.totalorder %s1779_s15, 3  ;;  %s1781_s17 = smov [#allocation2]  }
   0x3   : > { %s152_s18 = sshll.u32 %s1781_s17, 4  ;;  %p1695_p3 = scmp.eq.s32.totalorder %s1481_s16, 0  ;;  %s153_s18 = int_to_ptr.vmem [resolvable:$true] %s152_s18 }
   0x4   : > { %p1820_p2 = pnand %p1483_p0, %p140_p1  ;;  %s1754_s20 = scalar_lea.vmem %s153_s18, 2048 }
   0x5   : > { %p1755_p7 = scmp.ne.s32.totalorder %s153_s18, %s1754_s20  ;;  %p1762_p10 = scmp.lt.s32.totalorder %s153_s18, %s153_s18 }
   0x6   : > { %p1691_p4 = pneg %p1820_p2  ;;  %p1763_p11 = scmp.lt.s32.totalorder %s1754_s20, %s1754_s20 }
   0x8   : > { %p1692_p5 = pnand %p1695_p3, %p1691_p4  ;;  %p1764_p12 = por %p1763_p11, %p1762_p10 }
   0xa   : > { %p1745_p6 = pneg %p1692_p5 }
   0xc   : > { %p1757_p8 = pnand %p1755_p7, %p1745_p6 }
   0xe   : > { %p1758_p9 = pneg %p1757_p8 }
  0x10   : > { %p1765_p13 = pnand %p1764_p12, %p1758_p9 }
  0x12   : > { %1768 = shalt.err (!%p1765_p13)
}
  0x13   : > { %s1782_s21 = smov 128   ;;  %s1783_s22 = smov 8  }
  0x14   : > { %1694 = dma.hbm_to_vmem [thread:$0]  (!%p1692_p5), %s1987_s2, 2048, %s153_s18, [#allocation3], %s1782_s21, %s1782_s21, %s1783_s22  }
  0x15   : > { %187 = sbr.rel (%p1820_p2) target bundleno = 1560 (0x618), region = 36 }
  0x1a   : > { %1774 = dma.done.wait (%p1695_p3), [#allocation3], 2048  }
  0x1b   : > { %1776 = vsyncadd (%p1695_p3), [#allocation3], 4294965248  ;;  %p218_p0 = scmp.lt.s32.totalorder %s1481_s16, 1  ;;  %vm250_vm0 = vcmask 261120   ;;  %s1784_s29 = smov 96   ;;  %vm340_vm1 = vcmask 130048  }
  0x1c   : > { %s1785_s30 = smov 64   ;;  %v447_v28 = vld [vmem:[#allocation2 + $0x18] sm:$0xff]  ;;  %v446_v32 = vld [vmem:[#allocation2 + $0x10] sm:$0xff]  ;;  %v445_v34 = vld [vmem:[#allocation2 + $0x8] sm:$0xff]  ;;  %s1786_s5 = smov 32  }
  0x1d   : > { %s1992_s16 = smov (!%p218_p0, %s1481_s16), 1  ;;  %v444_v35 = vld [vmem:[#allocation2] sm:$0xff]  ;;  %v738_v60 = vld [vmem:[#allocation2 + $0x38] sm:$0xff]  ;;  %v737_v62 = vld [vmem:[#allocation2 + $0x30] sm:$0xff] }
  0x1e   : > { %s1686_s25 = smul.u32 48, %s1992_s16  ;;  %v736_v63 = vld [vmem:[#allocation2 + $0x28] sm:$0xff]  ;;  %s1528_s6 = sshll.u32 %s1992_s16, 4 }
  0x1f   : > { %s227_s9 = scalar_lea.vmem %s1986_s1, %s1528_s6  ;;  %s232_s14 = scalar_lea.vmem %s1989_s4, %s1528_s6 }
  0x20   : > { %s1840_s28 = scalar_lea.vmem %s1985_s0, %s1686_s25 }
  0x21   : > { %v1843_v0 = vld [vmem:[%s1840_s28 + $0x20] sm:$0xff]  ;;  %v1846_v1 = vld [vmem:[%s1840_s28 + $0x8] sm:$0xff]  ;;  %v1864_v3 = vld [vmem:[%s1840_s28 + $0x18] sm:$0xff] }
  0x22   : > { %v1849_v2 = vld [vmem:[%s1840_s28] sm:$0xff]  ;;  %537 = vrot.lane.b32.xlu0 %v1843_v0, %s1784_s29  ;;  %1586 = vmatprep.subr.msk.mxu0 %vm250_vm0, %v1843_v0  ;;  %v1875_v4 = vld [vmem:[%s1840_s28 + $0x28] sm:$0xff]  ;;  %v1888_v15 = vld [vmem:[%s1840_s28 + $0x10] sm:$0xff] }
  0x23   : > { %1587 = vmatpush3.xpose.msk.msra.mxu0 %vm250_vm0, %v1843_v0  ;;  %531 = vrot.lane.b32.xlu1 %v1849_v2, %s1784_s29 }
  0x24   : > { %1588 = vmatprep.subr.msk.mxu0 %vm250_vm0, %v1846_v1  ;;  %1590 = vmatprep.mubr.msk.f32.mxu0 %vm250_vm0, %v1849_v2 }
  0x25   : > { %1593 = vmatprep.subr.mxu1 %v1875_v4 }
  0x26   : > { %535 = vrot.lane.b32.xlu0 %v1846_v1, %s1784_s29  ;;  %1594 = vmatpush3.msra.mxu1 %v1875_v4 }
  0x27   : > { %1589 = vmatpush3.xpose.msk.msra.mxu0 %vm250_vm0, %v1846_v1  ;;  %533 = vrot.lane.b32.xlu1 %v1864_v3, %s1784_s29 }
  0x28   : > { %1595 = vmatprep.subr.mxu1 %v1888_v15 }
  0x29   : > { %1596 = vmatpush3.msra.mxu1 %v1888_v15 }
  0x2a   : > { %1591 = vmatmul.mubr.msk.f32.vlgmr.msra.gmra.mxu0 %vm250_vm0, %v1864_v3  ;;  %1600 = vmatprep.subr.mxu1 %v447_v28 }
  0x94   : > { %v538_v5 = vpop.permute.xlu0 %537 }
  0x95   : > { %1611 = vmatprep.subr.msk.mxu0 %vm250_vm0, %v538_v5  ;;  %v532_v6 = vpop.permute.xlu1 %531 }
  0x96   : > { %1612 = vmatpush3.xpose.msk.msra.mxu0 %vm250_vm0, %v538_v5  ;;  %1615 = vmatprep.mubr.msk.f32.mxu0 %vm250_vm0, %v532_v6 }
  0x98   : > { %v536_v7 = vpop.permute.xlu0 %535 }
  0x99   : > { %1613 = vmatprep.subr.msk.mxu0 %vm250_vm0, %v536_v7  ;;  %v534_v8 = vpop.permute.xlu1 %533 }
  0x9a   : > { %1614 = vmatpush3.xpose.msk.msra.mxu0 %vm250_vm0, %v536_v7 }
  0x9b   : > { %1625 = vmatprep.subr.mxu0 %v738_v60 }
  0x9d   : > { %1616 = vmatmul.mubr.msk.f32.vlgmr.msra.gmra.mxu0 %vm250_vm0, %v534_v8 }
  0x9e   : > { %1626 = vmatpush3.msra.mxu0 %v738_v60 }
  0x9f   : > { %1627 = vmatprep.subr.mxu0 %v737_v62 }
  0xa0   : > { %1628 = vmatpush3.msra.mxu0 %v737_v62 }
  0xa1   : > { %1629 = vmatprep.subr.mxu0 %v736_v63 }
  0xa2   : > { %1630 = vmatpush3.msra.mxu0 %v736_v63 }
  0xea   : > { %v1592_v9 = vpop.f32.mrf.mxu0 }
  0xeb   : > { %v339_v10 = vmul.f32 0.17677669, %v1592_v9 }
  0xec   : > { %v329_v11 = vpop.f32.mrf.mxu0 }
  0xed   : > { %v338_v12 = vmul.f32 0.17677669, %v329_v11  ;;  %v344_v13 = vsel %vm340_vm1, %v339_v10, -inf }
  0xee   : > { %345 = vmax.xlane.f32.xlu1 %v344_v13 }
  0xef   : > { %v341_v14 = vsel %vm340_vm1, %v338_v12, -inf }
  0xf0   : > { %342 = vmax.xlane.f32.xlu0 %v341_v14 }
  0xff   : > { %646 = vrot.lane.b32.xlu1 %v1875_v4, %s1784_s29 }
 0x15d   : > { %v1617_v16 = vpop.f32.mrf.mxu0 }
 0x15e   : > { %v623_v17 = vmul.f32 0.17677669, %v1617_v16 }
 0x15f   : > { %v613_v18 = vpop.f32.mrf.mxu0 }
 0x160   : > { %v622_v19 = vmul.f32 0.17677669, %v613_v18  ;;  %v627_v20 = vsel %vm340_vm1, %v623_v17, -inf }
 0x161   : > { %628 = vmax.xlane.f32.xlu0 %v627_v20 }
 0x162   : > { %v624_v21 = vsel %vm340_vm1, %v622_v19, -inf }
 0x163   : > { %625 = vmax.xlane.f32.xlu1 %v624_v21 }
 0x174   : > { %828 = vrot.lane.b32.xlu1 %v1843_v0, %s1785_s30 }
 0x177   : > { %v346_v22 = vpop.xlane.xlu1 %345 }
 0x178   : > { %v348_v23 = vsub.f32 %v339_v10, %v346_v22  ;;  %826 = vrot.lane.b32.xlu1 %v1846_v1, %s1785_s30 }
 0x179   : > { %v343_v24 = vpop.xlane.xlu0 %342 }
 0x17a   : > { %v351_v25 = vmul.f32 1.442695, %v348_v23  ;;  %v347_v26 = vsub.f32 %v338_v12, %v343_v24 }
 0x17b   : > { %v647_v36 = vpop.permute.xlu1 %646 }
 0x17c   : > { %1711 = vpow2.f32 %v351_v25  ;;  %v349_v27 = vmul.f32 1.442695, %v347_v26  ;;  %824 = vrot.lane.b32.xlu1 %v1864_v3, %s1785_s30 }
 0x17e   : > { %1713 = vpow2.f32 %v349_v27 }
 0x189   : > { %v1712_v29 = vpop.eup %1711 }
 0x18a   : > { %v356_v30 = vsel %vm340_vm1, %v1712_v29, 0.0 }
 0x18b   : > { %v1714_v31 = vpop.eup %1713  ;;  %357 = vadd.xlane.f32.xlu0 %v356_v30 }
 0x18c   : > { %1597 = vmatprep.mubr.msk.f32.mxu1 %vm340_vm1, %v1714_v31  ;;  %v353_v33 = vsel %vm340_vm1, %v1714_v31, 0.0 }
 0x18d   : > { %1598 = vmatmul.mubr.msk.f32.vlgmr.msra.gmra.mxu1 %vm340_vm1, %v1712_v29 }
 0x18e   : > { %1601 = vmatpush3.msra.mxu1 %v447_v28 }
 0x18f   : > { %354 = vadd.xlane.f32.xlu0 %v353_v33  ;;  %1602 = vmatprep.subr.mxu1 %v446_v32 }
 0x190   : > { %1603 = vmatpush3.msra.mxu1 %v446_v32 }
 0x191   : > { %1604 = vmatprep.subr.mxu1 %v445_v34 }
 0x192   : > { %1605 = vmatpush3.msra.mxu1 %v445_v34  ;;  %v234_v34 = vld [vmem:[%s227_s9 + $0x8] sm:$0xff] }
 0x193   : > { %1606 = vmatprep.subr.mxu1 %v444_v35 }
 0x194   : > { %1607 = vmatpush3.msra.mxu1 %v444_v35  ;;  %v1493_v35 = vld [vmem:[%s1988_s3] ss:$0 sm:$0xff] }
 0x195   : > { %1618 = vmatprep.subr.mxu1 %v647_v36 }
 0x1a5   : > { %644 = vrot.lane.b32.xlu0 %v1888_v15, %s1784_s29 }
 0x1a9   : > { %822 = vrot.lane.b32.xlu0 %v1849_v2, %s1785_s30 }
 0x1ea   : > { %v629_v37 = vpop.xlane.xlu0 %628 }
 0x1eb   : > { %v631_v38 = vsub.f32 %v623_v17, %v629_v37  ;;  %v243_v37 = vadd.f32 %v1493_v35, %v234_v34 }
 0x1ec   : > { %v626_v39 = vpop.xlane.xlu1 %625 }
 0x1ed   : > { %v634_v40 = vmul.f32 1.442695, %v631_v38  ;;  %v630_v41 = vsub.f32 %v622_v19, %v626_v39 }
 0x1ef   : > { %1715 = vpow2.f32 %v634_v40  ;;  %v632_v42 = vmul.f32 1.442695, %v630_v41 }
 0x1f0   : > { %v829_v54 = vpop.permute.xlu1 %828 }
 0x1f1   : > { %1717 = vpow2.f32 %v632_v42 }
 0x1f4   : > { %v827_v58 = vpop.permute.xlu1 %826 }
 0x1f8   : > { %v825_v59 = vpop.permute.xlu1 %824 }
 0x1fc   : > { %v1716_v43 = vpop.eup %1715 }
 0x1fd   : > { %v639_v44 = vsel %vm340_vm1, %v1716_v43, 0.0 }
 0x1fe   : > { %v1718_v45 = vpop.eup %1717  ;;  %640 = vadd.xlane.f32.xlu1 %v639_v44 }
 0x1ff   : > { %v636_v46 = vsel %vm340_vm1, %v1718_v45, 0.0 }
 0x200   : > { %637 = vadd.xlane.f32.xlu0 %v636_v46 }
 0x20f   : > { %1115 = vrot.lane.b32.xlu1 %v1846_v1, %s1786_s5 }
 0x213   : > { %1113 = vrot.lane.b32.xlu1 %v1864_v3, %s1786_s5 }
 0x214   : > { %v358_v47 = vpop.xlane.xlu0 %357 }
 0x216   : > { %1117 = vrot.lane.b32.xlu0 %v1843_v0, %s1786_s5  ;;  %v735_v0 = vld [vmem:[#allocation2 + $0x20] sm:$0xff] }
 0x217   : > { %1631 = vmatprep.subr.mxu0 %v735_v0 }
 0x218   : > { %v355_v48 = vpop.xlane.xlu0 %354  ;;  %1632 = vmatpush3.msra.mxu0 %v735_v0 }
 0x219   : > { %1719 = vrcp.f32 %v355_v48 }
 0x21a   : > { %1111 = vrot.lane.b32.xlu0 %v1849_v2, %s1786_s5  ;;  %1721 = vrcp.f32 %v358_v47 }
 0x21c   : > { %v645_v56 = vpop.permute.xlu0 %644 }
 0x220   : > { %v823_v57 = vpop.permute.xlu0 %822 }
 0x226   : > { %v1720_v50 = vpop.eup %1719 }
 0x227   : > { %v1722_v52 = vpop.eup %1721 }
 0x24d   : > { %v1599_v49 = vpop.f32.mrf.mxu1 }
 0x24e   : > { %v443_v55 = vmul.f32 %v1722_v52, %v1599_v49  ;;  %v1025_v52 = vld [vmem:[#allocation2 + $0x48] sm:$0xff] }
 0x24f   : > { %v431_v51 = vpop.f32.mrf.mxu1 }
 0x250   : > { %v442_v53 = vmul.f32 %v1720_v50, %v431_v51  ;;  %v1027_v50 = vld [vmem:[#allocation2 + $0x58] sm:$0xff]  ;;  %v1026_v51 = vld [vmem:[#allocation2 + $0x50] sm:$0xff] }
 0x252   : > { %1608 = vmatprep.mubr.msk.f32.mxu1 %vm250_vm0, %v442_v53  ;;  %v1024_v53 = vld [vmem:[#allocation2 + $0x40] sm:$0xff] }
 0x253   : > { %1609 = vmatmul.mubr.msk.f32.vlgmr.msra.gmra.mxu1 %vm250_vm0, %v443_v55 }
 0x254   : > { %1619 = vmatpush3.msra.mxu1 %v647_v36  ;;  %1622 = vmatprep.mubr.msk.f32.mxu1 %vm340_vm1, %v1718_v45  ;;  %v233_v36 = vld [vmem:[%s227_s9] sm:$0xff] }
 0x255   : > { %1620 = vmatprep.subr.mxu1 %v645_v56  ;;  %v242_v38 = vadd.f32 %v1493_v35, %v233_v36 }
 0x256   : > { %1621 = vmatpush3.msra.mxu1 %v645_v56 }
 0x257   : > { %1636 = vmatprep.subr.msk.mxu1 %vm250_vm0, %v829_v54  ;;  %1623 = vmatmul.mubr.msk.f32.vlgmr.msra.gmra.mxu1 %vm340_vm1, %v1716_v43 }
 0x258   : > { %1637 = vmatpush3.xpose.msk.msra.mxu1 %vm250_vm0, %v829_v54  ;;  %1640 = vmatprep.mubr.msk.f32.mxu1 %vm250_vm0, %v823_v57 }
 0x259   : > { %1638 = vmatprep.subr.msk.mxu1 %vm250_vm0, %v827_v58 }
 0x25c   : > { %1639 = vmatpush3.xpose.msk.msra.mxu1 %vm250_vm0, %v827_v58 }
 0x25f   : > { %1641 = vmatmul.mubr.msk.f32.vlgmr.msra.gmra.mxu1 %vm250_vm0, %v825_v59 }
 0x287   : > { %v641_v2 = vpop.xlane.xlu1 %640 }
 0x289   : > { %v638_v61 = vpop.xlane.xlu0 %637 }
 0x28a   : > { %1723 = vrcp.f32 %v638_v61 }
 0x28b   : > { %1725 = vrcp.f32 %v641_v2  ;;  %v1116_v13 = vpop.permute.xlu1 %1115 }
 0x28d   : > { %v1118_v1 = vpop.permute.xlu0 %1117 }
 0x28e   : > { %1661 = vmatprep.subr.msk.mxu0 %vm250_vm0, %v1118_v1 }
 0x28f   : > { %v1114_v20 = vpop.permute.xlu1 %1113 }
 0x291   : > { %v1112_v12 = vpop.permute.xlu0 %1111 }
 0x297   : > { %v1724_v7 = vpop.eup %1723 }
 0x298   : > { %v1726_v9 = vpop.eup %1725 }
 0x313   : > { %v1610_v3 = vpop.f32.mrf.mxu1 }
 0x314   : > { %v530_v39 = vadd.f32 %v1610_v3, %v243_v37 }
 0x315   : > { %v520_v5 = vpop.f32.mrf.mxu1 }
 0x316   : > { %v529_v41 = vadd.f32 %v520_v5, %v242_v38 }
 0x317   : > { %v1624_v6 = vpop.f32.mrf.mxu1 }
 0x318   : > { %v734_v11 = vmul.f32 %v1726_v9, %v1624_v6 }
 0x319   : > { %v722_v8 = vpop.f32.mrf.mxu1 }
 0x31a   : > { %v733_v10 = vmul.f32 %v1724_v7, %v722_v8 }
 0x31c   : > { %1633 = vmatprep.mubr.msk.f32.mxu0 %vm250_vm0, %v733_v10  ;;  %v1316_v10 = vld [vmem:[#allocation2 + $0x78] sm:$0xff] }
 0x31d   : > { %1634 = vmatmul.mubr.msk.f32.vlgmr.msra.gmra.mxu0 %vm250_vm0, %v734_v11  ;;  %v1315_v11 = vld [vmem:[#allocation2 + $0x70] sm:$0xff] }
 0x31e   : > { %1662 = vmatpush3.xpose.msk.msra.mxu0 %vm250_vm0, %v1118_v1  ;;  %1665 = vmatprep.mubr.msk.f32.mxu0 %vm250_vm0, %v1112_v12  ;;  %v1314_v12 = vld [vmem:[#allocation2 + $0x68] sm:$0xff] }
 0x31f   : > { %v1642_v14 = vpop.f32.mrf.mxu1  ;;  %1663 = vmatprep.subr.msk.mxu0 %vm250_vm0, %v1116_v13 }
 0x320   : > { %v914_v16 = vmul.f32 0.17677669, %v1642_v14 }
 0x321   : > { %v904_v17 = vpop.f32.mrf.mxu1 }
 0x322   : > { %v913_v18 = vmul.f32 0.17677669, %v904_v17  ;;  %1664 = vmatpush3.xpose.msk.msra.mxu0 %vm250_vm0, %v1116_v13  ;;  %v918_v19 = vsel %vm340_vm1, %v914_v16, -inf  ;;  %v1313_v13 = vld [vmem:[#allocation2 + $0x60] sm:$0xff] }
 0x323   : > { %919 = vmax.xlane.f32.xlu1 %v918_v19  ;;  %1675 = vmatprep.subr.mxu0 %v1316_v10 }
 0x324   : > { %v915_v21 = vsel %vm340_vm1, %v913_v18, -inf }
 0x325   : > { %916 = vmax.xlane.f32.xlu0 %v915_v21  ;;  %1666 = vmatmul.mubr.msk.f32.vlgmr.msra.gmra.mxu0 %vm250_vm0, %v1114_v20 }
 0x326   : > { %1676 = vmatpush3.msra.mxu0 %v1316_v10 }
 0x327   : > { %1677 = vmatprep.subr.mxu0 %v1315_v11 }
 0x328   : > { %1678 = vmatpush3.msra.mxu0 %v1315_v11 }
 0x329   : > { %1679 = vmatprep.subr.mxu0 %v1314_v12 }
 0x32a   : > { %1680 = vmatpush3.msra.mxu0 %v1314_v12 }
 0x32b   : > { %1681 = vmatprep.subr.mxu0 %v1313_v13 }
 0x32c   : > { %1682 = vmatpush3.msra.mxu0 %v1313_v13 }
 0x334   : > { %933 = vrot.lane.b32.xlu1 %v1888_v15, %s1785_s30 }
 0x33b   : > { %935 = vrot.lane.b32.xlu0 %v1875_v4, %s1785_s30 }
 0x3ac   : > { %v920_v22 = vpop.xlane.xlu1 %919 }
 0x3ad   : > { %v922_v23 = vsub.f32 %v914_v16, %v920_v22 }
 0x3ae   : > { %v917_v24 = vpop.xlane.xlu0 %916 }
 0x3af   : > { %v925_v25 = vmul.f32 1.442695, %v922_v23  ;;  %v921_v26 = vsub.f32 %v913_v18, %v917_v24 }
 0x3b0   : > { %v934_v29 = vpop.permute.xlu1 %933 }
 0x3b1   : > { %1727 = vpow2.f32 %v925_v25  ;;  %v923_v27 = vmul.f32 1.442695, %v921_v26 }
 0x3b2   : > { %v936_v28 = vpop.permute.xlu0 %935 }
 0x3b3   : > { %1729 = vpow2.f32 %v923_v27  ;;  %1643 = vmatprep.subr.mxu1 %v936_v28 }
 0x3b4   : > { %1644 = vmatpush3.msra.mxu1 %v936_v28 }
 0x3b5   : > { %1645 = vmatprep.subr.mxu1 %v934_v29 }
 0x3b6   : > { %1646 = vmatpush3.msra.mxu1 %v934_v29 }
 0x3b7   : > { %1650 = vmatprep.subr.mxu1 %v1027_v50 }
 0x3be   : > { %v1728_v30 = vpop.eup %1727 }
 0x3bf   : > { %v930_v31 = vsel %vm340_vm1, %v1728_v30, 0.0 }
 0x3c0   : > { %v1730_v32 = vpop.eup %1729  ;;  %931 = vadd.xlane.f32.xlu1 %v930_v31 }
 0x3c1   : > { %1647 = vmatprep.mubr.msk.f32.mxu1 %vm340_vm1, %v1730_v32  ;;  %v927_v33 = vsel %vm340_vm1, %v1730_v32, 0.0 }
 0x3c2   : > { %928 = vadd.xlane.f32.xlu0 %v927_v33  ;;  %1648 = vmatmul.mubr.msk.f32.vlgmr.msra.gmra.mxu1 %vm340_vm1, %v1728_v30 }
 0x3c3   : > { %1651 = vmatpush3.msra.mxu1 %v1027_v50 }
 0x3c4   : > { %1652 = vmatprep.subr.mxu1 %v1026_v51 }
 0x3c5   : > { %1653 = vmatpush3.msra.mxu1 %v1026_v51 }
 0x3c6   : > { %1654 = vmatprep.subr.mxu1 %v1025_v52 }
 0x3c7   : > { %1655 = vmatpush3.msra.mxu1 %v1025_v52 }
 0x3c8   : > { %1656 = vmatprep.subr.mxu1 %v1024_v53 }
 0x3c9   : > { %1657 = vmatpush3.msra.mxu1 %v1024_v53 }
 0x3d1   : > { %1224 = vrot.lane.b32.xlu1 %v1875_v4, %s1786_s5 }
 0x3dd   : > { %v1635_v40 = vpop.f32.mrf.mxu0 }
 0x3de   : > { %v1959_v42 = vadd.f32 %v1635_v40, %v530_v39 }
 0x3df   : > { %v811_v43 = vpop.f32.mrf.mxu0 }
 0x3e0   : > { %v1961_v4 = vadd.f32 %v811_v43, %v529_v41 }
 0x3e5   : > { %v1667_v44 = vpop.f32.mrf.mxu0 }
 0x3e6   : > { %v1203_v45 = vmul.f32 0.17677669, %v1667_v44 }
 0x3e7   : > { %v1193_v46 = vpop.f32.mrf.mxu0 }
 0x3e8   : > { %v1202_v47 = vmul.f32 0.17677669, %v1193_v46  ;;  %v1207_v48 = vsel %vm340_vm1, %v1203_v45, -inf }
 0x3e9   : > { %1208 = vmax.xlane.f32.xlu0 %v1207_v48 }
 0x3ea   : > { %v1204_v49 = vsel %vm340_vm1, %v1202_v47, -inf }
 0x3ed   : > { %1205 = vmax.xlane.f32.xlu0 %v1204_v49 }
 0x403   : > { %1222 = vrot.lane.b32.xlu0 %v1888_v15, %s1786_s5 }
 0x449   : > { %v932_v54 = vpop.xlane.xlu1 %931 }
 0x44b   : > { %v929_v56 = vpop.xlane.xlu0 %928 }
 0x44c   : > { %1731 = vrcp.f32 %v929_v56 }
 0x44d   : > { %v1225_v55 = vpop.permute.xlu1 %1224 }
 0x44e   : > { %1668 = vmatprep.subr.mxu1 %v1225_v55 }
 0x459   : > { %v1732_v63 = vpop.eup %1731 }
 0x472   : > { %v1209_v57 = vpop.xlane.xlu0 %1208 }
 0x473   : > { %v1211_v58 = vsub.f32 %v1203_v45, %v1209_v57 }
 0x475   : > { %v1214_v59 = vmul.f32 1.442695, %v1211_v58 }
 0x476   : > { %v1206_v60 = vpop.xlane.xlu0 %1205 }
 0x477   : > { %1733 = vpow2.f32 %v1214_v59  ;;  %v1210_v61 = vsub.f32 %v1202_v47, %v1206_v60 }
 0x478   : > { %1735 = vrcp.f32 %v932_v54 }
 0x479   : > { %v1212_v62 = vmul.f32 1.442695, %v1210_v61 }
 0x47a   : > { %v1223_v7 = vpop.permute.xlu0 %1222 }
 0x47b   : > { %1737 = vpow2.f32 %v1212_v62 }
 0x482   : > { %v1649_v15 = vpop.f32.mrf.mxu1 }
 0x484   : > { %v1734_v0 = vpop.eup %1733  ;;  %v1011_v1 = vpop.f32.mrf.mxu1 }
 0x485   : > { %v1736_v2 = vpop.eup %1735  ;;  %v1022_v3 = vmul.f32 %v1732_v63, %v1011_v1  ;;  %v1219_v5 = vsel %vm340_vm1, %v1734_v0, 0.0 }
 0x486   : > { %v1023_v6 = vmul.f32 %v1736_v2, %v1649_v15  ;;  %1220 = vadd.xlane.f32.xlu0 %v1219_v5 }
 0x487   : > { %1658 = vmatprep.mubr.msk.f32.mxu1 %vm250_vm0, %v1022_v3 }
 0x488   : > { %v1738_v8 = vpop.eup %1737  ;;  %1659 = vmatmul.mubr.msk.f32.vlgmr.msra.gmra.mxu1 %vm250_vm0, %v1023_v6 }
 0x489   : > { %1669 = vmatpush3.msra.mxu1 %v1225_v55  ;;  %1672 = vmatprep.mubr.msk.f32.mxu1 %vm340_vm1, %v1738_v8  ;;  %v1216_v9 = vsel %vm340_vm1, %v1738_v8, 0.0 }
 0x48a   : > { %1670 = vmatprep.subr.mxu1 %v1223_v7  ;;  %1217 = vadd.xlane.f32.xlu1 %v1216_v9 }
 0x48b   : > { %1671 = vmatpush3.msra.mxu1 %v1223_v7 }
 0x48c   : > { %1673 = vmatmul.mubr.msk.f32.vlgmr.msra.gmra.mxu1 %vm340_vm1, %v1734_v0 }
 0x50f   : > { %v1221_v16 = vpop.xlane.xlu0 %1220 }
 0x513   : > { %v1218_v14 = vpop.xlane.xlu1 %1217 }
 0x514   : > { %1739 = vrcp.f32 %v1218_v14 }
 0x515   : > { %1741 = vrcp.f32 %v1221_v16 }
 0x521   : > { %v1740_v22 = vpop.eup %1739 }
 0x522   : > { %v1742_v24 = vpop.eup %1741 }
 0x548   : > { %v1660_v17 = vpop.f32.mrf.mxu1 }
 0x549   : > { %v1110_v18 = vadd.f32 %v1660_v17, %v1959_v42 }
 0x54a   : > { %v1100_v19 = vpop.f32.mrf.mxu1 }
 0x54b   : > { %v1109_v20 = vadd.f32 %v1100_v19, %v1961_v4 }
 0x54c   : > { %v1674_v21 = vpop.f32.mrf.mxu1 }
 0x54d   : > { %v1312_v26 = vmul.f32 %v1742_v24, %v1674_v21 }
 0x54e   : > { %v1300_v23 = vpop.f32.mrf.mxu1 }
 0x54f   : > { %v1311_v25 = vmul.f32 %v1740_v22, %v1300_v23 }
 0x551   : > { %1683 = vmatprep.mubr.msk.f32.mxu0 %vm250_vm0, %v1311_v25 }
 0x552   : > { %1684 = vmatmul.mubr.msk.f32.vlgmr.msra.gmra.mxu0 %vm250_vm0, %v1312_v26 }
 0x612   : > { %v1685_v27 = vpop.f32.mrf.mxu0 }
 0x613   : > { %v1399_v28 = vadd.f32 %v1685_v27, %v1110_v18 }
 0x614   : > { %v1389_v29 = vpop.f32.mrf.mxu0 }
 0x615   : > { %1401 = vst [vmem:[%s232_s14 + $0x8] sm:$0xff] %v1399_v28  ;;  %v1398_v30 = vadd.f32 %v1389_v29, %v1109_v20 }
 0x617   : > { %1400 = vst [vmem:[%s232_s14] sm:$0xff] %v1398_v30 }
 0x618 PF: > { %s15_s15 = sadd.s32 1, %s1779_s15  }
 0x619   : > { %p12_p1 = scmp.ge.s32.totalorder %s15_s15, 4  }
 0x61b   :  { %14 = sbr.rel (!%p12_p1) target bundleno = 1 (0x1), region = 74 }
 0x620   :  { %1423 = vsyncpa [#allocation3], 1 }
 0x621   :  { %1425 = vsyncpa [#allocation3 + $0x1], 1 }

// kernel: transformer_encoder_forward.7
= control target key start
LH: loop header
LB: loop body
LE: loop exit
PB: predicated region body
PF: predicated region fallthrough
CT: control target
= control target key end

     0   :  { %10 = vsyncpa [#allocation3], 0  ;;  %s639_s0 = inlined_call_operand.vmem [shape: f32[32,128], index: 0, kind: input, shape index: {}]   ;;  %s640_s1 = inlined_call_operand.hbm [shape: f32[1,128], index: 1, kind: input, shape index: {}]   ;;  %s641_s2 = inlined_call_operand.hbm [shape: f32[1,128], index: 2, kind: input, shape index: {}]   ;;  %s642_s3 = inlined_call_operand.hbm [shape: f32[128,384], index: 3, kind: input, shape index: {}]   ;;  %s643_s4 = inlined_call_operand.vmem [shape: f32[1,384], index: 4, kind: input, shape index: {}]   ;;  %s644_s5 = inlined_call_operand.vmem [shape: f32[32,384], index: 5, kind: output, shape index: {}]  }
   0x1   :  { %11 = vsyncpa [#allocation5], 0  ;;  %s523_s18 = smov [#allocation4]   ;;  %s524_s20 = smov [#allocation2]  }
   0x2   :  { %s30_s19 = sshll.u32 %s523_s18, 4  ;;  %s20_s21 = sshll.u32 %s524_s20, 4  ;;  %s31_s19 = int_to_ptr.vmem [resolvable:$true] %s30_s19  ;;  %s21_s21 = int_to_ptr.vmem [resolvable:$true] %s20_s21 }
   0x3   :  { %s467_s22 = scalar_lea.vmem %s31_s19, 16  ;;  %s471_s23 = scalar_lea.vmem %s31_s19, 32 }
   0x4   :  { %p468_p0 = scmp.ne.s32.totalorder %s31_s19, %s467_s22  ;;  %p472_p1 = scmp.lt.s32.totalorder %s31_s19, %s31_s19 }
   0x5   :  { %p473_p2 = scmp.lt.s32.totalorder %s471_s23, %s467_s22 }
   0x7   :  { %p474_p3 = por %p473_p2, %p472_p1 }
   0x9   :  { %p475_p4 = pnand %p474_p3, %p468_p0 }
   0xb   :  { %478 = shalt.err (!%p475_p4)
}
   0xc   :  { %33 = dma.hbm_to_vmem [thread:$0]  %s641_s2, 16, %s31_s19, [#allocation5]  }
   0xd   :  { %s487_s26 = scalar_lea.vmem %s21_s21, 16  ;;  %s491_s27 = scalar_lea.vmem %s21_s21, 32 }
   0xe   :  { %p488_p5 = scmp.ne.s32.totalorder %s21_s21, %s487_s26  ;;  %p492_p6 = scmp.lt.s32.totalorder %s21_s21, %s21_s21 }
   0xf   :  { %p493_p7 = scmp.lt.s32.totalorder %s491_s27, %s487_s26 }
  0x11   :  { %p494_p8 = por %p493_p7, %p492_p6 }
  0x13   :  { %p495_p9 = pnand %p494_p8, %p488_p5 }
  0x15   :  { %498 = shalt.err (!%p495_p9)
}
  0x16   :  { %23 = dma.hbm_to_vmem [thread:$0]  %s640_s1, 16, %s21_s21, [#allocation3]  }
  0x17   :  { %s525_s30 = smov [#allocation6]  }
  0x18   :  { %s39_s6 = sshll.u32 %s525_s30, 4  ;;  %s40_s6 = int_to_ptr.vmem [resolvable:$true] %s39_s6 }
  0x19   :  { %s507_s7 = scalar_lea.vmem %s40_s6, 6144  ;;  %p512_p11 = scmp.lt.s32.totalorder %s40_s6, %s40_s6 }
  0x1a   :  { %p508_p10 = scmp.ne.s32.totalorder %s40_s6, %s507_s7  ;;  %p513_p12 = scmp.lt.s32.totalorder %s507_s7, %s507_s7 }
  0x1c   :  { %p514_p13 = por %p513_p12, %p512_p11 }
  0x1e   :  { %p515_p0 = pnand %p514_p13, %p508_p10 }
  0x20   :  { %518 = shalt.err (!%p515_p0)
}
  0x21   :  { %s526_s2 = smov 384   ;;  %s527_s8 = smov 24  }
  0x22   :  { %45 = dma.hbm_to_vmem [thread:$0]  %s642_s3, 6144, %s40_s6, [#allocation5], %s526_s2, %s526_s2, %s527_s8  }
  0x23   :  { %519 = dma.done.wait [#allocation3], 16  }
  0x24   :  { %520 = vsyncadd [#allocation3], 4294967280 }
  0x25   :  { %521 = dma.done.wait [#allocation5], 6160  }
  0x26   :  { %522 = vsyncadd [#allocation5], 4294961136  ;;  %v57_v0 = vld [vmem:[%s639_s0] sm:$0xff]  ;;  %v59_v1 = vld [vmem:[%s639_s0 + $0x10] sm:$0xff] }
  0x27   :  { %61 = vadd.xlane.f32.xlu0 %v57_v0  ;;  %65 = vadd.xlane.f32.xlu1 %v59_v1  ;;  %v58_v2 = vld [vmem:[%s639_s0 + $0x8] sm:$0xff]  ;;  %v60_v3 = vld [vmem:[%s639_s0 + $0x18] sm:$0xff] }
  0x28   :  { %v174_v4 = vld [vmem:[#allocation6 + $0x170] sm:$0xff]  ;;  %v173_v5 = vld [vmem:[#allocation6 + $0x168] sm:$0xff]  ;;  %v171_v6 = vld [vmem:[#allocation6 + $0x158] sm:$0xff] }
  0x29   :  { %193 = vmatprep.subr.mxu0 %v174_v4  ;;  %v170_v7 = vld [vmem:[#allocation6 + $0x150] sm:$0xff]  ;;  %v175_v8 = vld [vmem:[#allocation6 + $0x178] sm:$0xff]  ;;  %v168_v9 = vld [vmem:[#allocation6 + $0x140] sm:$0xff] }
  0x2a   :  { %194 = vmatpush1.msra.mxu0 %v173_v5  ;;  %407 = vmatprep.subr.mxu1 %v175_v8  ;;  %v172_v10 = vld [vmem:[#allocation6 + $0x160] sm:$0xff]  ;;  %v167_v11 = vld [vmem:[#allocation6 + $0x138] sm:$0xff]  ;;  %v165_v12 = vld [vmem:[#allocation6 + $0x128] sm:$0xff] }
  0x2b   :  { %63 = vadd.xlane.f32.xlu0 %v58_v2  ;;  %67 = vadd.xlane.f32.xlu1 %v60_v3  ;;  %v164_v13 = vld [vmem:[#allocation6 + $0x120] sm:$0xff]  ;;  %v162_v30 = vld [vmem:[#allocation6 + $0x110] sm:$0xff]  ;;  %v169_v31 = vld [vmem:[#allocation6 + $0x148] sm:$0xff] }
  0x2c   :  { %195 = vmatprep.subr.mxu0 %v171_v6  ;;  %408 = vmatpush3.msra.mxu1 %v175_v8  ;;  %v161_v32 = vld [vmem:[#allocation6 + $0x108] sm:$0xff]  ;;  %v159_v33 = vld [vmem:[#allocation6 + $0xf8] sm:$0xff]  ;;  %v166_v34 = vld [vmem:[#allocation6 + $0x130] sm:$0xff] }
  0x2d   :  { %196 = vmatpush1.msra.mxu0 %v170_v7  ;;  %409 = vmatprep.subr.mxu1 %v172_v10  ;;  %v158_v35 = vld [vmem:[#allocation6 + $0xf0] sm:$0xff]  ;;  %v156_v36 = vld [vmem:[#allocation6 + $0xe0] sm:$0xff]  ;;  %v163_v37 = vld [vmem:[#allocation6 + $0x118] sm:$0xff] }
  0x2e   :  { %197 = vmatprep.subr.mxu0 %v168_v9  ;;  %410 = vmatpush3.msra.mxu1 %v172_v10  ;;  %v155_v38 = vld [vmem:[#allocation6 + $0xd8] sm:$0xff]  ;;  %v153_v39 = vld [vmem:[#allocation6 + $0xc8] sm:$0xff]  ;;  %v160_v40 = vld [vmem:[#allocation6 + $0x100] sm:$0xff] }
  0x2f   :  { %198 = vmatpush1.msra.mxu0 %v167_v11  ;;  %411 = vmatprep.subr.mxu1 %v169_v31  ;;  %v152_v41 = vld [vmem:[#allocation6 + $0xc0] sm:$0xff]  ;;  %v150_v42 = vld [vmem:[#allocation6 + $0xb0] sm:$0xff]  ;;  %v157_v43 = vld [vmem:[#allocation6 + $0xe8] sm:$0xff] }
  0x30   :  { %199 = vmatprep.subr.mxu0 %v165_v12  ;;  %412 = vmatpush3.msra.mxu1 %v169_v31  ;;  %v149_v44 = vld [vmem:[#allocation6 + $0xa8] sm:$0xff]  ;;  %v147_v45 = vld [vmem:[#allocation6 + $0x98] sm:$0xff]  ;;  %v154_v46 = vld [vmem:[#allocation6 + $0xd0] sm:$0xff] }
  0x31   :  { %200 = vmatpush1.msra.mxu0 %v164_v13  ;;  %413 = vmatprep.subr.mxu1 %v166_v34  ;;  %v146_v47 = vld [vmem:[#allocation6 + $0x90] sm:$0xff]  ;;  %v144_v48 = vld [vmem:[#allocation6 + $0x80] sm:$0xff]  ;;  %v151_v49 = vld [vmem:[#allocation6 + $0xb8] sm:$0xff] }
  0x32   :  { %201 = vmatprep.subr.mxu0 %v162_v30  ;;  %414 = vmatpush3.msra.mxu1 %v166_v34  ;;  %v143_v50 = vld [vmem:[#allocation6 + $0x78] sm:$0xff]  ;;  %v141_v51 = vld [vmem:[#allocation6 + $0x68] sm:$0xff]  ;;  %v148_v52 = vld [vmem:[#allocation6 + $0xa0] sm:$0xff] }
  0x33   :  { %202 = vmatpush1.msra.mxu0 %v161_v32  ;;  %415 = vmatprep.subr.mxu1 %v163_v37  ;;  %v140_v53 = vld [vmem:[#allocation6 + $0x60] sm:$0xff]  ;;  %v138_v54 = vld [vmem:[#allocation6 + $0x50] sm:$0xff]  ;;  %v145_v55 = vld [vmem:[#allocation6 + $0x88] sm:$0xff] }
  0x34   :  { %203 = vmatprep.subr.mxu0 %v159_v33  ;;  %416 = vmatpush3.msra.mxu1 %v163_v37  ;;  %v137_v56 = vld [vmem:[#allocation6 + $0x48] sm:$0xff]  ;;  %v135_v57 = vld [vmem:[#allocation6 + $0x38] sm:$0xff]  ;;  %v142_v58 = vld [vmem:[#allocation6 + $0x70] sm:$0xff] }
  0x35   :  { %204 = vmatpush1.msra.mxu0 %v158_v35  ;;  %417 = vmatprep.subr.mxu1 %v160_v40  ;;  %v134_v59 = vld [vmem:[#allocation6 + $0x30] sm:$0xff]  ;;  %v132_v60 = vld [vmem:[#allocation6 + $0x20] sm:$0xff]  ;;  %v139_v61 = vld [vmem:[#allocation6 + $0x58] sm:$0xff] }
  0x36   :  { %205 = vmatprep.subr.mxu0 %v156_v36  ;;  %418 = vmatpush3.msra.mxu1 %v160_v40  ;;  %v131_v62 = vld [vmem:[#allocation6 + $0x18] sm:$0xff]  ;;  %v129_v63 = vld [vmem:[#allocation6 + $0x8] sm:$0xff]  ;;  %v130_v4 = vld [vmem:[#allocation6 + $0x10] sm:$0xff] }
  0x37   :  { %206 = vmatpush1.msra.mxu0 %v155_v38  ;;  %419 = vmatprep.subr.mxu1 %v157_v43 }
  0x38   :  { %207 = vmatprep.subr.mxu0 %v153_v39  ;;  %420 = vmatpush3.msra.mxu1 %v157_v43  ;;  %v176_v39 = vld [vmem:[%s643_s4] sm:$0x7] }
  0x39   :  { %208 = vmatpush1.msra.mxu0 %v152_v41  ;;  %421 = vmatprep.subr.mxu1 %v154_v46 }
  0x3a   :  { %209 = vmatprep.subr.mxu0 %v150_v42  ;;  %422 = vmatpush3.msra.mxu1 %v154_v46 }
  0x3b   :  { %210 = vmatpush1.msra.mxu0 %v149_v44  ;;  %423 = vmatprep.subr.mxu1 %v151_v49 }
  0x3c   :  { %211 = vmatprep.subr.mxu0 %v147_v45  ;;  %424 = vmatpush3.msra.mxu1 %v151_v49 }
  0x3d   :  { %212 = vmatpush1.msra.mxu0 %v146_v47  ;;  %425 = vmatprep.subr.mxu1 %v148_v52 }
  0x3e   :  { %213 = vmatprep.subr.mxu0 %v144_v48  ;;  %426 = vmatpush3.msra.mxu1 %v148_v52 }
  0x3f   :  { %214 = vmatpush1.msra.mxu0 %v143_v50  ;;  %427 = vmatprep.subr.mxu1 %v145_v55 }
  0x40   :  { %215 = vmatprep.subr.mxu0 %v141_v51  ;;  %428 = vmatpush3.msra.mxu1 %v145_v55 }
  0x41   :  { %216 = vmatpush1.msra.mxu0 %v140_v53  ;;  %429 = vmatprep.subr.mxu1 %v142_v58 }
  0x42   :  { %217 = vmatprep.subr.mxu0 %v138_v54  ;;  %430 = vmatpush3.msra.mxu1 %v142_v58 }
  0x43   :  { %218 = vmatpush1.msra.mxu0 %v137_v56  ;;  %431 = vmatprep.subr.mxu1 %v139_v61 }
  0x44   :  { %219 = vmatprep.subr.mxu0 %v135_v57  ;;  %432 = vmatpush3.msra.mxu1 %v139_v61 }
  0x45   :  { %220 = vmatpush1.msra.mxu0 %v134_v59 }
  0x46   :  { %221 = vmatprep.subr.mxu0 %v132_v60 }
  0x47   :  { %222 = vmatpush1.msra.mxu0 %v131_v62 }
  0x48   :  { %223 = vmatprep.subr.mxu0 %v129_v63 }
  0xb0   :  { %v62_v14 = vpop.xlane.xlu0 %61  ;;  %v66_v15 = vpop.xlane.xlu1 %65 }
  0xb1   :  { %v70_v16 = vmul.f32 0.0078125, %v62_v14  ;;  %v72_v17 = vmul.f32 0.0078125, %v66_v15 }
  0xb3   :  { %v580_v18 = vsub.f32 %v57_v0, %v70_v16  ;;  %v582_v19 = vsub.f32 %v59_v1, %v72_v17  ;;  %v136_v0 = vld [vmem:[#allocation6 + $0x40] sm:$0xff] }
  0xb4   :  { %v64_v20 = vpop.xlane.xlu0 %63  ;;  %v68_v21 = vpop.xlane.xlu1 %67  ;;  %v128_v1 = vld [vmem:[#allocation6] sm:$0xff]  ;;  %433 = vmatprep.subr.mxu1 %v136_v0 }
  0xb5   :  { %v71_v22 = vmul.f32 0.0078125, %v64_v20  ;;  %v78_v23 = vmul.f32 %v580_v18, %v580_v18  ;;  %v73_v24 = vmul.f32 0.0078125, %v68_v21  ;;  %v80_v27 = vmul.f32 %v582_v19, %v582_v19  ;;  %224 = vmatpush1.msra.mxu0 %v128_v1  ;;  %434 = vmatpush3.msra.mxu1 %v136_v0  ;;  %v385_v20 = vld [vmem:[#allocation2] ss:$0 sm:$0xff] }
  0xb7   :  { %v586_v25 = vsub.f32 %v58_v2, %v71_v22  ;;  %82 = vadd.xlane.f32.xlu0 %v78_v23  ;;  %v588_v26 = vsub.f32 %v60_v3, %v73_v24  ;;  %v528_v2 = vmov 0.0   ;;  %v133_v3 = vld [vmem:[#allocation6 + $0x28] sm:$0xff]  ;;  %v386_v22 = vld [vmem:[#allocation4] ss:$0 sm:$0xff] }
  0xb8   :  { %257 = vmatprep.mubr.f32.mxu0 %v528_v2  ;;  %435 = vmatprep.subr.mxu1 %v133_v3 }
  0xb9   :  { %v79_v28 = vmul.f32 %v586_v25, %v586_v25  ;;  %v81_v29 = vmul.f32 %v588_v26, %v588_v26  ;;  %436 = vmatpush3.msra.mxu1 %v133_v3 }
  0xba   :  { %437 = vmatprep.subr.mxu1 %v130_v4 }
  0xbb   :  { %86 = vadd.xlane.f32.xlu0 %v80_v27  ;;  %84 = vadd.xlane.f32.xlu1 %v79_v28 }
  0xbc   :  { %438 = vmatpush3.msra.mxu1 %v130_v4 }
  0xbf   :  { %88 = vadd.xlane.f32.xlu1 %v81_v29 }
 0x140   :  { %v83_v5 = vpop.xlane.xlu0 %82 }
 0x141   :  { %v90_v6 = vmul.f32 0.0078125, %v83_v5 }
 0x143   :  { %v94_v7 = vadd.f32 1e-05, %v90_v6 }
 0x144   :  { %v85_v8 = vpop.xlane.xlu1 %84  ;;  %v87_v9 = vpop.xlane.xlu0 %86 }
 0x145   :  { %451 = vrsqrt.f32 %v94_v7  ;;  %v91_v10 = vmul.f32 0.0078125, %v85_v8  ;;  %v92_v11 = vmul.f32 0.0078125, %v87_v9 }
 0x147   :  { %v95_v12 = vadd.f32 1e-05, %v91_v10  ;;  %v96_v13 = vadd.f32 1e-05, %v92_v11 }
 0x148   :  { %v89_v14 = vpop.xlane.xlu1 %88 }
 0x149   :  { %453 = vrsqrt.f32 %v95_v12  ;;  %v93_v15 = vmul.f32 0.0078125, %v89_v14 }
 0x14a   :  { %455 = vrsqrt.f32 %v96_v13 }
 0x14b   :  { %v97_v16 = vadd.f32 1e-05, %v93_v15 }
 0x14d   :  { %457 = vrsqrt.f32 %v97_v16 }
 0x152   :  { %v452_v17 = vpop.eup %451 }
 0x153   :  { %v102_v21 = vmul.f32 %v452_v17, %v580_v18 }
 0x155   :  { %v113_v23 = vmul.f32 %v385_v20, %v102_v21 }
 0x156   :  { %v454_v24 = vpop.eup %453 }
 0x157   :  { %v456_v27 = vpop.eup %455  ;;  %v124_v28 = vadd.f32 %v386_v22, %v113_v23  ;;  %v103_v29 = vmul.f32 %v454_v24, %v586_v25 }
 0x158   :  { %v104_v30 = vmul.f32 %v456_v27, %v582_v19  ;;  %v178_v19 = vlaneseq }
 0x159   :  { %258 = vmatmul.mubr.f32.vlgmr.msra.gmra.mxu0 %v124_v28  ;;  %439 = vmatprep.mubr.f32.mxu1 %v124_v28  ;;  %v114_v31 = vmul.f32 %v385_v20, %v103_v29 }
 0x15a   :  { %v458_v32 = vpop.eup %457  ;;  %263 = vmatprep.mubr.f32.mxu0 %v528_v2  ;;  %v115_v33 = vmul.f32 %v385_v20, %v104_v30  ;;  %v179_v25 = vshrl.u32 %v178_v19, 7 }
 0x15b   :  { %v125_v34 = vadd.f32 %v386_v22, %v114_v31  ;;  %v105_v35 = vmul.f32 %v458_v32, %v588_v26 }
 0x15c   :  { %v126_v36 = vadd.f32 %v386_v22, %v115_v33  ;;  %v180_v38 = vsub.s32 0, %v179_v25  ;;  %v184_v40 = vsub.s32 1, %v179_v25  ;;  %v188_v41 = vsub.s32 2, %v179_v25 }
 0x15d   :  { %264 = vmatmul.mubr.f32.gmra.mxu0 %v125_v34  ;;  %440 = vmatmul.mubr.f32.vlgmr.msra.gmra.mxu1 %v125_v34  ;;  %v116_v18 = vmul.f32 %v385_v20, %v105_v35 }
 0x15e   :  { %442 = vmatprep.mubr.f32.mxu1 %v126_v36  ;;  %269 = vmatprep.mubr.f32.mxu0 %v528_v2  ;;  %v181_v26 = vrot.slane %v176_v39, %v180_v38  ;;  %v185_v42 = vrot.slane %v176_v39, %v184_v40  ;;  %v189_v45 = vrot.slane %v176_v39, %v188_v41 }
 0x15f   :  { %v127_v37 = vadd.f32 %v386_v22, %v116_v18 }
 0x161   :  { %270 = vmatmul.mubr.f32.gmra.mxu0 %v126_v36  ;;  %443 = vmatmul.mubr.f32.gmra.mxu1 %v127_v37 }
 0x162   :  { %275 = vmatprep.mubr.f32.mxu0 %v528_v2 }
 0x165   :  { %276 = vmatmul.mubr.f32.gmra.mxu0 %v127_v37 }
 0x219   :  { %v259_v43 = vpop.f32.mrf.mxu0 }
 0x21a   :  { %v260_v44 = vadd.f32 %v259_v43, %v181_v26 }
 0x21b   :  { %v261_v46 = vpop.f32.mrf.mxu0 }
 0x21c   :  { %367 = vst [vmem:[%s644_s5] sm:$0xff] %v260_v44  ;;  %v262_v47 = vadd.f32 %v261_v46, %v185_v42 }
 0x21d   :  { %v265_v48 = vpop.f32.mrf.mxu0  ;;  %v441_v49 = vpop.f32.mrf.mxu1 }
 0x21e   :  { %368 = vst [vmem:[%s644_s5 + $0x8] sm:$0xff] %v262_v47  ;;  %v266_v50 = vadd.f32 %v265_v48, %v181_v26  ;;  %v354_v51 = vadd.f32 %v441_v49, %v189_v45 }
 0x21f   :  { %v267_v52 = vpop.f32.mrf.mxu0  ;;  %v348_v53 = vpop.f32.mrf.mxu1 }
 0x220   :  { %370 = vst [vmem:[%s644_s5 + $0x18] sm:$0xff] %v266_v50  ;;  %372 = vst [vmem:[%s644_s5 + $0x28] sm:$0xff] %v354_v51  ;;  %v268_v54 = vadd.f32 %v267_v52, %v185_v42  ;;  %v349_v55 = vadd.f32 %v348_v53, %v189_v45 }
 0x221   :  { %v271_v56 = vpop.f32.mrf.mxu0  ;;  %v444_v57 = vpop.f32.mrf.mxu1 }
 0x222   :  { %371 = vst [vmem:[%s644_s5 + $0x20] sm:$0xff] %v268_v54  ;;  %369 = vst [vmem:[%s644_s5 + $0x10] sm:$0xff] %v349_v55  ;;  %v272_v58 = vadd.f32 %v271_v56, %v181_v26  ;;  %v364_v59 = vadd.f32 %v444_v57, %v189_v45 }
 0x223   :  { %v273_v60 = vpop.f32.mrf.mxu0  ;;  %v358_v61 = vpop.f32.mrf.mxu1 }
 0x224   :  { %373 = vst [vmem:[%s644_s5 + $0x30] sm:$0xff] %v272_v58  ;;  %378 = vst [vmem:[%s644_s5 + $0x58] sm:$0xff] %v364_v59  ;;  %v274_v62 = vadd.f32 %v273_v60, %v185_v42  ;;  %v359_v63 = vadd.f32 %v358_v61, %v189_v45 }
 0x225   :  { %v277_v0 = vpop.f32.mrf.mxu0 }
 0x226   :  { %374 = vst [vmem:[%s644_s5 + $0x38] sm:$0xff] %v274_v62  ;;  %375 = vst [vmem:[%s644_s5 + $0x40] sm:$0xff] %v359_v63  ;;  %v278_v1 = vadd.f32 %v277_v0, %v181_v26 }
 0x227   :  { %v279_v2 = vpop.f32.mrf.mxu0 }
 0x228   :  { %376 = vst [vmem:[%s644_s5 + $0x48] sm:$0xff] %v278_v1  ;;  %v280_v3 = vadd.f32 %v279_v2, %v185_v42 }
 0x22a   :  { %377 = vst [vmem:[%s644_s5 + $0x50] sm:$0xff] %v280_v3 }
 0x22b   :  { %383 = vsyncpa [#allocation3], 1 }
 0x22c   :  { %384 = vsyncpa [#allocation5], 1 }

// kernel: transformer_encoder_forward.10
= control target key start
LH: loop header
LB: loop body
LE: loop exit
PB: predicated region body
PF: predicated region fallthrough
CT: control target
= control target key end

     0   :  { %s667_s0 = inlined_call_operand.vmem [shape: f32[32,128], index: 0, kind: input, shape index: {}]   ;;  %s668_s3 = inlined_call_operand.vmem [shape: f32[128,384], index: 3, kind: input, shape index: {}]   ;;  %s669_s1 = inlined_call_operand.vmem [shape: f32[1,128], index: 1, kind: input, shape index: {}]   ;;  %s670_s2 = inlined_call_operand.vmem [shape: f32[1,128], index: 2, kind: input, shape index: {}]   ;;  %s671_s4 = inlined_call_operand.vmem [shape: f32[1,384], index: 4, kind: input, shape index: {}]   ;;  %s672_s5 = inlined_call_operand.vmem [shape: f32[32,384], index: 5, kind: output, shape index: {}]  }
   0x1   :  { %v20_v0 = vld [vmem:[%s667_s0] sm:$0xff]  ;;  %v22_v1 = vld [vmem:[%s667_s0 + $0x10] sm:$0xff]  ;;  %v21_v2 = vld [vmem:[%s667_s0 + $0x8] sm:$0xff] }
   0x2   :  { %24 = vadd.xlane.f32.xlu0 %v20_v0  ;;  %28 = vadd.xlane.f32.xlu1 %v22_v1  ;;  %v23_v3 = vld [vmem:[%s667_s0 + $0x18] sm:$0xff]  ;;  %v137_v4 = vld [vmem:[%s668_s3 + $0x170] sm:$0xff]  ;;  %v136_v5 = vld [vmem:[%s668_s3 + $0x168] sm:$0xff] }
   0x3   :  { %v134_v6 = vld [vmem:[%s668_s3 + $0x158] sm:$0xff]  ;;  %156 = vmatprep.subr.mxu0 %v137_v4  ;;  %v133_v7 = vld [vmem:[%s668_s3 + $0x150] sm:$0xff]  ;;  %v131_v9 = vld [vmem:[%s668_s3 + $0x140] sm:$0xff] }
   0x4   :  { %v138_v8 = vld [vmem:[%s668_s3 + $0x178] sm:$0xff]  ;;  %157 = vmatpush1.msra.mxu0 %v136_v5  ;;  %v135_v10 = vld [vmem:[%s668_s3 + $0x160] sm:$0xff]  ;;  %v128_v12 = vld [vmem:[%s668_s3 + $0x128] sm:$0xff] }
   0x5   :  { %368 = vmatprep.subr.mxu1 %v138_v8  ;;  %158 = vmatprep.subr.mxu0 %v134_v6  ;;  %v130_v11 = vld [vmem:[%s668_s3 + $0x138] sm:$0xff]  ;;  %v127_v13 = vld [vmem:[%s668_s3 + $0x120] sm:$0xff]  ;;  %v125_v30 = vld [vmem:[%s668_s3 + $0x110] sm:$0xff] }
   0x6   :  { %26 = vadd.xlane.f32.xlu0 %v21_v2  ;;  %30 = vadd.xlane.f32.xlu1 %v23_v3  ;;  %v132_v31 = vld [vmem:[%s668_s3 + $0x148] sm:$0xff]  ;;  %v122_v33 = vld [vmem:[%s668_s3 + $0xf8] sm:$0xff]  ;;  %v129_v34 = vld [vmem:[%s668_s3 + $0x130] sm:$0xff] }
   0x7   :  { %369 = vmatpush3.msra.mxu1 %v138_v8  ;;  %159 = vmatpush1.msra.mxu0 %v133_v7  ;;  %v124_v32 = vld [vmem:[%s668_s3 + $0x108] sm:$0xff]  ;;  %v121_v35 = vld [vmem:[%s668_s3 + $0xf0] sm:$0xff]  ;;  %v119_v36 = vld [vmem:[%s668_s3 + $0xe0] sm:$0xff] }
   0x8   :  { %370 = vmatprep.subr.mxu1 %v135_v10  ;;  %160 = vmatprep.subr.mxu0 %v131_v9  ;;  %v126_v37 = vld [vmem:[%s668_s3 + $0x118] sm:$0xff]  ;;  %v116_v39 = vld [vmem:[%s668_s3 + $0xc8] sm:$0xff]  ;;  %v123_v40 = vld [vmem:[%s668_s3 + $0x100] sm:$0xff] }
   0x9   :  { %371 = vmatpush3.msra.mxu1 %v135_v10  ;;  %161 = vmatpush1.msra.mxu0 %v130_v11  ;;  %v118_v38 = vld [vmem:[%s668_s3 + $0xd8] sm:$0xff]  ;;  %v115_v41 = vld [vmem:[%s668_s3 + $0xc0] sm:$0xff]  ;;  %v113_v42 = vld [vmem:[%s668_s3 + $0xb0] sm:$0xff] }
   0xa   :  { %162 = vmatprep.subr.mxu0 %v128_v12  ;;  %372 = vmatprep.subr.mxu1 %v132_v31  ;;  %v120_v43 = vld [vmem:[%s668_s3 + $0xe8] sm:$0xff]  ;;  %v110_v45 = vld [vmem:[%s668_s3 + $0x98] sm:$0xff]  ;;  %v117_v46 = vld [vmem:[%s668_s3 + $0xd0] sm:$0xff] }
   0xb   :  { %163 = vmatpush1.msra.mxu0 %v127_v13  ;;  %373 = vmatpush3.msra.mxu1 %v132_v31  ;;  %v112_v44 = vld [vmem:[%s668_s3 + $0xa8] sm:$0xff]  ;;  %v109_v47 = vld [vmem:[%s668_s3 + $0x90] sm:$0xff]  ;;  %v107_v48 = vld [vmem:[%s668_s3 + $0x80] sm:$0xff] }
   0xc   :  { %164 = vmatprep.subr.mxu0 %v125_v30  ;;  %374 = vmatprep.subr.mxu1 %v129_v34  ;;  %v114_v49 = vld [vmem:[%s668_s3 + $0xb8] sm:$0xff]  ;;  %v104_v51 = vld [vmem:[%s668_s3 + $0x68] sm:$0xff]  ;;  %v111_v52 = vld [vmem:[%s668_s3 + $0xa0] sm:$0xff] }
   0xd   :  { %165 = vmatpush1.msra.mxu0 %v124_v32  ;;  %375 = vmatpush3.msra.mxu1 %v129_v34  ;;  %v106_v50 = vld [vmem:[%s668_s3 + $0x78] sm:$0xff]  ;;  %v103_v53 = vld [vmem:[%s668_s3 + $0x60] sm:$0xff]  ;;  %v101_v54 = vld [vmem:[%s668_s3 + $0x50] sm:$0xff] }
   0xe   :  { %166 = vmatprep.subr.mxu0 %v122_v33  ;;  %376 = vmatprep.subr.mxu1 %v126_v37  ;;  %v108_v55 = vld [vmem:[%s668_s3 + $0x88] sm:$0xff]  ;;  %v98_v57 = vld [vmem:[%s668_s3 + $0x38] sm:$0xff]  ;;  %v105_v58 = vld [vmem:[%s668_s3 + $0x70] sm:$0xff] }
   0xf   :  { %167 = vmatpush1.msra.mxu0 %v121_v35  ;;  %377 = vmatpush3.msra.mxu1 %v126_v37  ;;  %v100_v56 = vld [vmem:[%s668_s3 + $0x48] sm:$0xff]  ;;  %v97_v59 = vld [vmem:[%s668_s3 + $0x30] sm:$0xff]  ;;  %v95_v60 = vld [vmem:[%s668_s3 + $0x20] sm:$0xff] }
  0x10   :  { %168 = vmatprep.subr.mxu0 %v119_v36  ;;  %378 = vmatprep.subr.mxu1 %v123_v40  ;;  %v102_v61 = vld [vmem:[%s668_s3 + $0x58] sm:$0xff]  ;;  %v92_v63 = vld [vmem:[%s668_s3 + $0x8] sm:$0xff]  ;;  %v93_v4 = vld [vmem:[%s668_s3 + $0x10] sm:$0xff] }
  0x11   :  { %169 = vmatpush1.msra.mxu0 %v118_v38  ;;  %379 = vmatpush3.msra.mxu1 %v123_v40  ;;  %v94_v62 = vld [vmem:[%s668_s3 + $0x18] sm:$0xff] }
  0x12   :  { %170 = vmatprep.subr.mxu0 %v116_v39  ;;  %380 = vmatprep.subr.mxu1 %v120_v43  ;;  %v139_v39 = vld [vmem:[%s671_s4] sm:$0x7] }
  0x13   :  { %171 = vmatpush1.msra.mxu0 %v115_v41  ;;  %381 = vmatpush3.msra.mxu1 %v120_v43 }
  0x14   :  { %172 = vmatprep.subr.mxu0 %v113_v42  ;;  %382 = vmatprep.subr.mxu1 %v117_v46 }
  0x15   :  { %173 = vmatpush1.msra.mxu0 %v112_v44  ;;  %383 = vmatpush3.msra.mxu1 %v117_v46 }
  0x16   :  { %174 = vmatprep.subr.mxu0 %v110_v45  ;;  %384 = vmatprep.subr.mxu1 %v114_v49 }
  0x17   :  { %175 = vmatpush1.msra.mxu0 %v109_v47  ;;  %385 = vmatpush3.msra.mxu1 %v114_v49 }
  0x18   :  { %176 = vmatprep.subr.mxu0 %v107_v48  ;;  %386 = vmatprep.subr.mxu1 %v111_v52 }
  0x19   :  { %177 = vmatpush1.msra.mxu0 %v106_v50  ;;  %387 = vmatpush3.msra.mxu1 %v111_v52 }
  0x1a   :  { %178 = vmatprep.subr.mxu0 %v104_v51  ;;  %388 = vmatprep.subr.mxu1 %v108_v55 }
  0x1b   :  { %179 = vmatpush1.msra.mxu0 %v103_v53  ;;  %389 = vmatpush3.msra.mxu1 %v108_v55 }
  0x1c   :  { %180 = vmatprep.subr.mxu0 %v101_v54  ;;  %390 = vmatprep.subr.mxu1 %v105_v58 }
  0x1d   :  { %181 = vmatpush1.msra.mxu0 %v100_v56  ;;  %391 = vmatpush3.msra.mxu1 %v105_v58 }
  0x1e   :  { %182 = vmatprep.subr.mxu0 %v98_v57  ;;  %392 = vmatprep.subr.mxu1 %v102_v61 }
  0x1f   :  { %183 = vmatpush1.msra.mxu0 %v97_v59  ;;  %393 = vmatpush3.msra.mxu1 %v102_v61 }
  0x20   :  { %184 = vmatprep.subr.mxu0 %v95_v60 }
  0x21   :  { %185 = vmatpush1.msra.mxu0 %v94_v62 }
  0x22   :  { %186 = vmatprep.subr.mxu0 %v92_v63 }
  0x8b   :  { %v25_v14 = vpop.xlane.xlu0 %24  ;;  %v29_v15 = vpop.xlane.xlu1 %28 }
  0x8c   :  { %v33_v16 = vmul.f32 0.0078125, %v25_v14  ;;  %v35_v17 = vmul.f32 0.0078125, %v29_v15 }
  0x8e   :  { %v488_v18 = vsub.f32 %v20_v0, %v33_v16  ;;  %v490_v19 = vsub.f32 %v22_v1, %v35_v17  ;;  %v99_v0 = vld [vmem:[%s668_s3 + $0x40] sm:$0xff] }
  0x8f   :  { %v27_v20 = vpop.xlane.xlu0 %26  ;;  %v31_v21 = vpop.xlane.xlu1 %30  ;;  %v91_v1 = vld [vmem:[%s668_s3] sm:$0xff]  ;;  %394 = vmatprep.subr.mxu1 %v99_v0 }
  0x90   :  { %v34_v22 = vmul.f32 0.0078125, %v27_v20  ;;  %v41_v23 = vmul.f32 %v488_v18, %v488_v18  ;;  %v36_v24 = vmul.f32 0.0078125, %v31_v21  ;;  %v43_v27 = vmul.f32 %v490_v19, %v490_v19  ;;  %187 = vmatpush1.msra.mxu0 %v91_v1  ;;  %395 = vmatpush3.msra.mxu1 %v99_v0  ;;  %v346_v20 = vld [vmem:[%s669_s1] ss:$0 sm:$0xff] }
  0x92   :  { %v494_v25 = vsub.f32 %v21_v2, %v34_v22  ;;  %45 = vadd.xlane.f32.xlu0 %v41_v23  ;;  %v496_v26 = vsub.f32 %v23_v3, %v36_v24  ;;  %v415_v2 = vmov 0.0   ;;  %v96_v3 = vld [vmem:[%s668_s3 + $0x28] sm:$0xff]  ;;  %v347_v22 = vld [vmem:[%s670_s2] ss:$0 sm:$0xff] }
  0x93   :  { %220 = vmatprep.mubr.f32.mxu0 %v415_v2  ;;  %396 = vmatprep.subr.mxu1 %v96_v3 }
  0x94   :  { %v42_v28 = vmul.f32 %v494_v25, %v494_v25  ;;  %v44_v29 = vmul.f32 %v496_v26, %v496_v26  ;;  %397 = vmatpush3.msra.mxu1 %v96_v3 }
  0x95   :  { %398 = vmatprep.subr.mxu1 %v93_v4 }
  0x96   :  { %49 = vadd.xlane.f32.xlu0 %v43_v27  ;;  %47 = vadd.xlane.f32.xlu1 %v42_v28 }
  0x97   :  { %399 = vmatpush3.msra.mxu1 %v93_v4 }
  0x9a   :  { %51 = vadd.xlane.f32.xlu1 %v44_v29 }
 0x11b   :  { %v46_v5 = vpop.xlane.xlu0 %45 }
 0x11c   :  { %v53_v6 = vmul.f32 0.0078125, %v46_v5 }
 0x11e   :  { %v57_v7 = vadd.f32 1e-05, %v53_v6 }
 0x11f   :  { %v48_v8 = vpop.xlane.xlu1 %47  ;;  %v50_v9 = vpop.xlane.xlu0 %49 }
 0x120   :  { %407 = vrsqrt.f32 %v57_v7  ;;  %v54_v10 = vmul.f32 0.0078125, %v48_v8  ;;  %v55_v11 = vmul.f32 0.0078125, %v50_v9 }
 0x122   :  { %v58_v12 = vadd.f32 1e-05, %v54_v10  ;;  %v59_v13 = vadd.f32 1e-05, %v55_v11 }
 0x123   :  { %v52_v14 = vpop.xlane.xlu1 %51 }
 0x124   :  { %409 = vrsqrt.f32 %v58_v12  ;;  %v56_v15 = vmul.f32 0.0078125, %v52_v14 }
 0x125   :  { %411 = vrsqrt.f32 %v59_v13 }
 0x126   :  { %v60_v16 = vadd.f32 1e-05, %v56_v15 }
 0x128   :  { %413 = vrsqrt.f32 %v60_v16 }
 0x12d   :  { %v408_v17 = vpop.eup %407 }
 0x12e   :  { %v65_v21 = vmul.f32 %v408_v17, %v488_v18 }
 0x130   :  { %v76_v23 = vmul.f32 %v346_v20, %v65_v21 }
 0x131   :  { %v410_v24 = vpop.eup %409 }
 0x132   :  { %v412_v27 = vpop.eup %411  ;;  %v87_v28 = vadd.f32 %v347_v22, %v76_v23  ;;  %v66_v29 = vmul.f32 %v410_v24, %v494_v25 }
 0x133   :  { %v67_v30 = vmul.f32 %v412_v27, %v490_v19  ;;  %v141_v19 = vlaneseq }
 0x134   :  { %221 = vmatmul.mubr.f32.vlgmr.msra.gmra.mxu0 %v87_v28  ;;  %400 = vmatprep.mubr.f32.mxu1 %v87_v28  ;;  %v77_v31 = vmul.f32 %v346_v20, %v66_v29 }
 0x135   :  { %v414_v32 = vpop.eup %413  ;;  %226 = vmatprep.mubr.f32.mxu0 %v415_v2  ;;  %v78_v33 = vmul.f32 %v346_v20, %v67_v30  ;;  %v142_v25 = vshrl.u32 %v141_v19, 7 }
 0x136   :  { %v88_v34 = vadd.f32 %v347_v22, %v77_v31  ;;  %v68_v18 = vmul.f32 %v414_v32, %v496_v26 }
 0x137   :  { %v89_v35 = vadd.f32 %v347_v22, %v78_v33  ;;  %v143_v38 = vsub.s32 0, %v142_v25  ;;  %v147_v40 = vsub.s32 1, %v142_v25  ;;  %v151_v41 = vsub.s32 2, %v142_v25 }
 0x138   :  { %227 = vmatmul.mubr.f32.gmra.mxu0 %v88_v34  ;;  %401 = vmatmul.mubr.f32.vlgmr.msra.gmra.mxu1 %v88_v34  ;;  %v79_v36 = vmul.f32 %v346_v20, %v68_v18 }
 0x139   :  { %403 = vmatprep.mubr.f32.mxu1 %v89_v35  ;;  %232 = vmatprep.mubr.f32.mxu0 %v415_v2  ;;  %v144_v26 = vrot.slane %v139_v39, %v143_v38  ;;  %v148_v42 = vrot.slane %v139_v39, %v147_v40  ;;  %v152_v45 = vrot.slane %v139_v39, %v151_v41 }
 0x13a   :  { %v90_v37 = vadd.f32 %v347_v22, %v79_v36 }
 0x13c   :  { %233 = vmatmul.mubr.f32.gmra.mxu0 %v89_v35  ;;  %404 = vmatmul.mubr.f32.gmra.mxu1 %v90_v37 }
 0x13d   :  { %238 = vmatprep.mubr.f32.mxu0 %v415_v2 }
 0x140   :  { %239 = vmatmul.mubr.f32.gmra.mxu0 %v90_v37 }
 0x1f4   :  { %v222_v43 = vpop.f32.mrf.mxu0 }
 0x1f5   :  { %v223_v44 = vadd.f32 %v222_v43, %v144_v26 }
 0x1f6   :  { %v224_v46 = vpop.f32.mrf.mxu0 }
 0x1f7   :  { %330 = vst [vmem:[%s672_s5] sm:$0xff] %v223_v44  ;;  %v225_v47 = vadd.f32 %v224_v46, %v148_v42 }
 0x1f8   :  { %v228_v48 = vpop.f32.mrf.mxu0  ;;  %v402_v49 = vpop.f32.mrf.mxu1 }
 0x1f9   :  { %331 = vst [vmem:[%s672_s5 + $0x8] sm:$0xff] %v225_v47  ;;  %v229_v50 = vadd.f32 %v228_v48, %v144_v26  ;;  %v317_v51 = vadd.f32 %v402_v49, %v152_v45 }
 0x1fa   :  { %v230_v52 = vpop.f32.mrf.mxu0  ;;  %v311_v53 = vpop.f32.mrf.mxu1 }
 0x1fb   :  { %333 = vst [vmem:[%s672_s5 + $0x18] sm:$0xff] %v229_v50  ;;  %335 = vst [vmem:[%s672_s5 + $0x28] sm:$0xff] %v317_v51  ;;  %v231_v54 = vadd.f32 %v230_v52, %v148_v42  ;;  %v312_v55 = vadd.f32 %v311_v53, %v152_v45 }
 0x1fc   :  { %v234_v56 = vpop.f32.mrf.mxu0  ;;  %v405_v57 = vpop.f32.mrf.mxu1 }
 0x1fd   :  { %334 = vst [vmem:[%s672_s5 + $0x20] sm:$0xff] %v231_v54  ;;  %332 = vst [vmem:[%s672_s5 + $0x10] sm:$0xff] %v312_v55  ;;  %v235_v58 = vadd.f32 %v234_v56, %v144_v26  ;;  %v327_v59 = vadd.f32 %v405_v57, %v152_v45 }
 0x1fe   :  { %v236_v60 = vpop.f32.mrf.mxu0  ;;  %v321_v61 = vpop.f32.mrf.mxu1 }
 0x1ff   :  { %336 = vst [vmem:[%s672_s5 + $0x30] sm:$0xff] %v235_v58  ;;  %341 = vst [vmem:[%s672_s5 + $0x58] sm:$0xff] %v327_v59  ;;  %v237_v62 = vadd.f32 %v236_v60, %v148_v42  ;;  %v322_v63 = vadd.f32 %v321_v61, %v152_v45 }
 0x200   :  { %v240_v0 = vpop.f32.mrf.mxu0 }
 0x201   :  { %337 = vst [vmem:[%s672_s5 + $0x38] sm:$0xff] %v237_v62  ;;  %338 = vst [vmem:[%s672_s5 + $0x40] sm:$0xff] %v322_v63  ;;  %v241_v1 = vadd.f32 %v240_v0, %v144_v26 }
 0x202   :  { %v242_v2 = vpop.f32.mrf.mxu0 }
 0x203   :  { %339 = vst [vmem:[%s672_s5 + $0x48] sm:$0xff] %v241_v1  ;;  %v243_v3 = vadd.f32 %v242_v2, %v148_v42 }
 0x205   :  { %340 = vst [vmem:[%s672_s5 + $0x50] sm:$0xff] %v243_v3 }

// kernel: transformer_encoder_forward.9
= control target key start
LH: loop header
LB: loop body
LE: loop exit
PB: predicated region body
PF: predicated region fallthrough
CT: control target
= control target key end

     0   :  { %12 = vsyncpa [#allocation5], 0  ;;  %s903_s24 = smov [#allocation4]   ;;  %s1278_s0 = inlined_call_operand.vmem [shape: f32[32,128], index: 0, kind: input, shape index: {}]   ;;  %s1279_s1 = inlined_call_operand.vmem [shape: f32[1,128], index: 1, kind: input, shape index: {}]   ;;  %s1280_s2 = inlined_call_operand.vmem [shape: f32[1,128], index: 2, kind: input, shape index: {}]   ;;  %s1281_s3 = inlined_call_operand.vmem [shape: f32[128,512], index: 3, kind: input, shape index: {}]   ;;  %s1282_s4 = inlined_call_operand.vmem [shape: f32[1,512], index: 4, kind: input, shape index: {}]   ;;  %s1283_s5 = inlined_call_operand.hbm [shape: f32[512,128], index: 5, kind: input, shape index: {}]   ;;  %s1284_s6 = inlined_call_operand.vmem [shape: f32[1,128], index: 6, kind: input, shape index: {}]   ;;  %s1285_s7 = inlined_call_operand.vmem [shape: f32[32,128], index: 7, kind: output, shape index: {}]  }
   0x1   :  { %s28_s25 = sshll.u32 %s903_s24, 4  ;;  %s29_s25 = int_to_ptr.vmem [resolvable:$true] %s28_s25 }
   0x2   :  { %s889_s26 = scalar_lea.vmem %s29_s25, 8192  ;;  %p894_p1 = scmp.lt.s32.totalorder %s29_s25, %s29_s25 }
   0x3   :  { %p890_p0 = scmp.ne.s32.totalorder %s29_s25, %s889_s26  ;;  %p895_p2 = scmp.lt.s32.totalorder %s889_s26, %s889_s26 }
   0x5   :  { %p896_p3 = por %p895_p2, %p894_p1 }
   0x7   :  { %p897_p4 = pnand %p896_p3, %p890_p0 }
   0x9   :  { %900 = shalt.err (!%p897_p4)
}
   0xa   :  { %s904_s27 = smov 128   ;;  %s905_s28 = smov 8  }
   0xb   :  { %34 = dma.hbm_to_vmem [thread:$0]  %s1283_s5, 8192, %s29_s25, [#allocation5], %s904_s27, %s904_s27, %s905_s28  }
   0xc   :  { %901 = dma.done.wait [#allocation5], 8192  }
   0xd   :  { %902 = vsyncadd [#allocation5], 4294959104  ;;  %v953_v0 = vld [vmem:[%s1278_s0] sm:$0xff]  ;;  %v46_v1 = vld [vmem:[%s1278_s0 + $0x10] sm:$0xff] }
   0xe   :  { %48 = vadd.xlane.f32.xlu0 %v953_v0  ;;  %52 = vadd.xlane.f32.xlu1 %v46_v1  ;;  %v962_v2 = vld [vmem:[%s1278_s0 + $0x8] sm:$0xff]  ;;  %v47_v3 = vld [vmem:[%s1278_s0 + $0x18] sm:$0xff]  ;;  %v198_v6 = vld [vmem:[%s1281_s3 + $0x1e0] sm:$0xff] }
   0xf   :  { %v199_v4 = vld [vmem:[%s1281_s3 + $0x1e8] sm:$0xff]  ;;  %v201_v5 = vld [vmem:[%s1281_s3 + $0x1f8] sm:$0xff]  ;;  %v200_v7 = vld [vmem:[%s1281_s3 + $0x1f0] sm:$0xff] }
  0x10   :  { %224 = vmatprep.subr.mxu0 %v199_v4  ;;  %313 = vmatprep.subr.mxu1 %v201_v5  ;;  %v195_v8 = vld [vmem:[%s1281_s3 + $0x1c8] sm:$0xff]  ;;  %v197_v9 = vld [vmem:[%s1281_s3 + $0x1d8] sm:$0xff]  ;;  %v194_v10 = vld [vmem:[%s1281_s3 + $0x1c0] sm:$0xff] }
  0x11   :  { %225 = vmatpush1.msra.mxu0 %v198_v6  ;;  %314 = vmatpush1.msra.mxu1 %v200_v7  ;;  %v196_v11 = vld [vmem:[%s1281_s3 + $0x1d0] sm:$0xff]  ;;  %v191_v12 = vld [vmem:[%s1281_s3 + $0x1a8] sm:$0xff]  ;;  %v193_v13 = vld [vmem:[%s1281_s3 + $0x1b8] sm:$0xff] }
  0x12   :  { %50 = vadd.xlane.f32.xlu0 %v962_v2  ;;  %54 = vadd.xlane.f32.xlu1 %v47_v3  ;;  %v190_v14 = vld [vmem:[%s1281_s3 + $0x1a0] sm:$0xff]  ;;  %v192_v15 = vld [vmem:[%s1281_s3 + $0x1b0] sm:$0xff]  ;;  %v187_v16 = vld [vmem:[%s1281_s3 + $0x188] sm:$0xff] }
  0x13   :  { %226 = vmatprep.subr.mxu0 %v195_v8  ;;  %315 = vmatprep.subr.mxu1 %v197_v9  ;;  %v189_v17 = vld [vmem:[%s1281_s3 + $0x198] sm:$0xff]  ;;  %v186_v18 = vld [vmem:[%s1281_s3 + $0x180] sm:$0xff]  ;;  %v188_v19 = vld [vmem:[%s1281_s3 + $0x190] sm:$0xff] }
  0x14   :  { %227 = vmatpush1.msra.mxu0 %v194_v10  ;;  %316 = vmatpush1.msra.mxu1 %v196_v11  ;;  %v183_v36 = vld [vmem:[%s1281_s3 + $0x168] sm:$0xff]  ;;  %v185_v37 = vld [vmem:[%s1281_s3 + $0x178] sm:$0xff]  ;;  %v182_v38 = vld [vmem:[%s1281_s3 + $0x160] sm:$0xff] }
  0x15   :  { %228 = vmatprep.subr.mxu0 %v191_v12  ;;  %317 = vmatprep.subr.mxu1 %v193_v13  ;;  %v184_v39 = vld [vmem:[%s1281_s3 + $0x170] sm:$0xff]  ;;  %v179_v40 = vld [vmem:[%s1281_s3 + $0x148] sm:$0xff]  ;;  %v181_v41 = vld [vmem:[%s1281_s3 + $0x158] sm:$0xff] }
  0x16   :  { %229 = vmatpush1.msra.mxu0 %v190_v14  ;;  %318 = vmatpush1.msra.mxu1 %v192_v15  ;;  %v178_v42 = vld [vmem:[%s1281_s3 + $0x140] sm:$0xff]  ;;  %v180_v43 = vld [vmem:[%s1281_s3 + $0x150] sm:$0xff]  ;;  %v175_v44 = vld [vmem:[%s1281_s3 + $0x128] sm:$0xff] }
  0x17   :  { %230 = vmatprep.subr.mxu0 %v187_v16  ;;  %319 = vmatprep.subr.mxu1 %v189_v17  ;;  %v177_v45 = vld [vmem:[%s1281_s3 + $0x138] sm:$0xff]  ;;  %v174_v46 = vld [vmem:[%s1281_s3 + $0x120] sm:$0xff]  ;;  %v176_v47 = vld [vmem:[%s1281_s3 + $0x130] sm:$0xff] }
  0x18   :  { %231 = vmatpush1.msra.mxu0 %v186_v18  ;;  %320 = vmatpush1.msra.mxu1 %v188_v19  ;;  %v171_v48 = vld [vmem:[%s1281_s3 + $0x108] sm:$0xff]  ;;  %v173_v49 = vld [vmem:[%s1281_s3 + $0x118] sm:$0xff]  ;;  %v170_v50 = vld [vmem:[%s1281_s3 + $0x100] sm:$0xff] }
  0x19   :  { %232 = vmatprep.subr.mxu0 %v183_v36  ;;  %321 = vmatprep.subr.mxu1 %v185_v37  ;;  %v172_v51 = vld [vmem:[%s1281_s3 + $0x110] sm:$0xff]  ;;  %v167_v52 = vld [vmem:[%s1281_s3 + $0xe8] sm:$0xff]  ;;  %v169_v53 = vld [vmem:[%s1281_s3 + $0xf8] sm:$0xff] }
  0x1a   :  { %233 = vmatpush1.msra.mxu0 %v182_v38  ;;  %322 = vmatpush1.msra.mxu1 %v184_v39  ;;  %v166_v54 = vld [vmem:[%s1281_s3 + $0xe0] sm:$0xff]  ;;  %v168_v55 = vld [vmem:[%s1281_s3 + $0xf0] sm:$0xff]  ;;  %v163_v56 = vld [vmem:[%s1281_s3 + $0xc8] sm:$0xff] }
  0x1b   :  { %234 = vmatprep.subr.mxu0 %v179_v40  ;;  %323 = vmatprep.subr.mxu1 %v181_v41  ;;  %v165_v57 = vld [vmem:[%s1281_s3 + $0xd8] sm:$0xff]  ;;  %v162_v58 = vld [vmem:[%s1281_s3 + $0xc0] sm:$0xff]  ;;  %v164_v59 = vld [vmem:[%s1281_s3 + $0xd0] sm:$0xff] }
  0x1c   :  { %235 = vmatpush1.msra.mxu0 %v178_v42  ;;  %324 = vmatpush1.msra.mxu1 %v180_v43  ;;  %v159_v60 = vld [vmem:[%s1281_s3 + $0xa8] sm:$0xff]  ;;  %v161_v61 = vld [vmem:[%s1281_s3 + $0xb8] sm:$0xff]  ;;  %v158_v62 = vld [vmem:[%s1281_s3 + $0xa0] sm:$0xff] }
  0x1d   :  { %236 = vmatprep.subr.mxu0 %v175_v44  ;;  %325 = vmatprep.subr.mxu1 %v177_v45  ;;  %v160_v63 = vld [vmem:[%s1281_s3 + $0xb0] sm:$0xff]  ;;  %v154_v4 = vld [vmem:[%s1281_s3 + $0x80] sm:$0xff]  ;;  %v151_v6 = vld [vmem:[%s1281_s3 + $0x68] sm:$0xff] }
  0x1e   :  { %237 = vmatpush1.msra.mxu0 %v174_v46  ;;  %326 = vmatpush1.msra.mxu1 %v176_v47  ;;  %v156_v5 = vld [vmem:[%s1281_s3 + $0x90] sm:$0xff]  ;;  %v153_v7 = vld [vmem:[%s1281_s3 + $0x78] sm:$0xff]  ;;  %v150_v8 = vld [vmem:[%s1281_s3 + $0x60] sm:$0xff] }
  0x1f   :  { %238 = vmatprep.subr.mxu0 %v171_v48  ;;  %327 = vmatprep.subr.mxu1 %v173_v49  ;;  %v152_v9 = vld [vmem:[%s1281_s3 + $0x70] sm:$0xff]  ;;  %v147_v10 = vld [vmem:[%s1281_s3 + $0x48] sm:$0xff]  ;;  %v149_v11 = vld [vmem:[%s1281_s3 + $0x58] sm:$0xff] }
  0x20   :  { %239 = vmatpush1.msra.mxu0 %v170_v50  ;;  %328 = vmatpush1.msra.mxu1 %v172_v51  ;;  %v146_v12 = vld [vmem:[%s1281_s3 + $0x40] sm:$0xff]  ;;  %v148_v13 = vld [vmem:[%s1281_s3 + $0x50] sm:$0xff]  ;;  %v143_v14 = vld [vmem:[%s1281_s3 + $0x28] sm:$0xff] }
  0x21   :  { %240 = vmatprep.subr.mxu0 %v167_v52  ;;  %329 = vmatprep.subr.mxu1 %v169_v53  ;;  %v145_v15 = vld [vmem:[%s1281_s3 + $0x38] sm:$0xff]  ;;  %v142_v16 = vld [vmem:[%s1281_s3 + $0x20] sm:$0xff]  ;;  %v144_v17 = vld [vmem:[%s1281_s3 + $0x30] sm:$0xff] }
  0x22   :  { %241 = vmatpush1.msra.mxu0 %v166_v54  ;;  %330 = vmatpush1.msra.mxu1 %v168_v55  ;;  %v139_v18 = vld [vmem:[%s1281_s3 + $0x8] sm:$0xff]  ;;  %v141_v19 = vld [vmem:[%s1281_s3 + $0x18] sm:$0xff]  ;;  %v744_v42 = vld [vmem:[%s1279_s1] ss:$0 sm:$0xff] }
  0x23   :  { %242 = vmatprep.subr.mxu0 %v163_v56  ;;  %331 = vmatprep.subr.mxu1 %v165_v57  ;;  %v745_v44 = vld [vmem:[%s1280_s2] ss:$0 sm:$0xff]  ;;  %v501_v51 = vld [vmem:[#allocation4 + $0x78] sm:$0xff]  ;;  %v516_v54 = vld [vmem:[#allocation4 + $0xf0] sm:$0xff] }
  0x24   :  { %243 = vmatpush1.msra.mxu0 %v162_v58  ;;  %332 = vmatpush1.msra.mxu1 %v164_v59  ;;  %v533_v52 = vld [vmem:[#allocation4 + $0x178] sm:$0xff]  ;;  %v548_v55 = vld [vmem:[#allocation4 + $0x1f0] sm:$0xff]  ;;  %v515_v59 = vld [vmem:[#allocation4 + $0xe8] sm:$0xff] }
  0x25   :  { %244 = vmatprep.subr.mxu0 %v159_v60  ;;  %333 = vmatprep.subr.mxu1 %v161_v61  ;;  %v547_v60 = vld [vmem:[#allocation4 + $0x1e8] sm:$0xff] }
  0x26   :  { %245 = vmatpush1.msra.mxu0 %v158_v62  ;;  %334 = vmatpush1.msra.mxu1 %v160_v63  ;;  %v531_v63 = vld [vmem:[#allocation4 + $0x168] sm:$0xff] }
  0x97   :  { %v49_v20 = vpop.xlane.xlu0 %48  ;;  %v53_v21 = vpop.xlane.xlu1 %52 }
  0x98   :  { %v57_v22 = vmul.f32 0.0078125, %v49_v20  ;;  %v59_v23 = vmul.f32 0.0078125, %v53_v21  ;;  %v138_v20 = vld [vmem:[%s1281_s3] sm:$0xff]  ;;  %v140_v21 = vld [vmem:[%s1281_s3 + $0x10] sm:$0xff] }
  0x9a   :  { %v1017_v24 = vsub.f32 %v953_v0, %v57_v22  ;;  %v1019_v25 = vsub.f32 %v46_v1, %v59_v23  ;;  %v155_v1 = vld [vmem:[%s1281_s3 + $0x88] sm:$0xff]  ;;  %v906_v22 = vmov 0.0   ;;  %v517_v23 = vld [vmem:[#allocation4 + $0xf8] sm:$0xff] }
  0x9b   :  { %v51_v26 = vpop.xlane.xlu0 %50  ;;  %v55_v27 = vpop.xlane.xlu1 %54  ;;  %246 = vmatprep.subr.mxu0 %v155_v1  ;;  %288 = vmatprep.mubr.f32.mxu0 %v906_v22 }
  0x9c   :  { %v58_v28 = vmul.f32 0.0078125, %v51_v26  ;;  %v65_v29 = vmul.f32 %v1017_v24, %v1017_v24  ;;  %v60_v30 = vmul.f32 0.0078125, %v55_v27  ;;  %v67_v33 = vmul.f32 %v1019_v25, %v1019_v25  ;;  %247 = vmatpush1.msra.mxu0 %v154_v4  ;;  %377 = vmatprep.mubr.f32.mxu1 %v906_v22  ;;  %v549_v26 = vld [vmem:[#allocation4 + $0x1f8] sm:$0xff]  ;;  %v546_v4 = vld [vmem:[#allocation4 + $0x1e0] sm:$0xff] }
  0x9d   :  { %248 = vmatprep.subr.mxu0 %v151_v6  ;;  %v530_v6 = vld [vmem:[#allocation4 + $0x160] sm:$0xff] }
  0x9e   :  { %v1024_v31 = vsub.f32 %v962_v2, %v58_v28  ;;  %69 = vadd.xlane.f32.xlu0 %v65_v29  ;;  %v1026_v32 = vsub.f32 %v47_v3, %v60_v30  ;;  %v157_v3 = vld [vmem:[%s1281_s3 + $0x98] sm:$0xff]  ;;  %249 = vmatpush1.msra.mxu0 %v150_v8 }
  0x9f   :  { %335 = vmatprep.subr.mxu1 %v157_v3  ;;  %250 = vmatprep.subr.mxu0 %v147_v10  ;;  %v514_v3 = vld [vmem:[#allocation4 + $0xe0] sm:$0xff]  ;;  %v545_v8 = vld [vmem:[#allocation4 + $0x1d8] sm:$0xff] }
  0xa0   :  { %v66_v34 = vmul.f32 %v1024_v31, %v1024_v31  ;;  %v68_v35 = vmul.f32 %v1026_v32, %v1026_v32  ;;  %336 = vmatpush1.msra.mxu1 %v156_v5  ;;  %251 = vmatpush1.msra.mxu0 %v146_v12  ;;  %v498_v5 = vld [vmem:[#allocation4 + $0x60] sm:$0xff]  ;;  %v529_v10 = vld [vmem:[#allocation4 + $0x158] sm:$0xff]  ;;  %v544_v12 = vld [vmem:[#allocation4 + $0x1d0] sm:$0xff] }
  0xa1   :  { %337 = vmatprep.subr.mxu1 %v153_v7  ;;  %252 = vmatprep.subr.mxu0 %v143_v14  ;;  %v513_v7 = vld [vmem:[#allocation4 + $0xd8] sm:$0xff]  ;;  %v528_v14 = vld [vmem:[#allocation4 + $0x150] sm:$0xff] }
  0xa2   :  { %73 = vadd.xlane.f32.xlu0 %v67_v33  ;;  %71 = vadd.xlane.f32.xlu1 %v66_v34 }
  0xa3   :  { %338 = vmatpush1.msra.mxu1 %v152_v9  ;;  %253 = vmatpush1.msra.mxu0 %v142_v16  ;;  %v497_v9 = vld [vmem:[#allocation4 + $0x58] sm:$0xff]  ;;  %v543_v16 = vld [vmem:[#allocation4 + $0x1c8] sm:$0xff] }
  0xa4   :  { %339 = vmatprep.subr.mxu1 %v149_v11  ;;  %254 = vmatprep.subr.mxu0 %v139_v18  ;;  %v512_v11 = vld [vmem:[#allocation4 + $0xd0] sm:$0xff]  ;;  %v527_v18 = vld [vmem:[#allocation4 + $0x148] sm:$0xff] }
  0xa5   :  { %340 = vmatpush1.msra.mxu1 %v148_v13  ;;  %255 = vmatpush1.msra.mxu0 %v138_v20  ;;  %v496_v13 = vld [vmem:[#allocation4 + $0x50] sm:$0xff]  ;;  %v542_v20 = vld [vmem:[#allocation4 + $0x1c0] sm:$0xff] }
  0xa6   :  { %75 = vadd.xlane.f32.xlu1 %v68_v35  ;;  %341 = vmatprep.subr.mxu1 %v145_v15  ;;  %v511_v15 = vld [vmem:[#allocation4 + $0xc8] sm:$0xff] }
  0xa7   :  { %342 = vmatpush1.msra.mxu1 %v144_v17  ;;  %747 = vmatprep.subr.mxu0 %v517_v23  ;;  %v495_v17 = vld [vmem:[#allocation4 + $0x48] sm:$0xff]  ;;  %v509_v23 = vld [vmem:[#allocation4 + $0xb8] sm:$0xff] }
  0xa8   :  { %343 = vmatprep.subr.mxu1 %v141_v19  ;;  %v510_v19 = vld [vmem:[#allocation4 + $0xc0] sm:$0xff] }
  0xa9   :  { %344 = vmatpush1.msra.mxu1 %v140_v21  ;;  %v494_v21 = vld [vmem:[#allocation4 + $0x40] sm:$0xff] }
  0xaa   :  { %791 = vmatprep.subr.mxu1 %v549_v26  ;;  %v541_v26 = vld [vmem:[#allocation4 + $0x1b8] sm:$0xff] }
 0x127   :  { %v70_v27 = vpop.xlane.xlu0 %69 }
 0x128   :  { %v77_v28 = vmul.f32 0.0078125, %v70_v27  ;;  %v493_v27 = vld [vmem:[#allocation4 + $0x38] sm:$0xff] }
 0x12a   :  { %v81_v29 = vadd.f32 1e-05, %v77_v28  ;;  %v525_v28 = vld [vmem:[#allocation4 + $0x138] sm:$0xff] }
 0x12b   :  { %v72_v30 = vpop.xlane.xlu1 %71  ;;  %v74_v33 = vpop.xlane.xlu0 %73 }
 0x12c   :  { %839 = vrsqrt.f32 %v81_v29  ;;  %v78_v34 = vmul.f32 0.0078125, %v72_v30  ;;  %v79_v35 = vmul.f32 0.0078125, %v74_v33  ;;  %v508_v29 = vld [vmem:[#allocation4 + $0xb0] sm:$0xff] }
 0x12d   :  { %v540_v30 = vld [vmem:[#allocation4 + $0x1b0] sm:$0xff] }
 0x12e   :  { %v82_v36 = vadd.f32 1e-05, %v78_v34  ;;  %v83_v37 = vadd.f32 1e-05, %v79_v35  ;;  %v492_v33 = vld [vmem:[#allocation4 + $0x30] sm:$0xff]  ;;  %v507_v35 = vld [vmem:[#allocation4 + $0xa8] sm:$0xff] }
 0x12f   :  { %v76_v38 = vpop.xlane.xlu1 %75  ;;  %v524_v34 = vld [vmem:[#allocation4 + $0x130] sm:$0xff] }
 0x130   :  { %841 = vrsqrt.f32 %v82_v36  ;;  %v80_v39 = vmul.f32 0.0078125, %v76_v38  ;;  %v539_v36 = vld [vmem:[#allocation4 + $0x1a8] sm:$0xff] }
 0x131   :  { %843 = vrsqrt.f32 %v83_v37  ;;  %v491_v37 = vld [vmem:[#allocation4 + $0x28] sm:$0xff] }
 0x132   :  { %v84_v40 = vadd.f32 1e-05, %v80_v39  ;;  %v523_v38 = vld [vmem:[#allocation4 + $0x128] sm:$0xff]  ;;  %v506_v39 = vld [vmem:[#allocation4 + $0xa0] sm:$0xff] }
 0x134   :  { %845 = vrsqrt.f32 %v84_v40  ;;  %v538_v40 = vld [vmem:[#allocation4 + $0x1a0] sm:$0xff] }
 0x139   :  { %v840_v41 = vpop.eup %839 }
 0x13a   :  { %v89_v43 = vmul.f32 %v840_v41, %v1017_v24  ;;  %v490_v41 = vld [vmem:[#allocation4 + $0x20] sm:$0xff] }
 0x13c   :  { %v100_v45 = vmul.f32 %v744_v42, %v89_v43  ;;  %v505_v43 = vld [vmem:[#allocation4 + $0x98] sm:$0xff] }
 0x13d   :  { %v842_v46 = vpop.eup %841 }
 0x13e   :  { %v844_v47 = vpop.eup %843  ;;  %v111_v48 = vadd.f32 %v745_v44, %v100_v45  ;;  %v90_v49 = vmul.f32 %v842_v46, %v1024_v31  ;;  %v532_v31 = vld [vmem:[#allocation4 + $0x170] sm:$0xff]  ;;  %v489_v45 = vld [vmem:[#allocation4 + $0x18] sm:$0xff] }
 0x13f   :  { %v91_v50 = vmul.f32 %v844_v47, %v1019_v25  ;;  %v500_v25 = vld [vmem:[#allocation4 + $0x70] sm:$0xff]  ;;  %v521_v46 = vld [vmem:[#allocation4 + $0x118] sm:$0xff] }
 0x140   :  { %289 = vmatmul.mubr.f32.vlgmr.msra.gmra.mxu0 %v111_v48  ;;  %378 = vmatmul.mubr.f32.vlgmr.msra.gmra.mxu1 %v111_v48  ;;  %v101_v53 = vmul.f32 %v744_v42, %v90_v49  ;;  %v504_v47 = vld [vmem:[#allocation4 + $0x90] sm:$0xff] }
 0x141   :  { %v846_v24 = vpop.eup %845  ;;  %294 = vmatprep.mubr.f32.mxu0 %v906_v22  ;;  %383 = vmatprep.mubr.f32.mxu1 %v906_v22  ;;  %v102_v57 = vmul.f32 %v744_v42, %v91_v50  ;;  %v536_v48 = vld [vmem:[#allocation4 + $0x190] sm:$0xff] }
 0x142   :  { %v112_v56 = vadd.f32 %v745_v44, %v101_v53  ;;  %v92_v58 = vmul.f32 %v846_v24, %v1026_v32  ;;  %748 = vmatpush3.msra.mxu0 %v501_v51  ;;  %792 = vmatpush3.msra.mxu1 %v533_v52  ;;  %v499_v32 = vld [vmem:[#allocation4 + $0x68] sm:$0xff]  ;;  %v488_v49 = vld [vmem:[#allocation4 + $0x10] sm:$0xff]  ;;  %v534_v24 = vld [vmem:[#allocation4 + $0x180] sm:$0xff] }
 0x143   :  { %749 = vmatprep.subr.mxu0 %v516_v54  ;;  %793 = vmatprep.subr.mxu1 %v548_v55  ;;  %v113_v61 = vadd.f32 %v745_v44, %v102_v57  ;;  %v520_v50 = vld [vmem:[#allocation4 + $0x110] sm:$0xff]  ;;  %v503_v51 = vld [vmem:[#allocation4 + $0x88] sm:$0xff]  ;;  %v502_v55 = vld [vmem:[#allocation4 + $0x80] sm:$0xff] }
 0x144   :  { %295 = vmatmul.mubr.f32.gmra.mxu0 %v112_v56  ;;  %384 = vmatmul.mubr.f32.gmra.mxu1 %v112_v56  ;;  %v103_v62 = vmul.f32 %v744_v42, %v92_v58  ;;  %v522_v42 = vld [vmem:[#allocation4 + $0x120] sm:$0xff]  ;;  %v535_v52 = vld [vmem:[#allocation4 + $0x188] sm:$0xff]  ;;  %v204_v58 = vlaneseq }
 0x145   :  { %300 = vmatprep.mubr.f32.mxu0 %v906_v22  ;;  %389 = vmatprep.mubr.f32.mxu1 %v906_v22  ;;  %v487_v53 = vld [vmem:[#allocation4 + $0x8] sm:$0xff]  ;;  %v486_v56 = vld [vmem:[#allocation4] sm:$0xff] }
 0x146   :  { %750 = vmatpush3.msra.mxu0 %v500_v25  ;;  %794 = vmatpush3.msra.mxu1 %v532_v31  ;;  %v114_v1 = vadd.f32 %v745_v44, %v103_v62  ;;  %v537_v44 = vld [vmem:[#allocation4 + $0x198] sm:$0xff]  ;;  %v519_v54 = vld [vmem:[#allocation4 + $0x108] sm:$0xff]  ;;  %v518_v57 = vld [vmem:[#allocation4 + $0x100] sm:$0xff]  ;;  %v205_v25 = vshrl.u32 %v204_v58, 7 }
 0x147   :  { %751 = vmatprep.subr.mxu0 %v515_v59  ;;  %795 = vmatprep.subr.mxu1 %v547_v60  ;;  %v202_v60 = vld [vmem:[%s1282_s4] sm:$0xf] }
 0x148   :  { %301 = vmatmul.mubr.f32.gmra.mxu0 %v113_v61  ;;  %390 = vmatmul.mubr.f32.gmra.mxu1 %v113_v61  ;;  %v206_v31 = vsub.s32 0, %v205_v25  ;;  %v214_v59 = vsub.s32 2, %v205_v25  ;;  %v210_v61 = vsub.s32 1, %v205_v25  ;;  %v218_v62 = vsub.s32 3, %v205_v25 }
 0x149   :  { %306 = vmatprep.mubr.f32.mxu0 %v906_v22  ;;  %395 = vmatprep.mubr.f32.mxu1 %v906_v22  ;;  %v526_v22 = vld [vmem:[#allocation4 + $0x140] sm:$0xff] }
 0x14a   :  { %752 = vmatpush3.msra.mxu0 %v499_v32  ;;  %796 = vmatpush3.msra.mxu1 %v531_v63  ;;  %v207_v32 = vrot.slane %v202_v60, %v206_v31  ;;  %v215_v63 = vrot.slane %v202_v60, %v214_v59 }
 0x14b   :  { %753 = vmatprep.subr.mxu0 %v514_v3  ;;  %797 = vmatprep.subr.mxu1 %v546_v4  ;;  %v211_v4 = vrot.slane %v202_v60, %v210_v61 }
 0x14c   :  { %307 = vmatmul.mubr.f32.gmra.mxu0 %v114_v1  ;;  %396 = vmatmul.mubr.f32.gmra.mxu1 %v114_v1 }
 0x14d   :  { %754 = vmatpush3.msra.mxu0 %v498_v5  ;;  %798 = vmatpush3.msra.mxu1 %v530_v6  ;;  %v219_v5 = vrot.slane %v202_v60, %v218_v62 }
 0x14e   :  { %755 = vmatprep.subr.mxu0 %v513_v7  ;;  %799 = vmatprep.subr.mxu1 %v545_v8 }
 0x14f   :  { %756 = vmatpush3.msra.mxu0 %v497_v9  ;;  %800 = vmatpush3.msra.mxu1 %v529_v10 }
 0x150   :  { %757 = vmatprep.subr.mxu0 %v512_v11  ;;  %801 = vmatprep.subr.mxu1 %v544_v12 }
 0x151   :  { %758 = vmatpush3.msra.mxu0 %v496_v13  ;;  %802 = vmatpush3.msra.mxu1 %v528_v14 }
 0x152   :  { %759 = vmatprep.subr.mxu0 %v511_v15  ;;  %803 = vmatprep.subr.mxu1 %v543_v16 }
 0x153   :  { %760 = vmatpush3.msra.mxu0 %v495_v17  ;;  %804 = vmatpush3.msra.mxu1 %v527_v18 }
 0x154   :  { %761 = vmatprep.subr.mxu0 %v510_v19  ;;  %805 = vmatprep.subr.mxu1 %v542_v20 }
 0x155   :  { %762 = vmatpush3.msra.mxu0 %v494_v21  ;;  %806 = vmatpush3.msra.mxu1 %v526_v22 }
 0x156   :  { %763 = vmatprep.subr.mxu0 %v509_v23  ;;  %807 = vmatprep.subr.mxu1 %v541_v26 }
 0x157   :  { %764 = vmatpush3.msra.mxu0 %v493_v27  ;;  %808 = vmatpush3.msra.mxu1 %v525_v28 }
 0x158   :  { %765 = vmatprep.subr.mxu0 %v508_v29  ;;  %809 = vmatprep.subr.mxu1 %v540_v30 }
 0x159   :  { %766 = vmatpush3.msra.mxu0 %v492_v33  ;;  %810 = vmatpush3.msra.mxu1 %v524_v34 }
 0x15a   :  { %767 = vmatprep.subr.mxu0 %v507_v35  ;;  %811 = vmatprep.subr.mxu1 %v539_v36 }
 0x15b   :  { %768 = vmatpush3.msra.mxu0 %v491_v37  ;;  %812 = vmatpush3.msra.mxu1 %v523_v38 }
 0x15c   :  { %769 = vmatprep.subr.mxu0 %v506_v39  ;;  %813 = vmatprep.subr.mxu1 %v538_v40 }
 0x15d   :  { %770 = vmatpush3.msra.mxu0 %v490_v41  ;;  %814 = vmatpush3.msra.mxu1 %v522_v42 }
 0x15e   :  { %771 = vmatprep.subr.mxu0 %v505_v43  ;;  %815 = vmatprep.subr.mxu1 %v537_v44 }
 0x15f   :  { %772 = vmatpush3.msra.mxu0 %v489_v45  ;;  %816 = vmatpush3.msra.mxu1 %v521_v46 }
 0x160   :  { %773 = vmatprep.subr.mxu0 %v504_v47  ;;  %817 = vmatprep.subr.mxu1 %v536_v48 }
 0x161   :  { %774 = vmatpush3.msra.mxu0 %v488_v49  ;;  %818 = vmatpush3.msra.mxu1 %v520_v50 }
 0x162   :  { %775 = vmatprep.subr.mxu0 %v503_v51  ;;  %819 = vmatprep.subr.mxu1 %v535_v52 }
 0x163   :  { %776 = vmatpush3.msra.mxu0 %v487_v53  ;;  %820 = vmatpush3.msra.mxu1 %v519_v54 }
 0x164   :  { %777 = vmatprep.subr.mxu0 %v502_v55  ;;  %821 = vmatprep.subr.mxu1 %v534_v24 }
 0x165   :  { %778 = vmatpush3.msra.mxu0 %v486_v56  ;;  %822 = vmatpush3.msra.mxu1 %v518_v57 }
 0x200   :  { %v290_v1 = vpop.f32.mrf.mxu0  ;;  %v379_v3 = vpop.f32.mrf.mxu1 }
 0x201   :  { %v1199_v6 = vadd.f32 %v290_v1, %v207_v32  ;;  %v1201_v7 = vadd.f32 %v379_v3, %v215_v63 }
 0x202   :  { %v292_v8 = vpop.f32.mrf.mxu0  ;;  %v381_v9 = vpop.f32.mrf.mxu1 }
 0x203   :  { %v418_v10 = vmul.f32 0.70710677, %v1199_v6  ;;  %v420_v11 = vmul.f32 0.70710677, %v1201_v7  ;;  %v293_v12 = vadd.f32 %v292_v8, %v211_v4  ;;  %v1205_v13 = vadd.f32 %v381_v9, %v219_v5 }
 0x204   :  { %v296_v14 = vpop.f32.mrf.mxu0  ;;  %v385_v15 = vpop.f32.mrf.mxu1  ;;  %v402_v62 = vmul.f32 0.5, %v1199_v6  ;;  %v404_v3 = vmul.f32 0.5, %v1201_v7 }
 0x205   :  { %847 = verf.f32 %v418_v10  ;;  %v1207_v16 = vadd.f32 %v296_v14, %v207_v32  ;;  %v1209_v17 = vadd.f32 %v385_v15, %v215_v63  ;;  %v419_v18 = vmul.f32 0.70710677, %v293_v12 }
 0x206   :  { %849 = verf.f32 %v420_v11  ;;  %v298_v19 = vpop.f32.mrf.mxu0  ;;  %v387_v20 = vpop.f32.mrf.mxu1  ;;  %v421_v21 = vmul.f32 0.70710677, %v1205_v13  ;;  %v403_v59 = vmul.f32 0.5, %v293_v12 }
 0x207   :  { %v422_v22 = vmul.f32 0.70710677, %v1207_v16  ;;  %851 = verf.f32 %v419_v18  ;;  %v424_v23 = vmul.f32 0.70710677, %v1209_v17  ;;  %v299_v26 = vadd.f32 %v298_v19, %v211_v4 }
 0x208   :  { %v1214_v27 = vadd.f32 %v387_v20, %v219_v5  ;;  %v302_v28 = vpop.f32.mrf.mxu0  ;;  %v391_v29 = vpop.f32.mrf.mxu1  ;;  %853 = verf.f32 %v421_v21  ;;  %v406_v6 = vmul.f32 0.5, %v1207_v16  ;;  %v408_v21 = vmul.f32 0.5, %v1209_v17 }
 0x209   :  { %v1216_v30 = vadd.f32 %v302_v28, %v207_v32  ;;  %v1218_v33 = vadd.f32 %v391_v29, %v215_v63  ;;  %855 = verf.f32 %v422_v22  ;;  %v423_v34 = vmul.f32 0.70710677, %v299_v26 }
 0x20a   :  { %v304_v35 = vpop.f32.mrf.mxu0  ;;  %v393_v36 = vpop.f32.mrf.mxu1  ;;  %857 = verf.f32 %v424_v23  ;;  %v425_v37 = vmul.f32 0.70710677, %v1214_v27  ;;  %v407_v15 = vmul.f32 0.5, %v299_v26 }
 0x20b   :  { %v426_v38 = vmul.f32 0.70710677, %v1216_v30  ;;  %859 = verf.f32 %v423_v34  ;;  %v428_v39 = vmul.f32 0.70710677, %v1218_v33  ;;  %v1223_v40 = vadd.f32 %v304_v35, %v211_v4 }
 0x20c   :  { %v308_v41 = vpop.f32.mrf.mxu0  ;;  %v397_v42 = vpop.f32.mrf.mxu1  ;;  %861 = verf.f32 %v425_v37  ;;  %v1225_v43 = vadd.f32 %v393_v36, %v219_v5 }
 0x20d   :  { %v1227_v44 = vadd.f32 %v308_v41, %v207_v32  ;;  %v1229_v45 = vadd.f32 %v397_v42, %v215_v63  ;;  %863 = verf.f32 %v426_v38  ;;  %v427_v46 = vmul.f32 0.70710677, %v1223_v40 }
 0x20e   :  { %v310_v47 = vpop.f32.mrf.mxu0  ;;  %v399_v48 = vpop.f32.mrf.mxu1  ;;  %865 = verf.f32 %v428_v39  ;;  %v429_v49 = vmul.f32 0.70710677, %v1225_v43  ;;  %v405_v32 = vmul.f32 0.5, %v1205_v13  ;;  %v409_v13 = vmul.f32 0.5, %v1214_v27 }
 0x20f   :  { %867 = verf.f32 %v427_v46  ;;  %v430_v50 = vmul.f32 0.70710677, %v1227_v44  ;;  %v432_v51 = vmul.f32 0.70710677, %v1229_v45  ;;  %v1235_v52 = vadd.f32 %v310_v47, %v211_v4 }
 0x210   :  { %869 = verf.f32 %v429_v49  ;;  %v1237_v53 = vadd.f32 %v399_v48, %v219_v5  ;;  %v411_v35 = vmul.f32 0.5, %v1223_v40  ;;  %v410_v38 = vmul.f32 0.5, %v1216_v30 }
 0x211   :  { %871 = verf.f32 %v430_v50  ;;  %v431_v24 = vmul.f32 0.70710677, %v1235_v52  ;;  %v413_v39 = vmul.f32 0.5, %v1225_v43  ;;  %v412_v42 = vmul.f32 0.5, %v1218_v33 }
 0x212   :  { %v848_v54 = vpop.eup %847  ;;  %873 = verf.f32 %v432_v51  ;;  %v433_v56 = vmul.f32 0.70710677, %v1237_v53 }
 0x213   :  { %v850_v55 = vpop.eup %849  ;;  %v450_v58 = vadd.f32 1.0, %v848_v54  ;;  %875 = verf.f32 %v431_v24  ;;  %v415_v54 = vmul.f32 0.5, %v1235_v52  ;;  %v417_v24 = vmul.f32 0.5, %v1237_v53 }
 0x214   :  { %v852_v57 = vpop.eup %851  ;;  %v452_v31 = vadd.f32 1.0, %v850_v55  ;;  %877 = verf.f32 %v433_v56  ;;  %v414_v55 = vmul.f32 0.5, %v1227_v44  ;;  %v416_v56 = vmul.f32 0.5, %v1229_v45 }
 0x215   :  { %v854_v25 = vpop.eup %853  ;;  %v451_v60 = vadd.f32 1.0, %v852_v57  ;;  %v466_v8 = vmul.f32 %v450_v58, %v402_v62 }
 0x216   :  { %v856_v61 = vpop.eup %855  ;;  %v453_v63 = vadd.f32 1.0, %v854_v25  ;;  %v468_v14 = vmul.f32 %v452_v31, %v404_v3 }
 0x217   :  { %v858_v1 = vpop.eup %857  ;;  %v467_v4 = vmul.f32 %v451_v60, %v403_v59  ;;  %v454_v10 = vadd.f32 1.0, %v856_v61  ;;  %v746_v59 = vld [vmem:[%s1284_s6] ss:$0 sm:$0xff] }
 0x218   :  { %v860_v5 = vpop.eup %859  ;;  %v469_v9 = vmul.f32 %v453_v63, %v405_v32  ;;  %v456_v18 = vadd.f32 1.0, %v858_v1  ;;  %v126_v62 = vadd.f32 %v746_v59, %v953_v0 }
 0x219   :  { %v862_v11 = vpop.eup %861  ;;  %614 = vmatprep.mubr.f32.mxu0 %v467_v4  ;;  %v455_v12 = vadd.f32 1.0, %v860_v5  ;;  %v470_v29 = vmul.f32 %v454_v10, %v406_v6 }
 0x21a   :  { %v864_v19 = vpop.eup %863  ;;  %699 = vmatprep.mubr.f32.mxu1 %v469_v9  ;;  %615 = vmatmul.mubr.f32.vlgmr.msra.gmra.mxu0 %v466_v8  ;;  %v457_v20 = vadd.f32 1.0, %v862_v11  ;;  %v472_v36 = vmul.f32 %v456_v18, %v408_v21  ;;  %v127_v8 = vadd.f32 %v746_v59, %v962_v2 }
 0x21b   :  { %v866_v7 = vpop.eup %865  ;;  %700 = vmatmul.mubr.f32.vlgmr.msra.gmra.mxu1 %v468_v14  ;;  %v471_v22 = vmul.f32 %v455_v12, %v407_v15  ;;  %v458_v26 = vadd.f32 1.0, %v864_v19  ;;  %v879_v19 = vld [vmem:[%s1278_s0 + $0x10] sm:$0xff] }
 0x21c   :  { %v868_v23 = vpop.eup %867  ;;  %v473_v28 = vmul.f32 %v457_v20, %v409_v13  ;;  %v460_v37 = vadd.f32 1.0, %v866_v7  ;;  %v128_v6 = vadd.f32 %v879_v19, %v746_v59 }
 0x21d   :  { %v870_v34 = vpop.eup %869  ;;  %619 = vmatprep.mubr.f32.mxu0 %v471_v22  ;;  %v459_v16 = vadd.f32 1.0, %v868_v23  ;;  %v474_v48 = vmul.f32 %v458_v26, %v410_v38  ;;  %v880_v26 = vld [vmem:[%s1278_s0 + $0x18] sm:$0xff] }
 0x21e   :  { %v872_v27 = vpop.eup %871  ;;  %704 = vmatprep.mubr.f32.mxu1 %v473_v28  ;;  %620 = vmatmul.mubr.f32.gmra.mxu0 %v470_v29  ;;  %v461_v17 = vadd.f32 1.0, %v870_v34  ;;  %v476_v49 = vmul.f32 %v460_v37, %v412_v42  ;;  %v129_v34 = vadd.f32 %v880_v26, %v746_v59 }
 0x21f   :  { %v874_v41 = vpop.eup %873  ;;  %705 = vmatmul.mubr.f32.gmra.mxu1 %v472_v36  ;;  %v475_v46 = vmul.f32 %v459_v16, %v411_v35  ;;  %v462_v50 = vadd.f32 1.0, %v872_v27 }
 0x220   :  { %v477_v47 = vmul.f32 %v461_v17, %v413_v39  ;;  %v876_v40 = vpop.eup %875  ;;  %v464_v43 = vadd.f32 1.0, %v874_v41 }
 0x221   :  { %624 = vmatprep.mubr.f32.mxu0 %v475_v46  ;;  %v878_v51 = vpop.eup %877  ;;  %v463_v30 = vadd.f32 1.0, %v876_v40  ;;  %v478_v25 = vmul.f32 %v462_v50, %v414_v55 }
 0x222   :  { %709 = vmatprep.mubr.f32.mxu1 %v477_v47  ;;  %625 = vmatmul.mubr.f32.gmra.mxu0 %v474_v48  ;;  %v465_v33 = vadd.f32 1.0, %v878_v51  ;;  %v480_v31 = vmul.f32 %v464_v43, %v416_v56 }
 0x223   :  { %710 = vmatmul.mubr.f32.gmra.mxu1 %v476_v49  ;;  %v479_v57 = vmul.f32 %v463_v30, %v415_v54 }
 0x224   :  { %v481_v58 = vmul.f32 %v465_v33, %v417_v24 }
 0x225   :  { %629 = vmatprep.mubr.f32.mxu0 %v479_v57 }
 0x226   :  { %714 = vmatprep.mubr.f32.mxu1 %v481_v58  ;;  %630 = vmatmul.mubr.f32.gmra.mxu0 %v478_v25 }
 0x227   :  { %715 = vmatmul.mubr.f32.gmra.mxu1 %v480_v31 }
 0x2da   :  { %v779_v52 = vpop.f32.mrf.mxu0 }
 0x2db   :  { %v823_v44 = vpop.f32.mrf.mxu1 }
 0x2dc   :  { %v780_v60 = vpop.f32.mrf.mxu0 }
 0x2dd   :  { %v781_v53 = vadd.f32 %v780_v60, %v779_v52  ;;  %v824_v61 = vpop.f32.mrf.mxu1 }
 0x2de   :  { %v825_v45 = vadd.f32 %v824_v61, %v823_v44  ;;  %v782_v32 = vpop.f32.mrf.mxu0 }
 0x2df   :  { %v826_v63 = vpop.f32.mrf.mxu1 }
 0x2e0   :  { %v702_v1 = vadd.f32 %v825_v45, %v781_v53  ;;  %v783_v3 = vpop.f32.mrf.mxu0 }
 0x2e1   :  { %v784_v4 = vadd.f32 %v783_v3, %v782_v32  ;;  %v827_v5 = vpop.f32.mrf.mxu1 }
 0x2e2   :  { %v720_v9 = vadd.f32 %v702_v1, %v126_v62  ;;  %v828_v10 = vadd.f32 %v827_v5, %v826_v63  ;;  %v785_v11 = vpop.f32.mrf.mxu0 }
 0x2e3   :  { %v829_v14 = vpop.f32.mrf.mxu1 }
 0x2e4   :  { %735 = vst [vmem:[%s1285_s7] sm:$0xff] %v720_v9  ;;  %v707_v15 = vadd.f32 %v828_v10, %v784_v4  ;;  %v786_v12 = vpop.f32.mrf.mxu0 }
 0x2e5   :  { %v787_v0 = vadd.f32 %v786_v12, %v785_v11  ;;  %v830_v18 = vpop.f32.mrf.mxu1 }
 0x2e6   :  { %v721_v13 = vadd.f32 %v707_v15, %v127_v8  ;;  %v831_v20 = vadd.f32 %v830_v18, %v829_v14  ;;  %v788_v2 = vpop.f32.mrf.mxu0 }
 0x2e7   :  { %v832_v21 = vpop.f32.mrf.mxu1 }
 0x2e8   :  { %736 = vst [vmem:[%s1285_s7 + $0x8] sm:$0xff] %v721_v13  ;;  %v712_v7 = vadd.f32 %v831_v20, %v787_v0  ;;  %v789_v22 = vpop.f32.mrf.mxu0 }
 0x2e9   :  { %v790_v28 = vadd.f32 %v789_v22, %v788_v2  ;;  %v833_v29 = vpop.f32.mrf.mxu1 }
 0x2ea   :  { %v722_v23 = vadd.f32 %v712_v7, %v128_v6  ;;  %v834_v35 = vadd.f32 %v833_v29, %v832_v21 }
 0x2ec   :  { %737 = vst [vmem:[%s1285_s7 + $0x10] sm:$0xff] %v722_v23  ;;  %v717_v36 = vadd.f32 %v834_v35, %v790_v28 }
 0x2ee   :  { %v723_v16 = vadd.f32 %v717_v36, %v129_v34 }
 0x2f0   :  { %738 = vst [vmem:[%s1285_s7 + $0x18] sm:$0xff] %v723_v16 }
 0x2f1   :  { %743 = vsyncpa [#allocation5], 1 }

// kernel: transformer_encoder_forward.13
= control target key start
LH: loop header
LB: loop body
LE: loop exit
PB: predicated region body
PF: predicated region fallthrough
CT: control target
= control target key end

     0   :  { %s185_s0 = inlined_call_operand.vmem [shape: f32[32,128], index: 0, kind: input, shape index: {}]   ;;  %s186_s1 = inlined_call_operand.vmem [shape: f32[1,128], index: 1, kind: input, shape index: {}]   ;;  %s187_s2 = inlined_call_operand.vmem [shape: f32[1,128], index: 2, kind: input, shape index: {}]   ;;  %s188_s3 = inlined_call_operand.hbm [shape: f32[32,128], index: 3, kind: output, shape index: {}]  }
   0x1   :  { %v15_v0 = vld [vmem:[%s185_s0] sm:$0xff]  ;;  %v17_v1 = vld [vmem:[%s185_s0 + $0x10] sm:$0xff] }
   0x2   :  { %19 = vadd.xlane.f32.xlu0 %v15_v0  ;;  %23 = vadd.xlane.f32.xlu1 %v17_v1 }
   0x3   :  { %8 = vsyncpa [#allocation3], 0  ;;  %v16_v2 = vld [vmem:[%s185_s0 + $0x8] sm:$0xff]  ;;  %v18_v3 = vld [vmem:[%s185_s0 + $0x18] sm:$0xff]  ;;  %s141_s23 = smov [#allocation2]  }
   0x4   :  { %v106_v33 = vld [vmem:[%s186_s1] ss:$0 sm:$0xff]  ;;  %s95_s1 = sshll.u32 %s141_s23, 4  ;;  %s96_s1 = int_to_ptr.vmem [resolvable:$true] %s95_s1 }
   0x5   :  { %v107_v35 = vld [vmem:[%s187_s2] ss:$0 sm:$0xff]  ;;  %s119_s2 = scalar_lea.vmem %s96_s1, 512  ;;  %p124_p1 = scmp.lt.s32.totalorder %s96_s1, %s96_s1 }
   0x6   :  { %21 = vadd.xlane.f32.xlu0 %v16_v2  ;;  %25 = vadd.xlane.f32.xlu1 %v18_v3  ;;  %p120_p0 = scmp.ne.s32.totalorder %s96_s1, %s119_s2  ;;  %p125_p2 = scmp.lt.s32.totalorder %s119_s2, %s119_s2 }
   0x8   :  { %p126_p3 = por %p125_p2, %p124_p1 }
   0xa   :  { %p127_p4 = pnand %p126_p3, %p120_p0 }
  0x8b   :  { %v20_v4 = vpop.xlane.xlu0 %19  ;;  %v24_v5 = vpop.xlane.xlu1 %23 }
  0x8c   :  { %v28_v6 = vmul.f32 0.0078125, %v20_v4  ;;  %v30_v7 = vmul.f32 0.0078125, %v24_v5 }
  0x8e   :  { %v32_v8 = vsub.f32 %v15_v0, %v28_v6  ;;  %v34_v9 = vsub.f32 %v17_v1, %v30_v7 }
  0x8f   :  { %v22_v10 = vpop.xlane.xlu0 %21  ;;  %v26_v11 = vpop.xlane.xlu1 %25 }
  0x90   :  { %v29_v12 = vmul.f32 0.0078125, %v22_v10  ;;  %v36_v13 = vmul.f32 %v32_v8, %v32_v8  ;;  %v31_v14 = vmul.f32 0.0078125, %v26_v11  ;;  %v38_v17 = vmul.f32 %v34_v9, %v34_v9 }
  0x92   :  { %v33_v15 = vsub.f32 %v16_v2, %v29_v12  ;;  %40 = vadd.xlane.f32.xlu0 %v36_v13  ;;  %v35_v16 = vsub.f32 %v18_v3, %v31_v14 }
  0x94   :  { %v37_v18 = vmul.f32 %v33_v15, %v33_v15  ;;  %v39_v19 = vmul.f32 %v35_v16, %v35_v16 }
  0x96   :  { %44 = vadd.xlane.f32.xlu0 %v38_v17  ;;  %42 = vadd.xlane.f32.xlu1 %v37_v18 }
  0x9a   :  { %46 = vadd.xlane.f32.xlu1 %v39_v19 }
 0x11b   :  { %v41_v20 = vpop.xlane.xlu0 %40 }
 0x11c   :  { %v48_v21 = vmul.f32 0.0078125, %v41_v20 }
 0x11e   :  { %v52_v22 = vadd.f32 1e-05, %v48_v21 }
 0x11f   :  { %v43_v23 = vpop.xlane.xlu1 %42  ;;  %v45_v24 = vpop.xlane.xlu0 %44 }
 0x120   :  { %111 = vrsqrt.f32 %v52_v22  ;;  %v49_v25 = vmul.f32 0.0078125, %v43_v23  ;;  %v50_v26 = vmul.f32 0.0078125, %v45_v24 }
 0x122   :  { %v53_v27 = vadd.f32 1e-05, %v49_v25  ;;  %v54_v28 = vadd.f32 1e-05, %v50_v26 }
 0x123   :  { %v47_v29 = vpop.xlane.xlu1 %46 }
 0x124   :  { %113 = vrsqrt.f32 %v53_v27  ;;  %v51_v30 = vmul.f32 0.0078125, %v47_v29 }
 0x125   :  { %115 = vrsqrt.f32 %v54_v28 }
 0x126   :  { %v55_v31 = vadd.f32 1e-05, %v51_v30 }
 0x128   :  { %117 = vrsqrt.f32 %v55_v31 }
 0x12d   :  { %v112_v32 = vpop.eup %111 }
 0x12e   :  { %v60_v34 = vmul.f32 %v112_v32, %v32_v8 }
 0x130   :  { %v71_v36 = vmul.f32 %v106_v33, %v60_v34 }
 0x131   :  { %v114_v37 = vpop.eup %113 }
 0x132   :  { %v116_v38 = vpop.eup %115  ;;  %v61_v39 = vmul.f32 %v114_v37, %v33_v15  ;;  %v82_v40 = vadd.f32 %v107_v35, %v71_v36 }
 0x133   :  { %v62_v41 = vmul.f32 %v116_v38, %v34_v9 }
 0x134   :  { %v72_v42 = vmul.f32 %v106_v33, %v61_v39  ;;  %86 = vst [vmem:[#allocation2] sm:$0xff] %v82_v40 }
 0x135   :  { %v118_v43 = vpop.eup %117  ;;  %v73_v44 = vmul.f32 %v106_v33, %v62_v41 }
 0x136   :  { %v63_v45 = vmul.f32 %v118_v43, %v35_v16  ;;  %v83_v46 = vadd.f32 %v107_v35, %v72_v42 }
 0x137   :  { %v84_v47 = vadd.f32 %v107_v35, %v73_v44 }
 0x138   :  { %v74_v48 = vmul.f32 %v106_v33, %v63_v45  ;;  %87 = vst [vmem:[#allocation2 + $0x8] sm:$0xff] %v83_v46 }
 0x139   :  { %88 = vst [vmem:[#allocation2 + $0x10] sm:$0xff] %v84_v47 }
 0x13a   :  { %v85_v49 = vadd.f32 %v107_v35, %v74_v48 }
 0x13c   :  { %89 = vst [vmem:[#allocation2 + $0x18] sm:$0xff] %v85_v49 }
 0x13d   :  { %130 = shalt.err (!%p127_p4)
}
 0x13e   :  { %s142_s24 = smov 128   ;;  %s143_s25 = smov 8  }
 0x13f   :  { %101 = dma.vmem_to_hbm [thread:$0]  %s96_s1, 512, %s188_s3, [#allocation3], %s142_s24, %s142_s24, %s143_s25  }
 0x140   :  { %139 = dma.done.wait [#allocation3], 512  }
 0x141   :  { %140 = vsyncadd [#allocation3], 4294966784 }
 0x142   :  { %105 = vsyncpa [#allocation3], 1 }

// kernel: transformer_encoder_forward.12
= control target key start
LH: loop header
LB: loop body
LE: loop exit
PB: predicated region body
PF: predicated region fallthrough
CT: control target
= control target key end

     0   :  { %s1424_s0 = inlined_call_operand.vmem [shape: f32[32,128], index: 0, kind: input, shape index: {}]   ;;  %s1425_s3 = inlined_call_operand.vmem [shape: f32[128,512], index: 3, kind: input, shape index: {}]   ;;  %s1426_s5 = inlined_call_operand.vmem [shape: f32[512,128], index: 5, kind: input, shape index: {}]   ;;  %s1427_s1 = inlined_call_operand.vmem [shape: f32[1,128], index: 1, kind: input, shape index: {}]   ;;  %s1428_s2 = inlined_call_operand.vmem [shape: f32[1,128], index: 2, kind: input, shape index: {}]   ;;  %s1429_s4 = inlined_call_operand.vmem [shape: f32[1,512], index: 4, kind: input, shape index: {}]   ;;  %s1430_s6 = inlined_call_operand.vmem [shape: f32[1,128], index: 6, kind: input, shape index: {}]   ;;  %s1431_s7 = inlined_call_operand.vmem [shape: f32[32,128], index: 7, kind: output, shape index: {}]  }
   0x1   :  { %v907_v0 = vld [vmem:[%s1424_s0] sm:$0xff]  ;;  %v32_v1 = vld [vmem:[%s1424_s0 + $0x10] sm:$0xff]  ;;  %v916_v2 = vld [vmem:[%s1424_s0 + $0x8] sm:$0xff] }
   0x2   :  { %34 = vadd.xlane.f32.xlu0 %v907_v0  ;;  %38 = vadd.xlane.f32.xlu1 %v32_v1  ;;  %v33_v3 = vld [vmem:[%s1424_s0 + $0x18] sm:$0xff]  ;;  %v185_v4 = vld [vmem:[%s1425_s3 + $0x1e8] sm:$0xff]  ;;  %v184_v6 = vld [vmem:[%s1425_s3 + $0x1e0] sm:$0xff] }
   0x3   :  { %v187_v5 = vld [vmem:[%s1425_s3 + $0x1f8] sm:$0xff]  ;;  %210 = vmatprep.subr.mxu0 %v185_v4  ;;  %v186_v7 = vld [vmem:[%s1425_s3 + $0x1f0] sm:$0xff]  ;;  %v181_v8 = vld [vmem:[%s1425_s3 + $0x1c8] sm:$0xff] }
   0x4   :  { %299 = vmatprep.subr.mxu1 %v187_v5  ;;  %v183_v9 = vld [vmem:[%s1425_s3 + $0x1d8] sm:$0xff]  ;;  %211 = vmatpush1.msra.mxu0 %v184_v6  ;;  %v180_v10 = vld [vmem:[%s1425_s3 + $0x1c0] sm:$0xff]  ;;  %v182_v11 = vld [vmem:[%s1425_s3 + $0x1d0] sm:$0xff] }
   0x5   :  { %300 = vmatpush1.msra.mxu1 %v186_v7  ;;  %v177_v12 = vld [vmem:[%s1425_s3 + $0x1a8] sm:$0xff]  ;;  %212 = vmatprep.subr.mxu0 %v181_v8  ;;  %v179_v13 = vld [vmem:[%s1425_s3 + $0x1b8] sm:$0xff]  ;;  %v176_v14 = vld [vmem:[%s1425_s3 + $0x1a0] sm:$0xff] }
   0x6   :  { %36 = vadd.xlane.f32.xlu0 %v916_v2  ;;  %40 = vadd.xlane.f32.xlu1 %v33_v3  ;;  %v178_v15 = vld [vmem:[%s1425_s3 + $0x1b0] sm:$0xff]  ;;  %v173_v16 = vld [vmem:[%s1425_s3 + $0x188] sm:$0xff]  ;;  %v175_v17 = vld [vmem:[%s1425_s3 + $0x198] sm:$0xff] }
   0x7   :  { %301 = vmatprep.subr.mxu1 %v183_v9  ;;  %213 = vmatpush1.msra.mxu0 %v180_v10  ;;  %v172_v18 = vld [vmem:[%s1425_s3 + $0x180] sm:$0xff]  ;;  %v174_v19 = vld [vmem:[%s1425_s3 + $0x190] sm:$0xff]  ;;  %v169_v36 = vld [vmem:[%s1425_s3 + $0x168] sm:$0xff] }
   0x8   :  { %302 = vmatpush1.msra.mxu1 %v182_v11  ;;  %214 = vmatprep.subr.mxu0 %v177_v12  ;;  %v171_v37 = vld [vmem:[%s1425_s3 + $0x178] sm:$0xff]  ;;  %v168_v38 = vld [vmem:[%s1425_s3 + $0x160] sm:$0xff]  ;;  %v170_v39 = vld [vmem:[%s1425_s3 + $0x170] sm:$0xff] }
   0x9   :  { %303 = vmatprep.subr.mxu1 %v179_v13  ;;  %215 = vmatpush1.msra.mxu0 %v176_v14  ;;  %v165_v40 = vld [vmem:[%s1425_s3 + $0x148] sm:$0xff]  ;;  %v167_v41 = vld [vmem:[%s1425_s3 + $0x158] sm:$0xff]  ;;  %v164_v42 = vld [vmem:[%s1425_s3 + $0x140] sm:$0xff] }
   0xa   :  { %304 = vmatpush1.msra.mxu1 %v178_v15  ;;  %216 = vmatprep.subr.mxu0 %v173_v16  ;;  %v166_v43 = vld [vmem:[%s1425_s3 + $0x150] sm:$0xff]  ;;  %v161_v44 = vld [vmem:[%s1425_s3 + $0x128] sm:$0xff]  ;;  %v163_v45 = vld [vmem:[%s1425_s3 + $0x138] sm:$0xff] }
   0xb   :  { %305 = vmatprep.subr.mxu1 %v175_v17  ;;  %217 = vmatpush1.msra.mxu0 %v172_v18  ;;  %v160_v46 = vld [vmem:[%s1425_s3 + $0x120] sm:$0xff]  ;;  %v162_v47 = vld [vmem:[%s1425_s3 + $0x130] sm:$0xff]  ;;  %v157_v48 = vld [vmem:[%s1425_s3 + $0x108] sm:$0xff] }
   0xc   :  { %306 = vmatpush1.msra.mxu1 %v174_v19  ;;  %218 = vmatprep.subr.mxu0 %v169_v36  ;;  %v159_v49 = vld [vmem:[%s1425_s3 + $0x118] sm:$0xff]  ;;  %v156_v50 = vld [vmem:[%s1425_s3 + $0x100] sm:$0xff]  ;;  %v158_v51 = vld [vmem:[%s1425_s3 + $0x110] sm:$0xff] }
   0xd   :  { %307 = vmatprep.subr.mxu1 %v171_v37  ;;  %219 = vmatpush1.msra.mxu0 %v168_v38  ;;  %v153_v52 = vld [vmem:[%s1425_s3 + $0xe8] sm:$0xff]  ;;  %v155_v53 = vld [vmem:[%s1425_s3 + $0xf8] sm:$0xff]  ;;  %v152_v54 = vld [vmem:[%s1425_s3 + $0xe0] sm:$0xff] }
   0xe   :  { %308 = vmatpush1.msra.mxu1 %v170_v39  ;;  %220 = vmatprep.subr.mxu0 %v165_v40  ;;  %v154_v55 = vld [vmem:[%s1425_s3 + $0xf0] sm:$0xff]  ;;  %v149_v56 = vld [vmem:[%s1425_s3 + $0xc8] sm:$0xff]  ;;  %v151_v57 = vld [vmem:[%s1425_s3 + $0xd8] sm:$0xff] }
   0xf   :  { %309 = vmatprep.subr.mxu1 %v167_v41  ;;  %221 = vmatpush1.msra.mxu0 %v164_v42  ;;  %v148_v58 = vld [vmem:[%s1425_s3 + $0xc0] sm:$0xff]  ;;  %v150_v59 = vld [vmem:[%s1425_s3 + $0xd0] sm:$0xff]  ;;  %v145_v60 = vld [vmem:[%s1425_s3 + $0xa8] sm:$0xff] }
  0x10   :  { %310 = vmatpush1.msra.mxu1 %v166_v43  ;;  %222 = vmatprep.subr.mxu0 %v161_v44  ;;  %v147_v61 = vld [vmem:[%s1425_s3 + $0xb8] sm:$0xff]  ;;  %v144_v62 = vld [vmem:[%s1425_s3 + $0xa0] sm:$0xff]  ;;  %v146_v63 = vld [vmem:[%s1425_s3 + $0xb0] sm:$0xff] }
  0x11   :  { %311 = vmatprep.subr.mxu1 %v163_v45  ;;  %223 = vmatpush1.msra.mxu0 %v160_v46  ;;  %v140_v4 = vld [vmem:[%s1425_s3 + $0x80] sm:$0xff]  ;;  %v142_v5 = vld [vmem:[%s1425_s3 + $0x90] sm:$0xff]  ;;  %v137_v6 = vld [vmem:[%s1425_s3 + $0x68] sm:$0xff] }
  0x12   :  { %312 = vmatpush1.msra.mxu1 %v162_v47  ;;  %224 = vmatprep.subr.mxu0 %v157_v48  ;;  %v139_v7 = vld [vmem:[%s1425_s3 + $0x78] sm:$0xff]  ;;  %v136_v8 = vld [vmem:[%s1425_s3 + $0x60] sm:$0xff]  ;;  %v138_v9 = vld [vmem:[%s1425_s3 + $0x70] sm:$0xff] }
  0x13   :  { %313 = vmatprep.subr.mxu1 %v159_v49  ;;  %225 = vmatpush1.msra.mxu0 %v156_v50  ;;  %v133_v10 = vld [vmem:[%s1425_s3 + $0x48] sm:$0xff]  ;;  %v135_v11 = vld [vmem:[%s1425_s3 + $0x58] sm:$0xff]  ;;  %v132_v12 = vld [vmem:[%s1425_s3 + $0x40] sm:$0xff] }
  0x14   :  { %314 = vmatpush1.msra.mxu1 %v158_v51  ;;  %226 = vmatprep.subr.mxu0 %v153_v52  ;;  %v134_v13 = vld [vmem:[%s1425_s3 + $0x50] sm:$0xff]  ;;  %v129_v14 = vld [vmem:[%s1425_s3 + $0x28] sm:$0xff]  ;;  %v131_v15 = vld [vmem:[%s1425_s3 + $0x38] sm:$0xff] }
  0x15   :  { %315 = vmatprep.subr.mxu1 %v155_v53  ;;  %227 = vmatpush1.msra.mxu0 %v152_v54  ;;  %v128_v16 = vld [vmem:[%s1425_s3 + $0x20] sm:$0xff]  ;;  %v130_v17 = vld [vmem:[%s1425_s3 + $0x30] sm:$0xff]  ;;  %v125_v18 = vld [vmem:[%s1425_s3 + $0x8] sm:$0xff] }
  0x16   :  { %316 = vmatpush1.msra.mxu1 %v154_v55  ;;  %228 = vmatprep.subr.mxu0 %v149_v56  ;;  %v127_v19 = vld [vmem:[%s1425_s3 + $0x18] sm:$0xff]  ;;  %v729_v42 = vld [vmem:[%s1427_s1] ss:$0 sm:$0xff]  ;;  %v502_v53 = vld [vmem:[%s1426_s5 + $0xf0] sm:$0xff] }
  0x17   :  { %317 = vmatprep.subr.mxu1 %v151_v57  ;;  %229 = vmatpush1.msra.mxu0 %v148_v58  ;;  %v730_v44 = vld [vmem:[%s1428_s2] ss:$0 sm:$0xff]  ;;  %v487_v51 = vld [vmem:[%s1426_s5 + $0x78] sm:$0xff]  ;;  %v486_v57 = vld [vmem:[%s1426_s5 + $0x70] sm:$0xff] }
  0x18   :  { %318 = vmatpush1.msra.mxu1 %v150_v59  ;;  %230 = vmatprep.subr.mxu0 %v145_v60  ;;  %v518_v58 = vld [vmem:[%s1426_s5 + $0x170] sm:$0xff]  ;;  %v501_v59 = vld [vmem:[%s1426_s5 + $0xe8] sm:$0xff] }
  0x19   :  { %319 = vmatprep.subr.mxu1 %v147_v61  ;;  %231 = vmatpush1.msra.mxu0 %v144_v62  ;;  %v485_v62 = vld [vmem:[%s1426_s5 + $0x68] sm:$0xff] }
  0x1a   :  { %320 = vmatpush1.msra.mxu1 %v146_v63  ;;  %v517_v63 = vld [vmem:[%s1426_s5 + $0x168] sm:$0xff] }
  0x8b   :  { %v35_v20 = vpop.xlane.xlu0 %34  ;;  %v39_v21 = vpop.xlane.xlu1 %38 }
  0x8c   :  { %v43_v22 = vmul.f32 0.0078125, %v35_v20  ;;  %v45_v23 = vmul.f32 0.0078125, %v39_v21  ;;  %v124_v20 = vld [vmem:[%s1425_s3] sm:$0xff]  ;;  %v126_v21 = vld [vmem:[%s1425_s3 + $0x10] sm:$0xff] }
  0x8e   :  { %v971_v24 = vsub.f32 %v907_v0, %v43_v22  ;;  %v973_v25 = vsub.f32 %v32_v1, %v45_v23  ;;  %v141_v1 = vld [vmem:[%s1425_s3 + $0x88] sm:$0xff]  ;;  %v863_v22 = vmov 0.0   ;;  %v503_v23 = vld [vmem:[%s1426_s5 + $0xf8] sm:$0xff] }
  0x8f   :  { %v37_v26 = vpop.xlane.xlu0 %36  ;;  %v41_v27 = vpop.xlane.xlu1 %40  ;;  %232 = vmatprep.subr.mxu0 %v141_v1  ;;  %274 = vmatprep.mubr.f32.mxu0 %v863_v22 }
  0x90   :  { %v44_v28 = vmul.f32 0.0078125, %v37_v26  ;;  %v51_v29 = vmul.f32 %v971_v24, %v971_v24  ;;  %v46_v30 = vmul.f32 0.0078125, %v41_v27  ;;  %v53_v33 = vmul.f32 %v973_v25, %v973_v25  ;;  %233 = vmatpush1.msra.mxu0 %v140_v4  ;;  %363 = vmatprep.mubr.f32.mxu1 %v863_v22  ;;  %v535_v26 = vld [vmem:[%s1426_s5 + $0x1f8] sm:$0xff]  ;;  %v532_v4 = vld [vmem:[%s1426_s5 + $0x1e0] sm:$0xff] }
  0x91   :  { %234 = vmatprep.subr.mxu0 %v137_v6  ;;  %v516_v6 = vld [vmem:[%s1426_s5 + $0x160] sm:$0xff] }
  0x92   :  { %v978_v31 = vsub.f32 %v916_v2, %v44_v28  ;;  %55 = vadd.xlane.f32.xlu0 %v51_v29  ;;  %v980_v32 = vsub.f32 %v33_v3, %v46_v30  ;;  %v143_v3 = vld [vmem:[%s1425_s3 + $0x98] sm:$0xff]  ;;  %235 = vmatpush1.msra.mxu0 %v136_v8 }
  0x93   :  { %321 = vmatprep.subr.mxu1 %v143_v3  ;;  %236 = vmatprep.subr.mxu0 %v133_v10  ;;  %v500_v3 = vld [vmem:[%s1426_s5 + $0xe0] sm:$0xff]  ;;  %v531_v8 = vld [vmem:[%s1426_s5 + $0x1d8] sm:$0xff] }
  0x94   :  { %v52_v34 = vmul.f32 %v978_v31, %v978_v31  ;;  %v54_v35 = vmul.f32 %v980_v32, %v980_v32  ;;  %322 = vmatpush1.msra.mxu1 %v142_v5  ;;  %237 = vmatpush1.msra.mxu0 %v132_v12  ;;  %v484_v5 = vld [vmem:[%s1426_s5 + $0x60] sm:$0xff]  ;;  %v515_v10 = vld [vmem:[%s1426_s5 + $0x158] sm:$0xff]  ;;  %v530_v12 = vld [vmem:[%s1426_s5 + $0x1d0] sm:$0xff] }
  0x95   :  { %323 = vmatprep.subr.mxu1 %v139_v7  ;;  %238 = vmatprep.subr.mxu0 %v129_v14  ;;  %v499_v7 = vld [vmem:[%s1426_s5 + $0xd8] sm:$0xff]  ;;  %v514_v14 = vld [vmem:[%s1426_s5 + $0x150] sm:$0xff] }
  0x96   :  { %59 = vadd.xlane.f32.xlu0 %v53_v33  ;;  %57 = vadd.xlane.f32.xlu1 %v52_v34 }
  0x97   :  { %324 = vmatpush1.msra.mxu1 %v138_v9  ;;  %239 = vmatpush1.msra.mxu0 %v128_v16  ;;  %v483_v9 = vld [vmem:[%s1426_s5 + $0x58] sm:$0xff]  ;;  %v529_v16 = vld [vmem:[%s1426_s5 + $0x1c8] sm:$0xff] }
  0x98   :  { %325 = vmatprep.subr.mxu1 %v135_v11  ;;  %240 = vmatprep.subr.mxu0 %v125_v18  ;;  %v498_v11 = vld [vmem:[%s1426_s5 + $0xd0] sm:$0xff]  ;;  %v513_v18 = vld [vmem:[%s1426_s5 + $0x148] sm:$0xff] }
  0x99   :  { %326 = vmatpush1.msra.mxu1 %v134_v13  ;;  %241 = vmatpush1.msra.mxu0 %v124_v20  ;;  %v482_v13 = vld [vmem:[%s1426_s5 + $0x50] sm:$0xff]  ;;  %v528_v20 = vld [vmem:[%s1426_s5 + $0x1c0] sm:$0xff] }
  0x9a   :  { %61 = vadd.xlane.f32.xlu1 %v54_v35  ;;  %327 = vmatprep.subr.mxu1 %v131_v15  ;;  %v497_v15 = vld [vmem:[%s1426_s5 + $0xc8] sm:$0xff] }
  0x9b   :  { %328 = vmatpush1.msra.mxu1 %v130_v17  ;;  %732 = vmatprep.subr.mxu0 %v503_v23  ;;  %v481_v17 = vld [vmem:[%s1426_s5 + $0x48] sm:$0xff]  ;;  %v495_v23 = vld [vmem:[%s1426_s5 + $0xb8] sm:$0xff] }
  0x9c   :  { %329 = vmatprep.subr.mxu1 %v127_v19  ;;  %v496_v19 = vld [vmem:[%s1426_s5 + $0xc0] sm:$0xff] }
  0x9d   :  { %330 = vmatpush1.msra.mxu1 %v126_v21  ;;  %v480_v21 = vld [vmem:[%s1426_s5 + $0x40] sm:$0xff] }
  0x9e   :  { %776 = vmatprep.subr.mxu1 %v535_v26  ;;  %v527_v26 = vld [vmem:[%s1426_s5 + $0x1b8] sm:$0xff] }
 0x11b   :  { %v56_v27 = vpop.xlane.xlu0 %55 }
 0x11c   :  { %v63_v28 = vmul.f32 0.0078125, %v56_v27  ;;  %v479_v27 = vld [vmem:[%s1426_s5 + $0x38] sm:$0xff] }
 0x11e   :  { %v67_v29 = vadd.f32 1e-05, %v63_v28  ;;  %v511_v28 = vld [vmem:[%s1426_s5 + $0x138] sm:$0xff] }
 0x11f   :  { %v58_v30 = vpop.xlane.xlu1 %57  ;;  %v60_v33 = vpop.xlane.xlu0 %59 }
 0x120   :  { %821 = vrsqrt.f32 %v67_v29  ;;  %v64_v34 = vmul.f32 0.0078125, %v58_v30  ;;  %v65_v35 = vmul.f32 0.0078125, %v60_v33  ;;  %v494_v29 = vld [vmem:[%s1426_s5 + $0xb0] sm:$0xff] }
 0x121   :  { %v526_v30 = vld [vmem:[%s1426_s5 + $0x1b0] sm:$0xff] }
 0x122   :  { %v68_v36 = vadd.f32 1e-05, %v64_v34  ;;  %v69_v37 = vadd.f32 1e-05, %v65_v35  ;;  %v478_v33 = vld [vmem:[%s1426_s5 + $0x30] sm:$0xff]  ;;  %v493_v35 = vld [vmem:[%s1426_s5 + $0xa8] sm:$0xff] }
 0x123   :  { %v62_v38 = vpop.xlane.xlu1 %61  ;;  %v510_v34 = vld [vmem:[%s1426_s5 + $0x130] sm:$0xff] }
 0x124   :  { %823 = vrsqrt.f32 %v68_v36  ;;  %v66_v39 = vmul.f32 0.0078125, %v62_v38  ;;  %v525_v36 = vld [vmem:[%s1426_s5 + $0x1a8] sm:$0xff] }
 0x125   :  { %825 = vrsqrt.f32 %v69_v37  ;;  %v477_v37 = vld [vmem:[%s1426_s5 + $0x28] sm:$0xff] }
 0x126   :  { %v70_v40 = vadd.f32 1e-05, %v66_v39  ;;  %v509_v38 = vld [vmem:[%s1426_s5 + $0x128] sm:$0xff]  ;;  %v492_v39 = vld [vmem:[%s1426_s5 + $0xa0] sm:$0xff] }
 0x128   :  { %827 = vrsqrt.f32 %v70_v40  ;;  %v524_v40 = vld [vmem:[%s1426_s5 + $0x1a0] sm:$0xff] }
 0x12d   :  { %v822_v41 = vpop.eup %821 }
 0x12e   :  { %v75_v43 = vmul.f32 %v822_v41, %v971_v24  ;;  %v519_v24 = vld [vmem:[%s1426_s5 + $0x178] sm:$0xff]  ;;  %v476_v41 = vld [vmem:[%s1426_s5 + $0x20] sm:$0xff] }
 0x130   :  { %v86_v45 = vmul.f32 %v729_v42, %v75_v43  ;;  %v491_v43 = vld [vmem:[%s1426_s5 + $0x98] sm:$0xff] }
 0x131   :  { %v824_v46 = vpop.eup %823 }
 0x132   :  { %v826_v47 = vpop.eup %825  ;;  %v97_v48 = vadd.f32 %v730_v44, %v86_v45  ;;  %v76_v49 = vmul.f32 %v824_v46, %v978_v31  ;;  %v534_v31 = vld [vmem:[%s1426_s5 + $0x1f0] sm:$0xff]  ;;  %v475_v45 = vld [vmem:[%s1426_s5 + $0x18] sm:$0xff] }
 0x133   :  { %v77_v50 = vmul.f32 %v826_v47, %v973_v25  ;;  %v507_v46 = vld [vmem:[%s1426_s5 + $0x118] sm:$0xff]  ;;  %v490_v47 = vld [vmem:[%s1426_s5 + $0x90] sm:$0xff] }
 0x134   :  { %275 = vmatmul.mubr.f32.vlgmr.msra.gmra.mxu0 %v97_v48  ;;  %364 = vmatmul.mubr.f32.vlgmr.msra.gmra.mxu1 %v97_v48  ;;  %v87_v52 = vmul.f32 %v729_v42, %v76_v49  ;;  %v522_v48 = vld [vmem:[%s1426_s5 + $0x190] sm:$0xff] }
 0x135   :  { %v828_v25 = vpop.eup %827  ;;  %280 = vmatprep.mubr.f32.mxu0 %v863_v22  ;;  %369 = vmatprep.mubr.f32.mxu1 %v863_v22  ;;  %v88_v55 = vmul.f32 %v729_v42, %v77_v50  ;;  %v474_v49 = vld [vmem:[%s1426_s5 + $0x10] sm:$0xff] }
 0x136   :  { %v98_v54 = vadd.f32 %v730_v44, %v87_v52  ;;  %v78_v56 = vmul.f32 %v828_v25, %v980_v32  ;;  %733 = vmatpush3.msra.mxu0 %v487_v51  ;;  %777 = vmatpush3.msra.mxu1 %v519_v24  ;;  %v533_v32 = vld [vmem:[%s1426_s5 + $0x1e8] sm:$0xff]  ;;  %v506_v50 = vld [vmem:[%s1426_s5 + $0x110] sm:$0xff]  ;;  %v520_v25 = vld [vmem:[%s1426_s5 + $0x180] sm:$0xff] }
 0x137   :  { %734 = vmatprep.subr.mxu0 %v502_v53  ;;  %778 = vmatprep.subr.mxu1 %v534_v31  ;;  %v99_v60 = vadd.f32 %v730_v44, %v88_v55  ;;  %v489_v51 = vld [vmem:[%s1426_s5 + $0x88] sm:$0xff]  ;;  %v488_v31 = vld [vmem:[%s1426_s5 + $0x80] sm:$0xff] }
 0x138   :  { %281 = vmatmul.mubr.f32.gmra.mxu0 %v98_v54  ;;  %370 = vmatmul.mubr.f32.gmra.mxu1 %v98_v54  ;;  %v89_v61 = vmul.f32 %v729_v42, %v78_v56  ;;  %v508_v42 = vld [vmem:[%s1426_s5 + $0x120] sm:$0xff]  ;;  %v521_v24 = vld [vmem:[%s1426_s5 + $0x188] sm:$0xff]  ;;  %v190_v56 = vlaneseq }
 0x139   :  { %286 = vmatprep.mubr.f32.mxu0 %v863_v22  ;;  %375 = vmatprep.mubr.f32.mxu1 %v863_v22  ;;  %v473_v52 = vld [vmem:[%s1426_s5 + $0x8] sm:$0xff]  ;;  %v472_v54 = vld [vmem:[%s1426_s5] sm:$0xff] }
 0x13a   :  { %735 = vmatpush3.msra.mxu0 %v486_v57  ;;  %779 = vmatpush3.msra.mxu1 %v518_v58  ;;  %v100_v1 = vadd.f32 %v730_v44, %v89_v61  ;;  %v523_v44 = vld [vmem:[%s1426_s5 + $0x198] sm:$0xff]  ;;  %v505_v53 = vld [vmem:[%s1426_s5 + $0x108] sm:$0xff]  ;;  %v504_v55 = vld [vmem:[%s1426_s5 + $0x100] sm:$0xff]  ;;  %v191_v57 = vshrl.u32 %v190_v56, 7 }
 0x13b   :  { %736 = vmatprep.subr.mxu0 %v501_v59  ;;  %780 = vmatprep.subr.mxu1 %v533_v32  ;;  %v188_v32 = vld [vmem:[%s1429_s4] sm:$0xf] }
 0x13c   :  { %287 = vmatmul.mubr.f32.gmra.mxu0 %v99_v60  ;;  %376 = vmatmul.mubr.f32.gmra.mxu1 %v99_v60  ;;  %v192_v58 = vsub.s32 0, %v191_v57  ;;  %v200_v59 = vsub.s32 2, %v191_v57  ;;  %v196_v60 = vsub.s32 1, %v191_v57  ;;  %v204_v61 = vsub.s32 3, %v191_v57 }
 0x13d   :  { %292 = vmatprep.mubr.f32.mxu0 %v863_v22  ;;  %381 = vmatprep.mubr.f32.mxu1 %v863_v22  ;;  %v512_v22 = vld [vmem:[%s1426_s5 + $0x140] sm:$0xff] }
 0x13e   :  { %737 = vmatpush3.msra.mxu0 %v485_v62  ;;  %781 = vmatpush3.msra.mxu1 %v517_v63  ;;  %v193_v62 = vrot.slane %v188_v32, %v192_v58  ;;  %v201_v63 = vrot.slane %v188_v32, %v200_v59 }
 0x13f   :  { %738 = vmatprep.subr.mxu0 %v500_v3  ;;  %782 = vmatprep.subr.mxu1 %v532_v4  ;;  %v197_v4 = vrot.slane %v188_v32, %v196_v60 }
 0x140   :  { %293 = vmatmul.mubr.f32.gmra.mxu0 %v100_v1  ;;  %382 = vmatmul.mubr.f32.gmra.mxu1 %v100_v1 }
 0x141   :  { %739 = vmatpush3.msra.mxu0 %v484_v5  ;;  %783 = vmatpush3.msra.mxu1 %v516_v6  ;;  %v205_v5 = vrot.slane %v188_v32, %v204_v61 }
 0x142   :  { %740 = vmatprep.subr.mxu0 %v499_v7  ;;  %784 = vmatprep.subr.mxu1 %v531_v8 }
 0x143   :  { %741 = vmatpush3.msra.mxu0 %v483_v9  ;;  %785 = vmatpush3.msra.mxu1 %v515_v10 }
 0x144   :  { %742 = vmatprep.subr.mxu0 %v498_v11  ;;  %786 = vmatprep.subr.mxu1 %v530_v12 }
 0x145   :  { %743 = vmatpush3.msra.mxu0 %v482_v13  ;;  %787 = vmatpush3.msra.mxu1 %v514_v14 }
 0x146   :  { %744 = vmatprep.subr.mxu0 %v497_v15  ;;  %788 = vmatprep.subr.mxu1 %v529_v16 }
 0x147   :  { %745 = vmatpush3.msra.mxu0 %v481_v17  ;;  %789 = vmatpush3.msra.mxu1 %v513_v18 }
 0x148   :  { %746 = vmatprep.subr.mxu0 %v496_v19  ;;  %790 = vmatprep.subr.mxu1 %v528_v20 }
 0x149   :  { %747 = vmatpush3.msra.mxu0 %v480_v21  ;;  %791 = vmatpush3.msra.mxu1 %v512_v22 }
 0x14a   :  { %748 = vmatprep.subr.mxu0 %v495_v23  ;;  %792 = vmatprep.subr.mxu1 %v527_v26 }
 0x14b   :  { %749 = vmatpush3.msra.mxu0 %v479_v27  ;;  %793 = vmatpush3.msra.mxu1 %v511_v28 }
 0x14c   :  { %750 = vmatprep.subr.mxu0 %v494_v29  ;;  %794 = vmatprep.subr.mxu1 %v526_v30 }
 0x14d   :  { %751 = vmatpush3.msra.mxu0 %v478_v33  ;;  %795 = vmatpush3.msra.mxu1 %v510_v34 }
 0x14e   :  { %752 = vmatprep.subr.mxu0 %v493_v35  ;;  %796 = vmatprep.subr.mxu1 %v525_v36 }
 0x14f   :  { %753 = vmatpush3.msra.mxu0 %v477_v37  ;;  %797 = vmatpush3.msra.mxu1 %v509_v38 }
 0x150   :  { %754 = vmatprep.subr.mxu0 %v492_v39  ;;  %798 = vmatprep.subr.mxu1 %v524_v40 }
 0x151   :  { %755 = vmatpush3.msra.mxu0 %v476_v41  ;;  %799 = vmatpush3.msra.mxu1 %v508_v42 }
 0x152   :  { %756 = vmatprep.subr.mxu0 %v491_v43  ;;  %800 = vmatprep.subr.mxu1 %v523_v44 }
 0x153   :  { %757 = vmatpush3.msra.mxu0 %v475_v45  ;;  %801 = vmatpush3.msra.mxu1 %v507_v46 }
 0x154   :  { %758 = vmatprep.subr.mxu0 %v490_v47  ;;  %802 = vmatprep.subr.mxu1 %v522_v48 }
 0x155   :  { %759 = vmatpush3.msra.mxu0 %v474_v49  ;;  %803 = vmatpush3.msra.mxu1 %v506_v50 }
 0x156   :  { %760 = vmatprep.subr.mxu0 %v489_v51  ;;  %804 = vmatprep.subr.mxu1 %v521_v24 }
 0x157   :  { %761 = vmatpush3.msra.mxu0 %v473_v52  ;;  %805 = vmatpush3.msra.mxu1 %v505_v53 }
 0x158   :  { %762 = vmatprep.subr.mxu0 %v488_v31  ;;  %806 = vmatprep.subr.mxu1 %v520_v25 }
 0x159   :  { %763 = vmatpush3.msra.mxu0 %v472_v54  ;;  %807 = vmatpush3.msra.mxu1 %v504_v55 }
 0x1f4   :  { %v276_v1 = vpop.f32.mrf.mxu0  ;;  %v365_v3 = vpop.f32.mrf.mxu1 }
 0x1f5   :  { %v1345_v6 = vadd.f32 %v276_v1, %v193_v62  ;;  %v1347_v7 = vadd.f32 %v365_v3, %v201_v63 }
 0x1f6   :  { %v278_v8 = vpop.f32.mrf.mxu0  ;;  %v367_v9 = vpop.f32.mrf.mxu1 }
 0x1f7   :  { %v404_v10 = vmul.f32 0.70710677, %v1345_v6  ;;  %v406_v11 = vmul.f32 0.70710677, %v1347_v7  ;;  %v279_v12 = vadd.f32 %v278_v8, %v197_v4  ;;  %v1351_v13 = vadd.f32 %v367_v9, %v205_v5 }
 0x1f8   :  { %v282_v14 = vpop.f32.mrf.mxu0  ;;  %v371_v15 = vpop.f32.mrf.mxu1  ;;  %v388_v61 = vmul.f32 0.5, %v1345_v6  ;;  %v390_v3 = vmul.f32 0.5, %v1347_v7 }
 0x1f9   :  { %829 = verf.f32 %v404_v10  ;;  %v1353_v16 = vadd.f32 %v282_v14, %v193_v62  ;;  %v1355_v17 = vadd.f32 %v371_v15, %v201_v63  ;;  %v405_v18 = vmul.f32 0.70710677, %v279_v12 }
 0x1fa   :  { %831 = verf.f32 %v406_v11  ;;  %v284_v19 = vpop.f32.mrf.mxu0  ;;  %v373_v20 = vpop.f32.mrf.mxu1  ;;  %v407_v21 = vmul.f32 0.70710677, %v1351_v13  ;;  %v389_v59 = vmul.f32 0.5, %v279_v12 }
 0x1fb   :  { %v408_v22 = vmul.f32 0.70710677, %v1353_v16  ;;  %833 = verf.f32 %v405_v18  ;;  %v410_v23 = vmul.f32 0.70710677, %v1355_v17  ;;  %v285_v26 = vadd.f32 %v284_v19, %v197_v4 }
 0x1fc   :  { %v1360_v27 = vadd.f32 %v373_v20, %v205_v5  ;;  %v288_v28 = vpop.f32.mrf.mxu0  ;;  %v377_v29 = vpop.f32.mrf.mxu1  ;;  %835 = verf.f32 %v407_v21  ;;  %v392_v6 = vmul.f32 0.5, %v1353_v16  ;;  %v394_v21 = vmul.f32 0.5, %v1355_v17 }
 0x1fd   :  { %v1362_v30 = vadd.f32 %v288_v28, %v193_v62  ;;  %v1364_v33 = vadd.f32 %v377_v29, %v201_v63  ;;  %837 = verf.f32 %v408_v22  ;;  %v409_v34 = vmul.f32 0.70710677, %v285_v26 }
 0x1fe   :  { %v290_v35 = vpop.f32.mrf.mxu0  ;;  %v379_v36 = vpop.f32.mrf.mxu1  ;;  %839 = verf.f32 %v410_v23  ;;  %v411_v37 = vmul.f32 0.70710677, %v1360_v27  ;;  %v393_v15 = vmul.f32 0.5, %v285_v26 }
 0x1ff   :  { %v412_v38 = vmul.f32 0.70710677, %v1362_v30  ;;  %841 = verf.f32 %v409_v34  ;;  %v414_v39 = vmul.f32 0.70710677, %v1364_v33  ;;  %v1369_v40 = vadd.f32 %v290_v35, %v197_v4 }
 0x200   :  { %v294_v41 = vpop.f32.mrf.mxu0  ;;  %v383_v42 = vpop.f32.mrf.mxu1  ;;  %843 = verf.f32 %v411_v37  ;;  %v1371_v43 = vadd.f32 %v379_v36, %v205_v5 }
 0x201   :  { %v1373_v44 = vadd.f32 %v294_v41, %v193_v62  ;;  %v1375_v45 = vadd.f32 %v383_v42, %v201_v63  ;;  %845 = verf.f32 %v412_v38  ;;  %v413_v46 = vmul.f32 0.70710677, %v1369_v40 }
 0x202   :  { %v296_v47 = vpop.f32.mrf.mxu0  ;;  %v385_v48 = vpop.f32.mrf.mxu1  ;;  %847 = verf.f32 %v414_v39  ;;  %v415_v49 = vmul.f32 0.70710677, %v1371_v43  ;;  %v391_v62 = vmul.f32 0.5, %v1351_v13  ;;  %v395_v13 = vmul.f32 0.5, %v1360_v27 }
 0x203   :  { %849 = verf.f32 %v413_v46  ;;  %v416_v50 = vmul.f32 0.70710677, %v1373_v44  ;;  %v418_v51 = vmul.f32 0.70710677, %v1375_v45  ;;  %v1381_v24 = vadd.f32 %v296_v47, %v197_v4 }
 0x204   :  { %851 = verf.f32 %v415_v49  ;;  %v1383_v52 = vadd.f32 %v385_v48, %v205_v5  ;;  %v397_v35 = vmul.f32 0.5, %v1369_v40  ;;  %v396_v38 = vmul.f32 0.5, %v1362_v30 }
 0x205   :  { %853 = verf.f32 %v416_v50  ;;  %v417_v25 = vmul.f32 0.70710677, %v1381_v24  ;;  %v399_v39 = vmul.f32 0.5, %v1371_v43  ;;  %v398_v42 = vmul.f32 0.5, %v1364_v33 }
 0x206   :  { %v830_v53 = vpop.eup %829  ;;  %855 = verf.f32 %v418_v51  ;;  %v419_v54 = vmul.f32 0.70710677, %v1383_v52 }
 0x207   :  { %v832_v31 = vpop.eup %831  ;;  %v436_v56 = vadd.f32 1.0, %v830_v53  ;;  %857 = verf.f32 %v417_v25  ;;  %v401_v53 = vmul.f32 0.5, %v1381_v24  ;;  %v403_v25 = vmul.f32 0.5, %v1383_v52 }
 0x208   :  { %v834_v55 = vpop.eup %833  ;;  %v438_v58 = vadd.f32 1.0, %v832_v31  ;;  %859 = verf.f32 %v419_v54  ;;  %v400_v31 = vmul.f32 0.5, %v1373_v44  ;;  %v402_v54 = vmul.f32 0.5, %v1375_v45 }
 0x209   :  { %v836_v57 = vpop.eup %835  ;;  %v437_v32 = vadd.f32 1.0, %v834_v55  ;;  %v452_v8 = vmul.f32 %v436_v56, %v388_v61 }
 0x20a   :  { %v838_v60 = vpop.eup %837  ;;  %v439_v63 = vadd.f32 1.0, %v836_v57  ;;  %v454_v14 = vmul.f32 %v438_v58, %v390_v3 }
 0x20b   :  { %v840_v1 = vpop.eup %839  ;;  %v453_v4 = vmul.f32 %v437_v32, %v389_v59  ;;  %v440_v10 = vadd.f32 1.0, %v838_v60  ;;  %v731_v59 = vld [vmem:[%s1430_s6] ss:$0 sm:$0xff] }
 0x20c   :  { %v842_v5 = vpop.eup %841  ;;  %v455_v9 = vmul.f32 %v439_v63, %v391_v62  ;;  %v442_v18 = vadd.f32 1.0, %v840_v1  ;;  %v112_v61 = vadd.f32 %v731_v59, %v907_v0 }
 0x20d   :  { %v844_v11 = vpop.eup %843  ;;  %600 = vmatprep.mubr.f32.mxu0 %v453_v4  ;;  %v441_v12 = vadd.f32 1.0, %v842_v5  ;;  %v456_v29 = vmul.f32 %v440_v10, %v392_v6 }
 0x20e   :  { %v846_v19 = vpop.eup %845  ;;  %685 = vmatprep.mubr.f32.mxu1 %v455_v9  ;;  %601 = vmatmul.mubr.f32.vlgmr.msra.gmra.mxu0 %v452_v8  ;;  %v443_v20 = vadd.f32 1.0, %v844_v11  ;;  %v458_v36 = vmul.f32 %v442_v18, %v394_v21  ;;  %v113_v8 = vadd.f32 %v731_v59, %v916_v2 }
 0x20f   :  { %v848_v7 = vpop.eup %847  ;;  %686 = vmatmul.mubr.f32.vlgmr.msra.gmra.mxu1 %v454_v14  ;;  %v457_v22 = vmul.f32 %v441_v12, %v393_v15  ;;  %v444_v26 = vadd.f32 1.0, %v846_v19  ;;  %v861_v19 = vld [vmem:[%s1424_s0 + $0x10] sm:$0xff] }
 0x210   :  { %v850_v23 = vpop.eup %849  ;;  %v459_v28 = vmul.f32 %v443_v20, %v395_v13  ;;  %v446_v37 = vadd.f32 1.0, %v848_v7  ;;  %v114_v6 = vadd.f32 %v861_v19, %v731_v59 }
 0x211   :  { %v852_v34 = vpop.eup %851  ;;  %605 = vmatprep.mubr.f32.mxu0 %v457_v22  ;;  %v445_v16 = vadd.f32 1.0, %v850_v23  ;;  %v460_v48 = vmul.f32 %v444_v26, %v396_v38  ;;  %v862_v26 = vld [vmem:[%s1424_s0 + $0x18] sm:$0xff] }
 0x212   :  { %v854_v27 = vpop.eup %853  ;;  %690 = vmatprep.mubr.f32.mxu1 %v459_v28  ;;  %606 = vmatmul.mubr.f32.gmra.mxu0 %v456_v29  ;;  %v447_v17 = vadd.f32 1.0, %v852_v34  ;;  %v462_v49 = vmul.f32 %v446_v37, %v398_v42  ;;  %v115_v34 = vadd.f32 %v862_v26, %v731_v59 }
 0x213   :  { %v856_v41 = vpop.eup %855  ;;  %691 = vmatmul.mubr.f32.gmra.mxu1 %v458_v36  ;;  %v461_v46 = vmul.f32 %v445_v16, %v397_v35  ;;  %v448_v50 = vadd.f32 1.0, %v854_v27 }
 0x214   :  { %v463_v47 = vmul.f32 %v447_v17, %v399_v39  ;;  %v858_v40 = vpop.eup %857  ;;  %v450_v43 = vadd.f32 1.0, %v856_v41 }
 0x215   :  { %610 = vmatprep.mubr.f32.mxu0 %v461_v46  ;;  %v860_v51 = vpop.eup %859  ;;  %v449_v30 = vadd.f32 1.0, %v858_v40  ;;  %v464_v57 = vmul.f32 %v448_v50, %v400_v31 }
 0x216   :  { %695 = vmatprep.mubr.f32.mxu1 %v463_v47  ;;  %611 = vmatmul.mubr.f32.gmra.mxu0 %v460_v48  ;;  %v451_v33 = vadd.f32 1.0, %v860_v51  ;;  %v466_v58 = vmul.f32 %v450_v43, %v402_v54 }
 0x217   :  { %696 = vmatmul.mubr.f32.gmra.mxu1 %v462_v49  ;;  %v465_v55 = vmul.f32 %v449_v30, %v401_v53 }
 0x218   :  { %v467_v56 = vmul.f32 %v451_v33, %v403_v25 }
 0x219   :  { %615 = vmatprep.mubr.f32.mxu0 %v465_v55 }
 0x21a   :  { %700 = vmatprep.mubr.f32.mxu1 %v467_v56  ;;  %616 = vmatmul.mubr.f32.gmra.mxu0 %v464_v57 }
 0x21b   :  { %701 = vmatmul.mubr.f32.gmra.mxu1 %v466_v58 }
 0x2ce   :  { %v764_v24 = vpop.f32.mrf.mxu0 }
 0x2cf   :  { %v808_v44 = vpop.f32.mrf.mxu1 }
 0x2d0   :  { %v765_v32 = vpop.f32.mrf.mxu0 }
 0x2d1   :  { %v766_v52 = vadd.f32 %v765_v32, %v764_v24  ;;  %v809_v60 = vpop.f32.mrf.mxu1 }
 0x2d2   :  { %v810_v45 = vadd.f32 %v809_v60, %v808_v44  ;;  %v767_v62 = vpop.f32.mrf.mxu0 }
 0x2d3   :  { %v811_v63 = vpop.f32.mrf.mxu1 }
 0x2d4   :  { %v688_v1 = vadd.f32 %v810_v45, %v766_v52  ;;  %v768_v3 = vpop.f32.mrf.mxu0 }
 0x2d5   :  { %v769_v4 = vadd.f32 %v768_v3, %v767_v62  ;;  %v812_v5 = vpop.f32.mrf.mxu1 }
 0x2d6   :  { %v706_v9 = vadd.f32 %v688_v1, %v112_v61  ;;  %v813_v10 = vadd.f32 %v812_v5, %v811_v63  ;;  %v770_v11 = vpop.f32.mrf.mxu0 }
 0x2d7   :  { %v814_v14 = vpop.f32.mrf.mxu1 }
 0x2d8   :  { %721 = vst [vmem:[%s1431_s7] sm:$0xff] %v706_v9  ;;  %v693_v15 = vadd.f32 %v813_v10, %v769_v4  ;;  %v771_v12 = vpop.f32.mrf.mxu0 }
 0x2d9   :  { %v772_v0 = vadd.f32 %v771_v12, %v770_v11  ;;  %v815_v18 = vpop.f32.mrf.mxu1 }
 0x2da   :  { %v707_v13 = vadd.f32 %v693_v15, %v113_v8  ;;  %v816_v20 = vadd.f32 %v815_v18, %v814_v14  ;;  %v773_v2 = vpop.f32.mrf.mxu0 }
 0x2db   :  { %v817_v21 = vpop.f32.mrf.mxu1 }
 0x2dc   :  { %722 = vst [vmem:[%s1431_s7 + $0x8] sm:$0xff] %v707_v13  ;;  %v698_v7 = vadd.f32 %v816_v20, %v772_v0  ;;  %v774_v22 = vpop.f32.mrf.mxu0 }
 0x2dd   :  { %v775_v28 = vadd.f32 %v774_v22, %v773_v2  ;;  %v818_v29 = vpop.f32.mrf.mxu1 }
 0x2de   :  { %v708_v23 = vadd.f32 %v698_v7, %v114_v6  ;;  %v819_v35 = vadd.f32 %v818_v29, %v817_v21 }
 0x2e0   :  { %723 = vst [vmem:[%s1431_s7 + $0x10] sm:$0xff] %v708_v23  ;;  %v703_v36 = vadd.f32 %v819_v35, %v775_v28 }
 0x2e2   :  { %v709_v16 = vadd.f32 %v703_v36, %v115_v34 }
 0x2e4   :  { %724 = vst [vmem:[%s1431_s7 + $0x18] sm:$0xff] %v709_v16 }

// kernel: transformer_encoder_forward.11
= control target key start
LH: loop header
LB: loop body
LE: loop exit
PB: predicated region body
PF: predicated region fallthrough
CT: control target
= control target key end

     0   :  { %s1737_s15 = smov 0   ;;  %s1944_s0 = inlined_call_operand.vmem [shape: f32[2,16,384], index: 0, kind: input, shape index: {}]   ;;  %s1945_s1 = inlined_call_operand.vmem [shape: f32[2,16,128], index: 1, kind: input, shape index: {}]   ;;  %s1946_s2 = inlined_call_operand.vmem [shape: f32[128,128], index: 2, kind: input, shape index: {}]   ;;  %s1947_s3 = inlined_call_operand.vmem [shape: f32[1,128], index: 3, kind: input, shape index: {}]   ;;  %s1948_s4 = inlined_call_operand.vmem [shape: f32[2,16,128], index: 4, kind: output, shape index: {}]  }
   0x1 LB: > { %s1454_s16 = sadd.s32 4294967295, %s1707_s15   ;;  %p1458_p0 = scmp.ge.s32.totalorder %s1707_s15, 1  ;;  %s1707_s15 = sphi %s1737_s15, %s14_s15  }
   0x2   : > { %p172_p1 = scmp.lt.s32.totalorder %s1707_s15, 3 }
   0x4   : > { %p173_p2 = pnand %p1458_p0, %p172_p1 }
   0x5   : > { %p203_p3 = scmp.lt.s32.totalorder (!%p173_p2), %s1454_s16, 1  ;;  %s1709_s21 = smov (!%p173_p2), 96  }
   0x6   : > { %176 = sbr.rel (%p173_p2) target bundleno = 1542 (0x606), region = 36  ;;  %s1710_s22 = smov (!%p173_p2), 64  }
   0x7   : > { %s1711_s5 = smov (!%p173_p2), 32  }
   0xb   : > { %s1950_s16 = smov (!%p203_p3, %s1454_s16), 1  ;;  %vm235_vm0 = vcmask 261120   ;;  %vm325_vm1 = vcmask 130048   ;;  %v432_v28 = vld [vmem:[%s1946_s2 + $0x18] sm:$0xff]  ;;  %v431_v32 = vld [vmem:[%s1946_s2 + $0x10] sm:$0xff]  ;;  %v430_v34 = vld [vmem:[%s1946_s2 + $0x8] sm:$0xff] }
   0xc   : > { %s1657_s17 = smul.u32 48, %s1950_s16  ;;  %v429_v35 = vld [vmem:[%s1946_s2] sm:$0xff]  ;;  %v723_v60 = vld [vmem:[%s1946_s2 + $0x38] sm:$0xff]  ;;  %v722_v62 = vld [vmem:[%s1946_s2 + $0x30] sm:$0xff]  ;;  %s1499_s14 = sshll.u32 %s1950_s16, 4 }
   0xd   : > { %v721_v63 = vld [vmem:[%s1946_s2 + $0x28] sm:$0xff]  ;;  %s212_s19 = scalar_lea.vmem %s1945_s1, %s1499_s14 }
   0xe   : > { %s1751_s20 = scalar_lea.vmem %s1944_s0, %s1657_s17  ;;  %s217_s17 = scalar_lea.vmem %s1948_s4, %s1499_s14 }
   0xf   : > { %v1754_v0 = vld [vmem:[%s1751_s20 + $0x20] sm:$0xff]  ;;  %v1757_v1 = vld [vmem:[%s1751_s20 + $0x8] sm:$0xff]  ;;  %v1775_v3 = vld [vmem:[%s1751_s20 + $0x18] sm:$0xff] }
  0x10   : > { %v1760_v2 = vld [vmem:[%s1751_s20] sm:$0xff]  ;;  %522 = vrot.lane.b32.xlu0 %v1754_v0, %s1709_s21  ;;  %1557 = vmatprep.subr.msk.mxu0 %vm235_vm0, %v1754_v0  ;;  %v1786_v4 = vld [vmem:[%s1751_s20 + $0x28] sm:$0xff]  ;;  %v1799_v15 = vld [vmem:[%s1751_s20 + $0x10] sm:$0xff] }
  0x11   : > { %1558 = vmatpush3.xpose.msk.msra.mxu0 %vm235_vm0, %v1754_v0  ;;  %516 = vrot.lane.b32.xlu1 %v1760_v2, %s1709_s21 }
  0x12   : > { %1559 = vmatprep.subr.msk.mxu0 %vm235_vm0, %v1757_v1  ;;  %1561 = vmatprep.mubr.msk.f32.mxu0 %vm235_vm0, %v1760_v2 }
  0x13   : > { %1564 = vmatprep.subr.mxu1 %v1786_v4 }
  0x14   : > { %520 = vrot.lane.b32.xlu0 %v1757_v1, %s1709_s21  ;;  %1565 = vmatpush3.msra.mxu1 %v1786_v4 }
  0x15   : > { %1560 = vmatpush3.xpose.msk.msra.mxu0 %vm235_vm0, %v1757_v1  ;;  %518 = vrot.lane.b32.xlu1 %v1775_v3, %s1709_s21 }
  0x16   : > { %1566 = vmatprep.subr.mxu1 %v1799_v15 }
  0x17   : > { %1567 = vmatpush3.msra.mxu1 %v1799_v15 }
  0x18   : > { %1562 = vmatmul.mubr.msk.f32.vlgmr.msra.gmra.mxu0 %vm235_vm0, %v1775_v3  ;;  %1571 = vmatprep.subr.mxu1 %v432_v28 }
  0x82   : > { %v523_v5 = vpop.permute.xlu0 %522 }
  0x83   : > { %1582 = vmatprep.subr.msk.mxu0 %vm235_vm0, %v523_v5  ;;  %v517_v6 = vpop.permute.xlu1 %516 }
  0x84   : > { %1583 = vmatpush3.xpose.msk.msra.mxu0 %vm235_vm0, %v523_v5  ;;  %1586 = vmatprep.mubr.msk.f32.mxu0 %vm235_vm0, %v517_v6 }
  0x86   : > { %v521_v7 = vpop.permute.xlu0 %520 }
  0x87   : > { %1584 = vmatprep.subr.msk.mxu0 %vm235_vm0, %v521_v7  ;;  %v519_v8 = vpop.permute.xlu1 %518 }
  0x88   : > { %1585 = vmatpush3.xpose.msk.msra.mxu0 %vm235_vm0, %v521_v7 }
  0x89   : > { %1596 = vmatprep.subr.mxu0 %v723_v60 }
  0x8b   : > { %1587 = vmatmul.mubr.msk.f32.vlgmr.msra.gmra.mxu0 %vm235_vm0, %v519_v8 }
  0x8c   : > { %1597 = vmatpush3.msra.mxu0 %v723_v60 }
  0x8d   : > { %1598 = vmatprep.subr.mxu0 %v722_v62 }
  0x8e   : > { %1599 = vmatpush3.msra.mxu0 %v722_v62 }
  0x8f   : > { %1600 = vmatprep.subr.mxu0 %v721_v63 }
  0x90   : > { %1601 = vmatpush3.msra.mxu0 %v721_v63 }
  0xd8   : > { %v1563_v9 = vpop.f32.mrf.mxu0 }
  0xd9   : > { %v324_v10 = vmul.f32 0.17677669, %v1563_v9 }
  0xda   : > { %v314_v11 = vpop.f32.mrf.mxu0 }
  0xdb   : > { %v323_v12 = vmul.f32 0.17677669, %v314_v11  ;;  %v329_v13 = vsel %vm325_vm1, %v324_v10, -inf }
  0xdc   : > { %330 = vmax.xlane.f32.xlu1 %v329_v13 }
  0xdd   : > { %v326_v14 = vsel %vm325_vm1, %v323_v12, -inf }
  0xde   : > { %327 = vmax.xlane.f32.xlu0 %v326_v14 }
  0xed   : > { %631 = vrot.lane.b32.xlu1 %v1786_v4, %s1709_s21 }
 0x14b   : > { %v1588_v16 = vpop.f32.mrf.mxu0 }
 0x14c   : > { %v608_v17 = vmul.f32 0.17677669, %v1588_v16 }
 0x14d   : > { %v598_v18 = vpop.f32.mrf.mxu0 }
 0x14e   : > { %v607_v19 = vmul.f32 0.17677669, %v598_v18  ;;  %v612_v20 = vsel %vm325_vm1, %v608_v17, -inf }
 0x14f   : > { %613 = vmax.xlane.f32.xlu0 %v612_v20 }
 0x150   : > { %v609_v21 = vsel %vm325_vm1, %v607_v19, -inf }
 0x151   : > { %610 = vmax.xlane.f32.xlu1 %v609_v21 }
 0x162   : > { %813 = vrot.lane.b32.xlu1 %v1754_v0, %s1710_s22 }
 0x165   : > { %v331_v22 = vpop.xlane.xlu1 %330 }
 0x166   : > { %v333_v23 = vsub.f32 %v324_v10, %v331_v22  ;;  %811 = vrot.lane.b32.xlu1 %v1757_v1, %s1710_s22 }
 0x167   : > { %v328_v24 = vpop.xlane.xlu0 %327 }
 0x168   : > { %v336_v25 = vmul.f32 1.442695, %v333_v23  ;;  %v332_v26 = vsub.f32 %v323_v12, %v328_v24 }
 0x169   : > { %v632_v36 = vpop.permute.xlu1 %631 }
 0x16a   : > { %1669 = vpow2.f32 %v336_v25  ;;  %v334_v27 = vmul.f32 1.442695, %v332_v26  ;;  %809 = vrot.lane.b32.xlu1 %v1775_v3, %s1710_s22 }
 0x16c   : > { %1671 = vpow2.f32 %v334_v27 }
 0x177   : > { %v1670_v29 = vpop.eup %1669 }
 0x178   : > { %v341_v30 = vsel %vm325_vm1, %v1670_v29, 0.0 }
 0x179   : > { %v1672_v31 = vpop.eup %1671  ;;  %342 = vadd.xlane.f32.xlu0 %v341_v30 }
 0x17a   : > { %1568 = vmatprep.mubr.msk.f32.mxu1 %vm325_vm1, %v1672_v31  ;;  %v338_v33 = vsel %vm325_vm1, %v1672_v31, 0.0 }
 0x17b   : > { %1569 = vmatmul.mubr.msk.f32.vlgmr.msra.gmra.mxu1 %vm325_vm1, %v1670_v29 }
 0x17c   : > { %1572 = vmatpush3.msra.mxu1 %v432_v28 }
 0x17d   : > { %339 = vadd.xlane.f32.xlu0 %v338_v33  ;;  %1573 = vmatprep.subr.mxu1 %v431_v32 }
 0x17e   : > { %1574 = vmatpush3.msra.mxu1 %v431_v32 }
 0x17f   : > { %1575 = vmatprep.subr.mxu1 %v430_v34 }
 0x180   : > { %1576 = vmatpush3.msra.mxu1 %v430_v34  ;;  %v219_v34 = vld [vmem:[%s212_s19 + $0x8] sm:$0xff] }
 0x181   : > { %1577 = vmatprep.subr.mxu1 %v429_v35 }
 0x182   : > { %1578 = vmatpush3.msra.mxu1 %v429_v35  ;;  %v1464_v35 = vld [vmem:[%s1947_s3] ss:$0 sm:$0xff] }
 0x183   : > { %1589 = vmatprep.subr.mxu1 %v632_v36 }
 0x193   : > { %629 = vrot.lane.b32.xlu0 %v1799_v15, %s1709_s21 }
 0x197   : > { %807 = vrot.lane.b32.xlu0 %v1760_v2, %s1710_s22 }
 0x1d8   : > { %v614_v37 = vpop.xlane.xlu0 %613 }
 0x1d9   : > { %v616_v38 = vsub.f32 %v608_v17, %v614_v37  ;;  %v228_v37 = vadd.f32 %v1464_v35, %v219_v34 }
 0x1da   : > { %v611_v39 = vpop.xlane.xlu1 %610 }
 0x1db   : > { %v619_v40 = vmul.f32 1.442695, %v616_v38  ;;  %v615_v41 = vsub.f32 %v607_v19, %v611_v39 }
 0x1dd   : > { %1673 = vpow2.f32 %v619_v40  ;;  %v617_v42 = vmul.f32 1.442695, %v615_v41 }
 0x1de   : > { %v814_v54 = vpop.permute.xlu1 %813 }
 0x1df   : > { %1675 = vpow2.f32 %v617_v42 }
 0x1e2   : > { %v812_v58 = vpop.permute.xlu1 %811 }
 0x1e6   : > { %v810_v59 = vpop.permute.xlu1 %809 }
 0x1ea   : > { %v1674_v43 = vpop.eup %1673 }
 0x1eb   : > { %v624_v44 = vsel %vm325_vm1, %v1674_v43, 0.0 }
 0x1ec   : > { %v1676_v45 = vpop.eup %1675  ;;  %625 = vadd.xlane.f32.xlu1 %v624_v44 }
 0x1ed   : > { %v621_v46 = vsel %vm325_vm1, %v1676_v45, 0.0 }
 0x1ee   : > { %622 = vadd.xlane.f32.xlu0 %v621_v46 }
 0x1fd   : > { %1100 = vrot.lane.b32.xlu1 %v1757_v1, %s1711_s5 }
 0x201   : > { %1098 = vrot.lane.b32.xlu1 %v1775_v3, %s1711_s5 }
 0x202   : > { %v343_v47 = vpop.xlane.xlu0 %342 }
 0x204   : > { %1102 = vrot.lane.b32.xlu0 %v1754_v0, %s1711_s5  ;;  %v720_v0 = vld [vmem:[%s1946_s2 + $0x20] sm:$0xff] }
 0x205   : > { %1602 = vmatprep.subr.mxu0 %v720_v0 }
 0x206   : > { %v340_v48 = vpop.xlane.xlu0 %339  ;;  %1603 = vmatpush3.msra.mxu0 %v720_v0 }
 0x207   : > { %1677 = vrcp.f32 %v340_v48 }
 0x208   : > { %1096 = vrot.lane.b32.xlu0 %v1760_v2, %s1711_s5  ;;  %1679 = vrcp.f32 %v343_v47 }
 0x20a   : > { %v630_v56 = vpop.permute.xlu0 %629 }
 0x20e   : > { %v808_v57 = vpop.permute.xlu0 %807 }
 0x214   : > { %v1678_v50 = vpop.eup %1677 }
 0x215   : > { %v1680_v52 = vpop.eup %1679 }
 0x23b   : > { %v1570_v49 = vpop.f32.mrf.mxu1 }
 0x23c   : > { %v428_v55 = vmul.f32 %v1680_v52, %v1570_v49  ;;  %v1010_v52 = vld [vmem:[%s1946_s2 + $0x48] sm:$0xff] }
 0x23d   : > { %v416_v51 = vpop.f32.mrf.mxu1 }
 0x23e   : > { %v427_v53 = vmul.f32 %v1678_v50, %v416_v51  ;;  %v1012_v50 = vld [vmem:[%s1946_s2 + $0x58] sm:$0xff]  ;;  %v1011_v51 = vld [vmem:[%s1946_s2 + $0x50] sm:$0xff] }
 0x240   : > { %1579 = vmatprep.mubr.msk.f32.mxu1 %vm235_vm0, %v427_v53  ;;  %v1009_v53 = vld [vmem:[%s1946_s2 + $0x40] sm:$0xff] }
 0x241   : > { %1580 = vmatmul.mubr.msk.f32.vlgmr.msra.gmra.mxu1 %vm235_vm0, %v428_v55 }
 0x242   : > { %1590 = vmatpush3.msra.mxu1 %v632_v36  ;;  %1593 = vmatprep.mubr.msk.f32.mxu1 %vm325_vm1, %v1676_v45  ;;  %v218_v36 = vld [vmem:[%s212_s19] sm:$0xff] }
 0x243   : > { %1591 = vmatprep.subr.mxu1 %v630_v56  ;;  %v227_v38 = vadd.f32 %v1464_v35, %v218_v36 }
 0x244   : > { %1592 = vmatpush3.msra.mxu1 %v630_v56 }
 0x245   : > { %1607 = vmatprep.subr.msk.mxu1 %vm235_vm0, %v814_v54  ;;  %1594 = vmatmul.mubr.msk.f32.vlgmr.msra.gmra.mxu1 %vm325_vm1, %v1674_v43 }
 0x246   : > { %1608 = vmatpush3.xpose.msk.msra.mxu1 %vm235_vm0, %v814_v54  ;;  %1611 = vmatprep.mubr.msk.f32.mxu1 %vm235_vm0, %v808_v57 }
 0x247   : > { %1609 = vmatprep.subr.msk.mxu1 %vm235_vm0, %v812_v58 }
 0x24a   : > { %1610 = vmatpush3.xpose.msk.msra.mxu1 %vm235_vm0, %v812_v58 }
 0x24d   : > { %1612 = vmatmul.mubr.msk.f32.vlgmr.msra.gmra.mxu1 %vm235_vm0, %v810_v59 }
 0x275   : > { %v626_v2 = vpop.xlane.xlu1 %625 }
 0x277   : > { %v623_v61 = vpop.xlane.xlu0 %622 }
 0x278   : > { %1681 = vrcp.f32 %v623_v61 }
 0x279   : > { %1683 = vrcp.f32 %v626_v2  ;;  %v1101_v13 = vpop.permute.xlu1 %1100 }
 0x27b   : > { %v1103_v1 = vpop.permute.xlu0 %1102 }
 0x27c   : > { %1632 = vmatprep.subr.msk.mxu0 %vm235_vm0, %v1103_v1 }
 0x27d   : > { %v1099_v20 = vpop.permute.xlu1 %1098 }
 0x27f   : > { %v1097_v12 = vpop.permute.xlu0 %1096 }
 0x285   : > { %v1682_v7 = vpop.eup %1681 }
 0x286   : > { %v1684_v9 = vpop.eup %1683 }
 0x301   : > { %v1581_v3 = vpop.f32.mrf.mxu1 }
 0x302   : > { %v515_v39 = vadd.f32 %v1581_v3, %v228_v37 }
 0x303   : > { %v505_v5 = vpop.f32.mrf.mxu1 }
 0x304   : > { %v514_v41 = vadd.f32 %v505_v5, %v227_v38 }
 0x305   : > { %v1595_v6 = vpop.f32.mrf.mxu1 }
 0x306   : > { %v719_v11 = vmul.f32 %v1684_v9, %v1595_v6 }
 0x307   : > { %v707_v8 = vpop.f32.mrf.mxu1 }
 0x308   : > { %v718_v10 = vmul.f32 %v1682_v7, %v707_v8 }
 0x30a   : > { %1604 = vmatprep.mubr.msk.f32.mxu0 %vm235_vm0, %v718_v10  ;;  %v1301_v10 = vld [vmem:[%s1946_s2 + $0x78] sm:$0xff] }
 0x30b   : > { %1605 = vmatmul.mubr.msk.f32.vlgmr.msra.gmra.mxu0 %vm235_vm0, %v719_v11  ;;  %v1300_v11 = vld [vmem:[%s1946_s2 + $0x70] sm:$0xff] }
 0x30c   : > { %1633 = vmatpush3.xpose.msk.msra.mxu0 %vm235_vm0, %v1103_v1  ;;  %1636 = vmatprep.mubr.msk.f32.mxu0 %vm235_vm0, %v1097_v12  ;;  %v1299_v12 = vld [vmem:[%s1946_s2 + $0x68] sm:$0xff] }
 0x30d   : > { %v1613_v14 = vpop.f32.mrf.mxu1  ;;  %1634 = vmatprep.subr.msk.mxu0 %vm235_vm0, %v1101_v13 }
 0x30e   : > { %v899_v16 = vmul.f32 0.17677669, %v1613_v14 }
 0x30f   : > { %v889_v17 = vpop.f32.mrf.mxu1 }
 0x310   : > { %v898_v18 = vmul.f32 0.17677669, %v889_v17  ;;  %1635 = vmatpush3.xpose.msk.msra.mxu0 %vm235_vm0, %v1101_v13  ;;  %v903_v19 = vsel %vm325_vm1, %v899_v16, -inf  ;;  %v1298_v13 = vld [vmem:[%s1946_s2 + $0x60] sm:$0xff] }
 0x311   : > { %904 = vmax.xlane.f32.xlu1 %v903_v19  ;;  %1646 = vmatprep.subr.mxu0 %v1301_v10 }
 0x312   : > { %v900_v21 = vsel %vm325_vm1, %v898_v18, -inf }
 0x313   : > { %901 = vmax.xlane.f32.xlu0 %v900_v21  ;;  %1637 = vmatmul.mubr.msk.f32.vlgmr.msra.gmra.mxu0 %vm235_vm0, %v1099_v20 }
 0x314   : > { %1647 = vmatpush3.msra.mxu0 %v1301_v10 }
 0x315   : > { %1648 = vmatprep.subr.mxu0 %v1300_v11 }
 0x316   : > { %1649 = vmatpush3.msra.mxu0 %v1300_v11 }
 0x317   : > { %1650 = vmatprep.subr.mxu0 %v1299_v12 }
 0x318   : > { %1651 = vmatpush3.msra.mxu0 %v1299_v12 }
 0x319   : > { %1652 = vmatprep.subr.mxu0 %v1298_v13 }
 0x31a   : > { %1653 = vmatpush3.msra.mxu0 %v1298_v13 }
 0x322   : > { %918 = vrot.lane.b32.xlu1 %v1799_v15, %s1710_s22 }
 0x329   : > { %920 = vrot.lane.b32.xlu0 %v1786_v4, %s1710_s22 }
 0x39a   : > { %v905_v22 = vpop.xlane.xlu1 %904 }
 0x39b   : > { %v907_v23 = vsub.f32 %v899_v16, %v905_v22 }
 0x39c   : > { %v902_v24 = vpop.xlane.xlu0 %901 }
 0x39d   : > { %v910_v25 = vmul.f32 1.442695, %v907_v23  ;;  %v906_v26 = vsub.f32 %v898_v18, %v902_v24 }
 0x39e   : > { %v919_v29 = vpop.permute.xlu1 %918 }
 0x39f   : > { %1685 = vpow2.f32 %v910_v25  ;;  %v908_v27 = vmul.f32 1.442695, %v906_v26 }
 0x3a0   : > { %v921_v28 = vpop.permute.xlu0 %920 }
 0x3a1   : > { %1687 = vpow2.f32 %v908_v27  ;;  %1614 = vmatprep.subr.mxu1 %v921_v28 }
 0x3a2   : > { %1615 = vmatpush3.msra.mxu1 %v921_v28 }
 0x3a3   : > { %1616 = vmatprep.subr.mxu1 %v919_v29 }
 0x3a4   : > { %1617 = vmatpush3.msra.mxu1 %v919_v29 }
 0x3a5   : > { %1621 = vmatprep.subr.mxu1 %v1012_v50 }
 0x3ac   : > { %v1686_v30 = vpop.eup %1685 }
 0x3ad   : > { %v915_v31 = vsel %vm325_vm1, %v1686_v30, 0.0 }
 0x3ae   : > { %v1688_v32 = vpop.eup %1687  ;;  %916 = vadd.xlane.f32.xlu1 %v915_v31 }
 0x3af   : > { %1618 = vmatprep.mubr.msk.f32.mxu1 %vm325_vm1, %v1688_v32  ;;  %v912_v33 = vsel %vm325_vm1, %v1688_v32, 0.0 }
 0x3b0   : > { %913 = vadd.xlane.f32.xlu0 %v912_v33  ;;  %1619 = vmatmul.mubr.msk.f32.vlgmr.msra.gmra.mxu1 %vm325_vm1, %v1686_v30 }
 0x3b1   : > { %1622 = vmatpush3.msra.mxu1 %v1012_v50 }
 0x3b2   : > { %1623 = vmatprep.subr.mxu1 %v1011_v51 }
 0x3b3   : > { %1624 = vmatpush3.msra.mxu1 %v1011_v51 }
 0x3b4   : > { %1625 = vmatprep.subr.mxu1 %v1010_v52 }
 0x3b5   : > { %1626 = vmatpush3.msra.mxu1 %v1010_v52 }
 0x3b6   : > { %1627 = vmatprep.subr.mxu1 %v1009_v53 }
 0x3b7   : > { %1628 = vmatpush3.msra.mxu1 %v1009_v53 }
 0x3bf   : > { %1209 = vrot.lane.b32.xlu1 %v1786_v4, %s1711_s5 }
 0x3cb   : > { %v1606_v40 = vpop.f32.mrf.mxu0 }
 0x3cc   : > { %v1894_v42 = vadd.f32 %v1606_v40, %v515_v39 }
 0x3cd   : > { %v796_v43 = vpop.f32.mrf.mxu0 }
 0x3ce   : > { %v1896_v4 = vadd.f32 %v796_v43, %v514_v41 }
 0x3d3   : > { %v1638_v44 = vpop.f32.mrf.mxu0 }
 0x3d4   : > { %v1188_v45 = vmul.f32 0.17677669, %v1638_v44 }
 0x3d5   : > { %v1178_v46 = vpop.f32.mrf.mxu0 }
 0x3d6   : > { %v1187_v47 = vmul.f32 0.17677669, %v1178_v46  ;;  %v1192_v48 = vsel %vm325_vm1, %v1188_v45, -inf }
 0x3d7   : > { %1193 = vmax.xlane.f32.xlu0 %v1192_v48 }
 0x3d8   : > { %v1189_v49 = vsel %vm325_vm1, %v1187_v47, -inf }
 0x3db   : > { %1190 = vmax.xlane.f32.xlu0 %v1189_v49 }
 0x3f1   : > { %1207 = vrot.lane.b32.xlu0 %v1799_v15, %s1711_s5 }
 0x437   : > { %v917_v54 = vpop.xlane.xlu1 %916 }
 0x439   : > { %v914_v56 = vpop.xlane.xlu0 %913 }
 0x43a   : > { %1689 = vrcp.f32 %v914_v56 }
 0x43b   : > { %v1210_v55 = vpop.permute.xlu1 %1209 }
 0x43c   : > { %1639 = vmatprep.subr.mxu1 %v1210_v55 }
 0x447   : > { %v1690_v63 = vpop.eup %1689 }
 0x460   : > { %v1194_v57 = vpop.xlane.xlu0 %1193 }
 0x461   : > { %v1196_v58 = vsub.f32 %v1188_v45, %v1194_v57 }
 0x463   : > { %v1199_v59 = vmul.f32 1.442695, %v1196_v58 }
 0x464   : > { %v1191_v60 = vpop.xlane.xlu0 %1190 }
 0x465   : > { %1691 = vpow2.f32 %v1199_v59  ;;  %v1195_v61 = vsub.f32 %v1187_v47, %v1191_v60 }
 0x466   : > { %1693 = vrcp.f32 %v917_v54 }
 0x467   : > { %v1197_v15 = vmul.f32 1.442695, %v1195_v61 }
 0x468   : > { %v1208_v7 = vpop.permute.xlu0 %1207 }
 0x469   : > { %1695 = vpow2.f32 %v1197_v15 }
 0x470   : > { %v1620_v62 = vpop.f32.mrf.mxu1 }
 0x472   : > { %v1692_v0 = vpop.eup %1691  ;;  %v996_v1 = vpop.f32.mrf.mxu1 }
 0x473   : > { %v1694_v2 = vpop.eup %1693  ;;  %v1007_v3 = vmul.f32 %v1690_v63, %v996_v1  ;;  %v1204_v5 = vsel %vm325_vm1, %v1692_v0, 0.0 }
 0x474   : > { %v1008_v6 = vmul.f32 %v1694_v2, %v1620_v62  ;;  %1205 = vadd.xlane.f32.xlu0 %v1204_v5 }
 0x475   : > { %1629 = vmatprep.mubr.msk.f32.mxu1 %vm235_vm0, %v1007_v3 }
 0x476   : > { %v1696_v8 = vpop.eup %1695  ;;  %1630 = vmatmul.mubr.msk.f32.vlgmr.msra.gmra.mxu1 %vm235_vm0, %v1008_v6 }
 0x477   : > { %1640 = vmatpush3.msra.mxu1 %v1210_v55  ;;  %1643 = vmatprep.mubr.msk.f32.mxu1 %vm325_vm1, %v1696_v8  ;;  %v1201_v9 = vsel %vm325_vm1, %v1696_v8, 0.0 }
 0x478   : > { %1641 = vmatprep.subr.mxu1 %v1208_v7  ;;  %1202 = vadd.xlane.f32.xlu1 %v1201_v9 }
 0x479   : > { %1642 = vmatpush3.msra.mxu1 %v1208_v7 }
 0x47a   : > { %1644 = vmatmul.mubr.msk.f32.vlgmr.msra.gmra.mxu1 %vm325_vm1, %v1692_v0 }
 0x4fd   : > { %v1206_v16 = vpop.xlane.xlu0 %1205 }
 0x501   : > { %v1203_v14 = vpop.xlane.xlu1 %1202 }
 0x502   : > { %1697 = vrcp.f32 %v1203_v14 }
 0x503   : > { %1699 = vrcp.f32 %v1206_v16 }
 0x50f   : > { %v1698_v22 = vpop.eup %1697 }
 0x510   : > { %v1700_v24 = vpop.eup %1699 }
 0x536   : > { %v1631_v17 = vpop.f32.mrf.mxu1 }
 0x537   : > { %v1095_v18 = vadd.f32 %v1631_v17, %v1894_v42 }
 0x538   : > { %v1085_v19 = vpop.f32.mrf.mxu1 }
 0x539   : > { %v1094_v20 = vadd.f32 %v1085_v19, %v1896_v4 }
 0x53a   : > { %v1645_v21 = vpop.f32.mrf.mxu1 }
 0x53b   : > { %v1297_v26 = vmul.f32 %v1700_v24, %v1645_v21 }
 0x53c   : > { %v1285_v23 = vpop.f32.mrf.mxu1 }
 0x53d   : > { %v1296_v25 = vmul.f32 %v1698_v22, %v1285_v23 }
 0x53f   : > { %1654 = vmatprep.mubr.msk.f32.mxu0 %vm235_vm0, %v1296_v25 }
 0x540   : > { %1655 = vmatmul.mubr.msk.f32.vlgmr.msra.gmra.mxu0 %vm235_vm0, %v1297_v26 }
 0x600   : > { %v1656_v27 = vpop.f32.mrf.mxu0 }
 0x601   : > { %v1384_v28 = vadd.f32 %v1656_v27, %v1095_v18 }
 0x602   : > { %v1374_v29 = vpop.f32.mrf.mxu0 }
 0x603   : > { %1386 = vst [vmem:[%s217_s17 + $0x8] sm:$0xff] %v1384_v28  ;;  %v1383_v30 = vadd.f32 %v1374_v29, %v1094_v20 }
 0x605   : > { %1385 = vst [vmem:[%s217_s17] sm:$0xff] %v1383_v30 }
 0x606 PF: > { %s14_s15 = sadd.s32 1, %s1707_s15  }
 0x607   : > { %p11_p4 = scmp.ge.s32.totalorder %s14_s15, 4  }
 0x609   :  { %13 = sbr.rel (!%p11_p4) target bundleno = 1 (0x1), region = 69 }

</bundles_post_ra>
